<compile_context>
chip_gen: v5e
topology: v5e:2x2
jax: 0.10.0
libtpu: 0.0.40
codegen_flags: <defaults>
</compile_context>

<pallas_src>
import functools

import jax
import jax.numpy as jnp
from jax import lax
from jax.experimental import pallas as pl
from jax.experimental.pallas import tpu as pltpu

TM_MAX = 512                      # M tile for the tiled paths
FUSED_VMEM_BUDGET = 24 * 1024 * 1024   # raw bytes (x2 double-buffer) allowed for fused BN path


# ----------------------------- Pallas kernels ------------------------------ #

def conv_act_kernel(a_ref, b_ref, o_ref, *, act):
    """One M-tile of (M, K) @ (K, Cout) with fused activation (f32 epilogue)."""
    y = jnp.dot(a_ref[...], b_ref[...], preferred_element_type=jnp.float32)
    if act == "leaky":
        y = jnp.where(y > 0, y, 0.2 * y)
    o_ref[...] = y.astype(o_ref.dtype)


def conv_bn_lrelu_kernel(a_ref, b_ref, o_ref):
    """Fully fused conv-matmul + training-mode BatchNorm (batch stats, biased var,
    eps=1e-5, gamma=1, beta=0) + LeakyReLU(0.2). Whole (M, Cout) output in VMEM."""
    y = jnp.dot(a_ref[...], b_ref[...], preferred_element_type=jnp.float32)
    mean = jnp.mean(y, axis=0, keepdims=True)
    var = jnp.mean((y - mean) ** 2, axis=0, keepdims=True)
    xhat = (y - mean) * lax.rsqrt(var + 1e-5)
    o_ref[...] = jnp.where(xhat > 0, xhat, 0.2 * xhat).astype(o_ref.dtype)


def conv_stats_kernel(a_ref, b_ref, o_ref, st_ref, *, m_total, tm):
    """Tiled fallback phase 1: conv matmul tile + per-tile partial (sum, sumsq) stats."""
    y = jnp.dot(a_ref[...], b_ref[...], preferred_element_type=jnp.float32)
    o_ref[...] = y
    rows = pl.program_id(0) * tm + lax.broadcasted_iota(jnp.int32, y.shape, 0)
    ym = jnp.where(rows < m_total, y, 0.0)            # mask out-of-range rows of last tile
    s = jnp.sum(ym, axis=0, keepdims=True)
    ss = jnp.sum(ym * ym, axis=0, keepdims=True)
    pad = jnp.zeros((6, y.shape[1]), jnp.float32)
    st_ref[...] = jnp.concatenate([s, ss, pad], axis=0)[None]


def bn_norm_kernel(y_ref, mean_ref, rstd_ref, o_ref):
    """Tiled fallback phase 2: normalize with precomputed stats + LeakyReLU(0.2)."""
    xhat = (y_ref[...] - mean_ref[...]) * rstd_ref[...]
    o_ref[...] = jnp.where(xhat > 0, xhat, 0.2 * xhat).astype(o_ref.dtype)


def head_sigmoid_kernel(x_ref, w_ref, o_ref):
    """Final Conv(256->1, 4x4, valid) == per-sample dot over 4096 feats, + sigmoid."""
    x = x_ref[...].astype(jnp.float32)                 # (N, K)
    w = w_ref[...].astype(jnp.float32)                 # (1, K)
    logit = jnp.sum(x * w, axis=1, keepdims=True)      # (N, 1)
    o_ref[...] = 1.0 / (1.0 + jnp.exp(-logit))


# ------------------------------ Pallas wrappers ----------------------------- #

def pallas_conv_act(col, wmat, act="leaky", out_dtype=jnp.bfloat16):
    """col: (M, K) bf16, wmat: (K, Cout) bf16 -> (M, Cout) with fused activation."""
    M, K = col.shape
    K2, C = wmat.shape
    assert K == K2
    tm = M if M <= TM_MAX else TM_MAX
    grid_m = pl.cdiv(M, tm)
    return pl.pallas_call(
        functools.partial(conv_act_kernel, act=act),
        out_shape=jax.ShapeDtypeStruct((M, C), out_dtype),
        grid_spec=pltpu.PrefetchScalarGridSpec(
            num_scalar_prefetch=0,
            grid=(grid_m,),
            in_specs=[pl.BlockSpec((tm, K), lambda i: (i, 0)),
                      pl.BlockSpec((K, C), lambda i: (0, 0))],
            out_specs=pl.BlockSpec((tm, C), lambda i: (i, 0)),
        ),
        compiler_params=pltpu.CompilerParams(
            dimension_semantics=("parallel",)),
    )(col, wmat)


def _conv_bn_lrelu_tiled(col, wmat, out_dtype):
    """Fallback for large M: matmul + partial stats, then normalize pass."""
    M, K = col.shape
    _, C = wmat.shape
    tm = TM_MAX
    grid_m = pl.cdiv(M, tm)

    y, st = pl.pallas_call(
        functools.partial(conv_stats_kernel, m_total=M, tm=tm),
        out_shape=(jax.ShapeDtypeStruct((M, C), jnp.float32),
                   jax.ShapeDtypeStruct((grid_m, 8, C), jnp.float32)),
        grid_spec=pltpu.PrefetchScalarGridSpec(
            num_scalar_prefetch=0,
            grid=(grid_m,),
            in_specs=[pl.BlockSpec((tm, K), lambda i: (i, 0)),
                      pl.BlockSpec((K, C), lambda i: (0, 0))],
            out_specs=(pl.BlockSpec((tm, C), lambda i: (i, 0)),
                       pl.BlockSpec((1, 8, C), lambda i: (i, 0, 0))),
        ),
        compiler_params=pltpu.CompilerParams(
            dimension_semantics=("parallel",)),
    )(col, wmat)

    s = jnp.sum(st[:, 0, :], axis=0)
    ss = jnp.sum(st[:, 1, :], axis=0)
    mean = s / M
    var = ss / M - mean * mean
    rstd = lax.rsqrt(var + 1e-5)

    return pl.pallas_call(
        bn_norm_kernel,
        out_shape=jax.ShapeDtypeStruct((M, C), out_dtype),
        grid_spec=pltpu.PrefetchScalarGridSpec(
            num_scalar_prefetch=0,
            grid=(grid_m,),
            in_specs=[pl.BlockSpec((tm, C), lambda i: (i, 0)),
                      pl.BlockSpec((1, C), lambda i: (0, 0)),
                      pl.BlockSpec((1, C), lambda i: (0, 0))],
            out_specs=pl.BlockSpec((tm, C), lambda i: (i, 0)),
        ),
        compiler_params=pltpu.CompilerParams(
            dimension_semantics=("parallel",)),
    )(y, mean[None, :], rstd[None, :])


def pallas_conv_bn_lrelu(col, wmat, out_dtype=jnp.bfloat16):
    """Conv matmul + BatchNorm(train) + LeakyReLU, fused when it fits VMEM."""
    M, K = col.shape
    _, C = wmat.shape
    raw_bytes = 2 * (M * K * 2 + K * C * 2 + M * C * 2)   # bf16 in/out, x2 double buffers
    if raw_bytes <= FUSED_VMEM_BUDGET:
        return pl.pallas_call(
            conv_bn_lrelu_kernel,
            out_shape=jax.ShapeDtypeStruct((M, C), out_dtype),
            grid_spec=pltpu.PrefetchScalarGridSpec(
                num_scalar_prefetch=0,
                grid=(1,),
                in_specs=[pl.BlockSpec((M, K), lambda i: (0, 0)),
                          pl.BlockSpec((K, C), lambda i: (0, 0))],
                out_specs=pl.BlockSpec((M, C), lambda i: (0, 0)),
            ),
            compiler_params=pltpu.CompilerParams(
                dimension_semantics=("arbitrary",),
                vmem_limit_bytes=48 * 1024 * 1024),
        )(col, wmat)
    return _conv_bn_lrelu_tiled(col, wmat, out_dtype)


def pallas_head_sigmoid(feat, wvec):
    """feat: (N, K) bf16, wvec: (1, K) bf16 -> (N, 1) f32 sigmoid(feat @ w)."""
    N, K = feat.shape
    assert wvec.shape == (1, K)
    return pl.pallas_call(
        head_sigmoid_kernel,
        out_shape=jax.ShapeDtypeStruct((N, 1), jnp.float32),
        grid_spec=pltpu.PrefetchScalarGridSpec(
            num_scalar_prefetch=0,
            grid=(1,),
            in_specs=[pl.BlockSpec((N, K), lambda i: (0, 0)),
                      pl.BlockSpec((1, K), lambda i: (0, 0))],
            out_specs=pl.BlockSpec((N, 1), lambda i: (0, 0)),
        ),
        compiler_params=pltpu.CompilerParams(
            dimension_semantics=("arbitrary",)),
    )(feat, wvec)


# --------------------------------- glue ------------------------------------ #

def im2col_nhwc(x, k, stride, pad):
    """x: (N, H, W, C) -> ((N*Ho*Wo, k*k*C), Ho, Wo). K-axis order is (kh, kw, c),
    matching the precomputed weight matrices."""
    N, H, W, C = x.shape
    xp = jnp.pad(x, ((0, 0), (pad, pad), (pad, pad), (0, 0)))
    Ho = (H + 2 * pad - k) // stride + 1
    Wo = (W + 2 * pad - k) // stride + 1
    cols = []
    for i in range(k):
        for j in range(k):
            cols.append(xp[:, i:i + stride * Ho:stride, j:j + stride * Wo:stride, :])
    col = jnp.stack(cols, axis=3)                 # (N, Ho, Wo, k*k, C)
    return col.reshape(N * Ho * Wo, k * k * C), Ho, Wo


def prepare_params(params):
    """Hoisted once per model: (Cout, Cin, kh, kw) -> (kh*kw*Cin, Cout) bf16 matrices."""
    w1, w2, w3, w4 = params

    def conv_mat(w):
        cout, cin, kh, kw = w.shape
        return jnp.transpose(w, (2, 3, 1, 0)).reshape(kh * kw * cin, cout).astype(jnp.bfloat16)

    head = jnp.transpose(w4, (2, 3, 1, 0)).reshape(1, -1).astype(jnp.bfloat16)  # (1, 4096)
    return conv_mat(w1), conv_mat(w2), conv_mat(w3), head


def discriminador_forward(x_nchw, wmats):
    """DCGAN Discriminador forward (tamano_img=32). x: (N, 3, 32, 32) f32 -> (N,) f32."""
    w1m, w2m, w3m, w4m = wmats
    n = x_nchw.shape[0]
    x = jnp.transpose(x_nchw, (0, 2, 3, 1)).astype(jnp.bfloat16)   # NHWC once, bf16

    # Conv(3->64, 4, s2, p1) + LeakyReLU(0.2)
    col, ho, wo = im2col_nhwc(x, 4, 2, 1)
    y = pallas_conv_act(col, w1m, act="leaky")                     # (N*16*16, 64)
    x = y.reshape(n, ho, wo, w1m.shape[1])

    # Conv(64->128, 4, s2, p1) + BN + LeakyReLU(0.2)
    col, ho, wo = im2col_nhwc(x, 4, 2, 1)
    y = pallas_conv_bn_lrelu(col, w2m)                             # (N*8*8, 128)
    x = y.reshape(n, ho, wo, w2m.shape[1])

    # Conv(128->256, 4, s2, p1) + BN + LeakyReLU(0.2)
    col, ho, wo = im2col_nhwc(x, 4, 2, 1)
    y = pallas_conv_bn_lrelu(col, w3m)                             # (N*4*4, 256)

    # Conv(256->1, 4, s1, p0) + Sigmoid: 4x4 spatial == receptive field -> flatten + dot
    feat = y.reshape(n, ho * wo * w3m.shape[1])                    # (N, 4096), (kh,kw,c) order
    out = pallas_head_sigmoid(feat, w4m)                           # (N, 1)
    return out.reshape(-1)                                         # .view(-1, 1).squeeze(1)


# --------------------------- pure-JAX reference ----------------------------- #

def reference_forward(x, params):
    w1, w2, w3, w4 = params

    def conv(x, w, s, p):
        return lax.conv_general_dilated(
            x, w, (s, s), ((p, p), (p, p)),
            dimension_numbers=("NCHW", "OIHW", "NCHW"))

    def lrelu(v):
        return jnp.where(v > 0, v, 0.2 * v)

    def bn(v):
        mean = jnp.mean(v, axis=(0, 2, 3), keepdims=True)
        var = jnp.mean((v - mean) ** 2, axis=(0, 2, 3), keepdims=True)
        return (v - mean) * lax.rsqrt(var + 1e-5)

    h = lrelu(conv(x, w1, 2, 1))
    h = lrelu(bn(conv(h, w2, 2, 1)))
    h = lrelu(bn(conv(h, w3, 2, 1)))
    h = jax.nn.sigmoid(conv(h, w4, 1, 0))
    return h.reshape(-1)


# ----------------------------------- main ----------------------------------- #

if __name__ == "__main__":
    key = jax.random.PRNGKey(0)
    kx, k1, k2, k3, k4 = jax.random.split(key, 5)

    # tamano_img=32, canales_img=3; deterministic DCGAN-style N(0, 0.02) weights.
    x = jax.random.normal(kx, (2, 3, 32, 32), dtype=jnp.float32)
    params = (
        0.02 * jax.random.normal(k1, (64, 3, 4, 4), dtype=jnp.float32),
        0.02 * jax.random.normal(k2, (128, 64, 4, 4), dtype=jnp.float32),
        0.02 * jax.random.normal(k3, (256, 128, 4, 4), dtype=jnp.float32),
        0.02 * jax.random.normal(k4, (1, 256, 4, 4), dtype=jnp.float32),
    )

    wmats = prepare_params(params)                 # hoisted weight prep (once)
    fwd = jax.jit(discriminador_forward)

    out = jax.block_until_ready(fwd(x, wmats))
    ref = jax.block_until_ready(reference_forward(x, params))

    assert out.shape == (2,), out.shape
    assert jnp.allclose(out, ref, atol=2e-2, rtol=2e-2), (out, ref)
    print("KERNEL_OK")
</pallas_src>

<mosaic_0001>
module attributes {stable_mosaic.version = 11 : i64} {
  func.func @conv_act_kernel(%arg0: i32, %arg1: memref<512x48xbf16, #tpu.memory_space<vmem>>, %arg2: memref<48x64xbf16, #tpu.memory_space<vmem>>, %arg3: memref<512x64xbf16, #tpu.memory_space<vmem>>) attributes {dimension_semantics = [#tpu.dimension_semantics<parallel>], iteration_bounds = array<i64: 1>, scalar_prefetch = 0 : i64, scratch_operands = 0 : i64, tpu.core_type = #tpu.core_type<tc>, window_params = [{transform_indices = @transform_0, window_bounds = array<i64: 512, 48>}, {pipeline_mode = #tpu.pipeline_mode<synchronous>, transform_indices = @transform_1, window_bounds = array<i64: 48, 64>}, {transform_indices = @transform_2, window_bounds = array<i64: 512, 64>}]} {
    %c0 = arith.constant 0 : index
    %c0_0 = arith.constant 0 : index
    %0 = vector.load %arg1[%c0, %c0_0] : memref<512x48xbf16, #tpu.memory_space<vmem>>, vector<512x48xbf16>
    %c0_1 = arith.constant 0 : index
    %c0_2 = arith.constant 0 : index
    %1 = vector.load %arg2[%c0_1, %c0_2] : memref<48x64xbf16, #tpu.memory_space<vmem>>, vector<48x64xbf16>
    %cst = arith.constant dense<0.000000e+00> : vector<512x64xf32>
    %2 = tpu.matmul %0, %1, %cst {dimension_numbers = #tpu.dot_dimension_numbers<[1], [0], [0], [1], [0, 0, 1, 1], [], []>} : vector<512x48xbf16>, vector<48x64xbf16>, vector<512x64xf32> -> vector<512x64xf32>
    %cst_3 = arith.constant 0.000000e+00 : f32
    %3 = vector.broadcast %cst_3 : f32 to vector<512x64xf32>
    %4 = arith.cmpf ogt, %2, %3 : vector<512x64xf32>
    %cst_4 = arith.constant 2.000000e-01 : f32
    %5 = vector.broadcast %cst_4 : f32 to vector<512x64xf32>
    %6 = arith.mulf %5, %2 : vector<512x64xf32>
    %7 = arith.select %4, %2, %6 : vector<512x64xi1>, vector<512x64xf32>
    %8 = arith.truncf %7 : vector<512x64xf32> to vector<512x64xbf16>
    %c0_5 = arith.constant 0 : index
    %c0_6 = arith.constant 0 : index
    %9 = vector.load %arg3[%c0_5, %c0_6] : memref<512x64xbf16, #tpu.memory_space<vmem>>, vector<512x64xbf16>
    tpu.vector_store %arg3[%c0_5, %c0_6], %8 {strides = array<i32>} : memref<512x64xbf16, #tpu.memory_space<vmem>>, vector<512x64xbf16>,
    return
  }
  func.func @transform_0(%arg0: i32) -> (i32, i32) {
    %c0_i32 = arith.constant 0 : i32
    %c0_i32_0 = arith.constant 0 : i32
    return %arg0, %c0_i32 : i32, i32
  }
  func.func @transform_1(%arg0: i32) -> (i32, i32) {
    %c0_i32 = arith.constant 0 : i32
    %c0_i32_0 = arith.constant 0 : i32
    %c0_i32_1 = arith.constant 0 : i32
    return %c0_i32, %c0_i32_0 : i32, i32
  }
  func.func @transform_2(%arg0: i32) -> (i32, i32) {
    %c0_i32 = arith.constant 0 : i32
    %c0_i32_0 = arith.constant 0 : i32
    return %arg0, %c0_i32 : i32, i32
  }
}

module attributes {stable_mosaic.version = 11 : i64} {
  func.func @conv_bn_lrelu_kernel(%arg0: i32, %arg1: memref<128x1024xbf16, #tpu.memory_space<vmem>>, %arg2: memref<1024x128xbf16, #tpu.memory_space<vmem>>, %arg3: memref<128x128xbf16, #tpu.memory_space<vmem>>) attributes {dimension_semantics = [#tpu.dimension_semantics<arbitrary>], iteration_bounds = array<i64: 1>, scalar_prefetch = 0 : i64, scratch_operands = 0 : i64, tpu.core_type = #tpu.core_type<tc>, window_params = [{pipeline_mode = #tpu.pipeline_mode<synchronous>, transform_indices = @transform_0, window_bounds = array<i64: 128, 1024>}, {pipeline_mode = #tpu.pipeline_mode<synchronous>, transform_indices = @transform_1, window_bounds = array<i64: 1024, 128>}, {pipeline_mode = #tpu.pipeline_mode<synchronous>, transform_indices = @transform_2, window_bounds = array<i64: 128, 128>}]} {
    %c0 = arith.constant 0 : index
    %c0_0 = arith.constant 0 : index
    %0 = vector.load %arg1[%c0, %c0_0] : memref<128x1024xbf16, #tpu.memory_space<vmem>>, vector<128x1024xbf16>
    %c0_1 = arith.constant 0 : index
    %c0_2 = arith.constant 0 : index
    %1 = vector.load %arg2[%c0_1, %c0_2] : memref<1024x128xbf16, #tpu.memory_space<vmem>>, vector<1024x128xbf16>
    %cst = arith.constant dense<0.000000e+00> : vector<128x128xf32>
    %2 = tpu.matmul %0, %1, %cst {dimension_numbers = #tpu.dot_dimension_numbers<[1], [0], [0], [1], [0, 0, 1, 1], [], []>} : vector<128x1024xbf16>, vector<1024x128xbf16>, vector<128x128xf32> -> vector<128x128xf32>
    %cst_3 = arith.constant dense<0.000000e+00> : vector<128xf32>
    %3 = vector.multi_reduction <add>, %2, %cst_3 [0] : vector<128x128xf32> to vector<128xf32>
    %4 = vector.shape_cast %3 : vector<128xf32> to vector<1x128xf32>
    %cst_4 = arith.constant 1.280000e+02 : f32
    %5 = vector.broadcast %cst_4 : f32 to vector<1x128xf32>
    %6 = arith.divf %4, %5 : vector<1x128xf32>
    %7 = vector.broadcast %6 : vector<1x128xf32> to vector<128x128xf32>
    %8 = arith.subf %2, %7 : vector<128x128xf32>
    %9 = arith.mulf %8, %8 : vector<128x128xf32>
    %cst_5 = arith.constant dense<0.000000e+00> : vector<128xf32>
    %10 = vector.multi_reduction <add>, %9, %cst_5 [0] : vector<128x128xf32> to vector<128xf32>
    %11 = vector.shape_cast %10 : vector<128xf32> to vector<1x128xf32>
    %cst_6 = arith.constant 1.280000e+02 : f32
    %12 = vector.broadcast %cst_6 : f32 to vector<1x128xf32>
    %13 = arith.divf %11, %12 : vector<1x128xf32>
    %14 = vector.broadcast %6 : vector<1x128xf32> to vector<128x128xf32>
    %15 = arith.subf %2, %14 : vector<128x128xf32>
    %cst_7 = arith.constant 9.99999974E-6 : f32
    %16 = vector.broadcast %cst_7 : f32 to vector<1x128xf32>
    %17 = arith.addf %13, %16 : vector<1x128xf32>
    %18 = math.rsqrt %17 : vector<1x128xf32>
    %19 = vector.broadcast %18 : vector<1x128xf32> to vector<128x128xf32>
    %20 = arith.mulf %15, %19 : vector<128x128xf32>
    %cst_8 = arith.constant 0.000000e+00 : f32
    %21 = vector.broadcast %cst_8 : f32 to vector<128x128xf32>
    %22 = arith.cmpf ogt, %20, %21 : vector<128x128xf32>
    %cst_9 = arith.constant 2.000000e-01 : f32
    %23 = vector.broadcast %cst_9 : f32 to vector<128x128xf32>
    %24 = arith.mulf %23, %20 : vector<128x128xf32>
    %25 = arith.select %22, %20, %24 : vector<128x128xi1>, vector<128x128xf32>
    %26 = arith.truncf %25 : vector<128x128xf32> to vector<128x128xbf16>
    %c0_10 = arith.constant 0 : index
    %c0_11 = arith.constant 0 : index
    %27 = vector.load %arg3[%c0_10, %c0_11] : memref<128x128xbf16, #tpu.memory_space<vmem>>, vector<128x128xbf16>
    tpu.vector_store %arg3[%c0_10, %c0_11], %26 {strides = array<i32>} : memref<128x128xbf16, #tpu.memory_space<vmem>>, vector<128x128xbf16>,
    return
  }
  func.func @transform_0(%arg0: i32) -> (i32, i32) {
    %c0_i32 = arith.constant 0 : i32
    %c0_i32_0 = arith.constant 0 : i32
    %c0_i32_1 = arith.constant 0 : i32
    return %c0_i32, %c0_i32_0 : i32, i32
  }
  func.func @transform_1(%arg0: i32) -> (i32, i32) {
    %c0_i32 = arith.constant 0 : i32
    %c0_i32_0 = arith.constant 0 : i32
    %c0_i32_1 = arith.constant 0 : i32
    return %c0_i32, %c0_i32_0 : i32, i32
  }
  func.func @transform_2(%arg0: i32) -> (i32, i32) {
    %c0_i32 = arith.constant 0 : i32
    %c0_i32_0 = arith.constant 0 : i32
    %c0_i32_1 = arith.constant 0 : i32
    return %c0_i32, %c0_i32_0 : i32, i32
  }
}

module attributes {stable_mosaic.version = 11 : i64} {
  func.func @conv_bn_lrelu_kernel(%arg0: i32, %arg1: memref<32x2048xbf16, #tpu.memory_space<vmem>>, %arg2: memref<2048x256xbf16, #tpu.memory_space<vmem>>, %arg3: memref<32x256xbf16, #tpu.memory_space<vmem>>) attributes {dimension_semantics = [#tpu.dimension_semantics<arbitrary>], iteration_bounds = array<i64: 1>, scalar_prefetch = 0 : i64, scratch_operands = 0 : i64, tpu.core_type = #tpu.core_type<tc>, window_params = [{pipeline_mode = #tpu.pipeline_mode<synchronous>, transform_indices = @transform_0, window_bounds = array<i64: 32, 2048>}, {pipeline_mode = #tpu.pipeline_mode<synchronous>, transform_indices = @transform_1, window_bounds = array<i64: 2048, 256>}, {pipeline_mode = #tpu.pipeline_mode<synchronous>, transform_indices = @transform_2, window_bounds = array<i64: 32, 256>}]} {
    %c0 = arith.constant 0 : index
    %c0_0 = arith.constant 0 : index
    %0 = vector.load %arg1[%c0, %c0_0] : memref<32x2048xbf16, #tpu.memory_space<vmem>>, vector<32x2048xbf16>
    %c0_1 = arith.constant 0 : index
    %c0_2 = arith.constant 0 : index
    %1 = vector.load %arg2[%c0_1, %c0_2] : memref<2048x256xbf16, #tpu.memory_space<vmem>>, vector<2048x256xbf16>
    %cst = arith.constant dense<0.000000e+00> : vector<32x256xf32>
    %2 = tpu.matmul %0, %1, %cst {dimension_numbers = #tpu.dot_dimension_numbers<[1], [0], [0], [1], [0, 0, 1, 1], [], []>} : vector<32x2048xbf16>, vector<2048x256xbf16>, vector<32x256xf32> -> vector<32x256xf32>
    %cst_3 = arith.constant dense<0.000000e+00> : vector<256xf32>
    %3 = vector.multi_reduction <add>, %2, %cst_3 [0] : vector<32x256xf32> to vector<256xf32>
    %4 = vector.shape_cast %3 : vector<256xf32> to vector<1x256xf32>
    %cst_4 = arith.constant 3.200000e+01 : f32
    %5 = vector.broadcast %cst_4 : f32 to vector<1x256xf32>
    %6 = arith.divf %4, %5 : vector<1x256xf32>
    %7 = vector.broadcast %6 : vector<1x256xf32> to vector<32x256xf32>
    %8 = arith.subf %2, %7 : vector<32x256xf32>
    %9 = arith.mulf %8, %8 : vector<32x256xf32>
    %cst_5 = arith.constant dense<0.000000e+00> : vector<256xf32>
    %10 = vector.multi_reduction <add>, %9, %cst_5 [0] : vector<32x256xf32> to vector<256xf32>
    %11 = vector.shape_cast %10 : vector<256xf32> to vector<1x256xf32>
    %cst_6 = arith.constant 3.200000e+01 : f32
    %12 = vector.broadcast %cst_6 : f32 to vector<1x256xf32>
    %13 = arith.divf %11, %12 : vector<1x256xf32>
    %14 = vector.broadcast %6 : vector<1x256xf32> to vector<32x256xf32>
    %15 = arith.subf %2, %14 : vector<32x256xf32>
    %cst_7 = arith.constant 9.99999974E-6 : f32
    %16 = vector.broadcast %cst_7 : f32 to vector<1x256xf32>
    %17 = arith.addf %13, %16 : vector<1x256xf32>
    %18 = math.rsqrt %17 : vector<1x256xf32>
    %19 = vector.broadcast %18 : vector<1x256xf32> to vector<32x256xf32>
    %20 = arith.mulf %15, %19 : vector<32x256xf32>
    %cst_8 = arith.constant 0.000000e+00 : f32
    %21 = vector.broadcast %cst_8 : f32 to vector<32x256xf32>
    %22 = arith.cmpf ogt, %20, %21 : vector<32x256xf32>
    %cst_9 = arith.constant 2.000000e-01 : f32
    %23 = vector.broadcast %cst_9 : f32 to vector<32x256xf32>
    %24 = arith.mulf %23, %20 : vector<32x256xf32>
    %25 = arith.select %22, %20, %24 : vector<32x256xi1>, vector<32x256xf32>
    %26 = arith.truncf %25 : vector<32x256xf32> to vector<32x256xbf16>
    %c0_10 = arith.constant 0 : index
    %c0_11 = arith.constant 0 : index
    %27 = vector.load %arg3[%c0_10, %c0_11] : memref<32x256xbf16, #tpu.memory_space<vmem>>, vector<32x256xbf16>
    tpu.vector_store %arg3[%c0_10, %c0_11], %26 {strides = array<i32>} : memref<32x256xbf16, #tpu.memory_space<vmem>>, vector<32x256xbf16>,
    return
  }
  func.func @transform_0(%arg0: i32) -> (i32, i32) {
    %c0_i32 = arith.constant 0 : i32
    %c0_i32_0 = arith.constant 0 : i32
    %c0_i32_1 = arith.constant 0 : i32
    return %c0_i32, %c0_i32_0 : i32, i32
  }
  func.func @transform_1(%arg0: i32) -> (i32, i32) {
    %c0_i32 = arith.constant 0 : i32
    %c0_i32_0 = arith.constant 0 : i32
    %c0_i32_1 = arith.constant 0 : i32
    return %c0_i32, %c0_i32_0 : i32, i32
  }
  func.func @transform_2(%arg0: i32) -> (i32, i32) {
    %c0_i32 = arith.constant 0 : i32
    %c0_i32_0 = arith.constant 0 : i32
    %c0_i32_1 = arith.constant 0 : i32
    return %c0_i32, %c0_i32_0 : i32, i32
  }
}

module attributes {stable_mosaic.version = 11 : i64} {
  func.func @head_sigmoid_kernel(%arg0: i32, %arg1: memref<2x4096xbf16, #tpu.memory_space<vmem>>, %arg2: memref<1x4096xbf16, #tpu.memory_space<vmem>>, %arg3: memref<2x1xf32, #tpu.memory_space<vmem>>) attributes {dimension_semantics = [#tpu.dimension_semantics<arbitrary>], iteration_bounds = array<i64: 1>, scalar_prefetch = 0 : i64, scratch_operands = 0 : i64, tpu.core_type = #tpu.core_type<tc>, window_params = [{pipeline_mode = #tpu.pipeline_mode<synchronous>, transform_indices = @transform_0, window_bounds = array<i64: 2, 4096>}, {pipeline_mode = #tpu.pipeline_mode<synchronous>, transform_indices = @transform_1, window_bounds = array<i64: 1, 4096>}, {pipeline_mode = #tpu.pipeline_mode<synchronous>, transform_indices = @transform_2, window_bounds = array<i64: 2, 1>}]} {
    %c0 = arith.constant 0 : index
    %c0_0 = arith.constant 0 : index
    %0 = vector.load %arg1[%c0, %c0_0] : memref<2x4096xbf16, #tpu.memory_space<vmem>>, vector<2x4096xbf16>
    %1 = arith.extf %0 : vector<2x4096xbf16> to vector<2x4096xf32>
    %c0_1 = arith.constant 0 : index
    %c0_2 = arith.constant 0 : index
    %2 = vector.load %arg2[%c0_1, %c0_2] : memref<1x4096xbf16, #tpu.memory_space<vmem>>, vector<1x4096xbf16>
    %3 = arith.extf %2 : vector<1x4096xbf16> to vector<1x4096xf32>
    %4 = vector.broadcast %3 : vector<1x4096xf32> to vector<2x4096xf32>
    %5 = arith.mulf %1, %4 : vector<2x4096xf32>
    %cst = arith.constant dense<0.000000e+00> : vector<2xf32>
    %6 = vector.multi_reduction <add>, %5, %cst [1] : vector<2x4096xf32> to vector<2xf32>
    %7 = vector.shape_cast %6 : vector<2xf32> to vector<2x1xf32>
    %cst_3 = arith.constant 0.000000e+00 : f32
    %8 = vector.broadcast %cst_3 : f32 to vector<2x1xf32>
    %9 = arith.subf %8, %7 : vector<2x1xf32>
    %10 = math.exp %9 : vector<2x1xf32>
    %cst_4 = arith.constant 1.000000e+00 : f32
    %11 = vector.broadcast %cst_4 : f32 to vector<2x1xf32>
    %12 = arith.addf %11, %10 : vector<2x1xf32>
    %cst_5 = arith.constant 1.000000e+00 : f32
    %13 = vector.broadcast %cst_5 : f32 to vector<2x1xf32>
    %14 = arith.divf %13, %12 : vector<2x1xf32>
    %c0_6 = arith.constant 0 : index
    %c0_7 = arith.constant 0 : index
    %15 = vector.load %arg3[%c0_6, %c0_7] : memref<2x1xf32, #tpu.memory_space<vmem>>, vector<2x1xf32>
    tpu.vector_store %arg3[%c0_6, %c0_7], %14 {strides = array<i32>} : memref<2x1xf32, #tpu.memory_space<vmem>>, vector<2x1xf32>,
    return
  }
  func.func @transform_0(%arg0: i32) -> (i32, i32) {
    %c0_i32 = arith.constant 0 : i32
    %c0_i32_0 = arith.constant 0 : i32
    %c0_i32_1 = arith.constant 0 : i32
    return %c0_i32, %c0_i32_0 : i32, i32
  }
  func.func @transform_1(%arg0: i32) -> (i32, i32) {
    %c0_i32 = arith.constant 0 : i32
    %c0_i32_0 = arith.constant 0 : i32
    %c0_i32_1 = arith.constant 0 : i32
    return %c0_i32, %c0_i32_0 : i32, i32
  }
  func.func @transform_2(%arg0: i32) -> (i32, i32) {
    %c0_i32 = arith.constant 0 : i32
    %c0_i32_0 = arith.constant 0 : i32
    %c0_i32_1 = arith.constant 0 : i32
    return %c0_i32, %c0_i32_0 : i32, i32
  }
}

</mosaic_0001>

<bundles_post_ra>
// kernel: discriminador_forward.4
= control target key start
LH: loop header
LB: loop body
LE: loop exit
PB: predicated region body
PF: predicated region fallthrough
CT: control target
= control target key end

     0   :  { %vm260_vm0 = vcmask 392192   ;;  %vm782_vm3 = vcmask 519168   ;;  %s1475_s1 = inlined_call_operand.vmem [shape: bf16[48,64], index: 1, kind: input, shape index: {}]   ;;  %s1476_s0 = inlined_call_operand.vmem [shape: bf16[512,48], index: 0, kind: input, shape index: {}]   ;;  %s1477_s2 = inlined_call_operand.vmem [shape: bf16[512,64], index: 2, kind: output, shape index: {}]  }
   0x1   :  { %v1057_v0 = vld [vmem:[%s1475_s1 + $0x10] sm:$0xff]  ;;  %v1056_v1 = vld [vmem:[%s1475_s1 + $0x8] sm:$0xff]  ;;  %v1055_v2 = vld [vmem:[%s1475_s1] sm:$0xff] }
   0x2   :  { %362 = vmatpush.bf16.msra.mxu0 %v1057_v0  ;;  %1058 = vmatpush.bf16.msra.mxu1 %v1057_v0  ;;  %v1023_v3 = vld [vmem:[%s1476_s0] sm:$0xff]  ;;  %v1024_v7 = vld [vmem:[%s1476_s0 + $0x8] sm:$0xff]  ;;  %v1025_v11 = vld [vmem:[%s1476_s0 + $0x10] sm:$0xff] }
   0x3   :  { %1059 = vmatpush.bf16.msra.mxu2 %v1057_v0  ;;  %1060 = vmatpush.bf16.msra.mxu3 %v1057_v0  ;;  %v1031_v4 = vld [vmem:[%s1476_s0 + $0x40] sm:$0xff]  ;;  %v1032_v8 = vld [vmem:[%s1476_s0 + $0x48] sm:$0xff]  ;;  %v1033_v12 = vld [vmem:[%s1476_s0 + $0x50] sm:$0xff] }
   0x4   :  { %v1039_v5 = vld [vmem:[%s1476_s0 + $0x80] sm:$0xff]  ;;  %v1040_v9 = vld [vmem:[%s1476_s0 + $0x88] sm:$0xff]  ;;  %v1041_v13 = vld [vmem:[%s1476_s0 + $0x90] sm:$0xff] }
   0x5   :  { %v1047_v6 = vld [vmem:[%s1476_s0 + $0xc0] sm:$0xff]  ;;  %v1048_v10 = vld [vmem:[%s1476_s0 + $0xc8] sm:$0xff]  ;;  %v1049_v14 = vld [vmem:[%s1476_s0 + $0xd0] sm:$0xff] }
   0x6   :  { %363 = vmatpush.bf16.msra.mxu0 %v1056_v1  ;;  %1061 = vmatpush.bf16.msra.mxu1 %v1056_v1  ;;  %v1026_v15 = vld [vmem:[%s1476_s0 + $0x18] sm:$0xff]  ;;  %v1027_v19 = vld [vmem:[%s1476_s0 + $0x20] sm:$0xff]  ;;  %v1028_v23 = vld [vmem:[%s1476_s0 + $0x28] sm:$0xff] }
   0x7   :  { %1062 = vmatpush.bf16.msra.mxu2 %v1056_v1  ;;  %1063 = vmatpush.bf16.msra.mxu3 %v1056_v1  ;;  %v1034_v16 = vld [vmem:[%s1476_s0 + $0x58] sm:$0xff]  ;;  %v1035_v20 = vld [vmem:[%s1476_s0 + $0x60] sm:$0xff]  ;;  %v1036_v24 = vld [vmem:[%s1476_s0 + $0x68] sm:$0xff] }
   0x8   :  { %v1042_v17 = vld [vmem:[%s1476_s0 + $0x98] sm:$0xff]  ;;  %v1043_v21 = vld [vmem:[%s1476_s0 + $0xa0] sm:$0xff]  ;;  %v1044_v25 = vld [vmem:[%s1476_s0 + $0xa8] sm:$0xff] }
   0x9   :  { %v1050_v18 = vld [vmem:[%s1476_s0 + $0xd8] sm:$0xff]  ;;  %v1051_v22 = vld [vmem:[%s1476_s0 + $0xe0] sm:$0xff]  ;;  %v1052_v26 = vld [vmem:[%s1476_s0 + $0xe8] sm:$0xff] }
   0xa   :  { %364 = vmatpush.bf16.msra.mxu0 %v1055_v2  ;;  %1064 = vmatpush.bf16.msra.mxu1 %v1055_v2  ;;  %v1029_v27 = vld [vmem:[%s1476_s0 + $0x30] sm:$0xff]  ;;  %v1030_v31 = vld [vmem:[%s1476_s0 + $0x38] sm:$0xff] }
   0xb   :  { %1065 = vmatpush.bf16.msra.mxu2 %v1055_v2  ;;  %1066 = vmatpush.bf16.msra.mxu3 %v1055_v2  ;;  %v1037_v28 = vld [vmem:[%s1476_s0 + $0x70] sm:$0xff]  ;;  %v1038_v32 = vld [vmem:[%s1476_s0 + $0x78] sm:$0xff] }
   0xc   :  { %v1045_v29 = vld [vmem:[%s1476_s0 + $0xb0] sm:$0xff]  ;;  %v1046_v33 = vld [vmem:[%s1476_s0 + $0xb8] sm:$0xff] }
   0xd   :  { %991 = vmatmul.msk.bf16.vlgmr.msra.gmra.mxu0 %vm260_vm0, %v1023_v3  ;;  %999 = vmatmul.msk.bf16.vlgmr.msra.gmra.mxu1 %vm260_vm0, %v1031_v4  ;;  %v1053_v30 = vld [vmem:[%s1476_s0 + $0xf0] sm:$0xff]  ;;  %v1054_v34 = vld [vmem:[%s1476_s0 + $0xf8] sm:$0xff] }
   0xe   :  { %1007 = vmatmul.msk.bf16.vlgmr.msra.gmra.mxu2 %vm260_vm0, %v1039_v5  ;;  %1015 = vmatmul.msk.bf16.vlgmr.msra.gmra.mxu3 %vm260_vm0, %v1047_v6 }
  0x1d   :  { %992 = vmatmul.msk.bf16.gmra.mxu0 %vm260_vm0, %v1024_v7  ;;  %1000 = vmatmul.msk.bf16.gmra.mxu1 %vm260_vm0, %v1032_v8 }
  0x1e   :  { %1008 = vmatmul.msk.bf16.gmra.mxu2 %vm260_vm0, %v1040_v9  ;;  %1016 = vmatmul.msk.bf16.gmra.mxu3 %vm260_vm0, %v1048_v10 }
  0x2d   :  { %993 = vmatmul.msk.bf16.gmra.mxu0 %vm260_vm0, %v1025_v11  ;;  %1001 = vmatmul.msk.bf16.gmra.mxu1 %vm260_vm0, %v1033_v12 }
  0x2e   :  { %1009 = vmatmul.msk.bf16.gmra.mxu2 %vm260_vm0, %v1041_v13  ;;  %1017 = vmatmul.msk.bf16.gmra.mxu3 %vm260_vm0, %v1049_v14 }
  0x3d   :  { %994 = vmatmul.msk.bf16.gmra.mxu0 %vm260_vm0, %v1026_v15  ;;  %1002 = vmatmul.msk.bf16.gmra.mxu1 %vm260_vm0, %v1034_v16 }
  0x3e   :  { %1010 = vmatmul.msk.bf16.gmra.mxu2 %vm260_vm0, %v1042_v17  ;;  %1018 = vmatmul.msk.bf16.gmra.mxu3 %vm260_vm0, %v1050_v18 }
  0x4d   :  { %995 = vmatmul.msk.bf16.gmra.mxu0 %vm260_vm0, %v1027_v19  ;;  %1003 = vmatmul.msk.bf16.gmra.mxu1 %vm260_vm0, %v1035_v20 }
  0x4e   :  { %1011 = vmatmul.msk.bf16.gmra.mxu2 %vm260_vm0, %v1043_v21  ;;  %1019 = vmatmul.msk.bf16.gmra.mxu3 %vm260_vm0, %v1051_v22 }
  0x5d   :  { %996 = vmatmul.msk.bf16.gmra.mxu0 %vm260_vm0, %v1028_v23  ;;  %1004 = vmatmul.msk.bf16.gmra.mxu1 %vm260_vm0, %v1036_v24 }
  0x5e   :  { %1012 = vmatmul.msk.bf16.gmra.mxu2 %vm260_vm0, %v1044_v25  ;;  %1020 = vmatmul.msk.bf16.gmra.mxu3 %vm260_vm0, %v1052_v26 }
  0x6d   :  { %997 = vmatmul.msk.bf16.gmra.mxu0 %vm260_vm0, %v1029_v27  ;;  %1005 = vmatmul.msk.bf16.gmra.mxu1 %vm260_vm0, %v1037_v28 }
  0x6e   :  { %1013 = vmatmul.msk.bf16.gmra.mxu2 %vm260_vm0, %v1045_v29  ;;  %1021 = vmatmul.msk.bf16.gmra.mxu3 %vm260_vm0, %v1053_v30 }
  0x7d   :  { %998 = vmatmul.msk.bf16.gmra.mxu0 %vm260_vm0, %v1030_v31  ;;  %1006 = vmatmul.msk.bf16.gmra.mxu1 %vm260_vm0, %v1038_v32 }
  0x7e   :  { %1014 = vmatmul.msk.bf16.gmra.mxu2 %vm260_vm0, %v1046_v33  ;;  %1022 = vmatmul.msk.bf16.gmra.mxu3 %vm260_vm0, %v1054_v34 }
  0x8a   :  { %v366_v35 = vpop.f32.mrf.mxu0  ;;  %v406_v36 = vpop.f32.mrf.mxu1 }
  0x8b   :  { %vm526_vm1 = vcmp.gt.f32.partialorder %v366_v35, 0.0  ;;  %v590_v37 = vmul.f32 0.2, %v366_v35  ;;  %vm542_vm2 = vcmp.gt.f32.partialorder %v406_v36, 0.0  ;;  %v606_v38 = vmul.f32 0.2, %v406_v36 }
  0x8d   :  { %v654_v39 = vsel %vm526_vm1, %v366_v35, %v590_v37  ;;  %v670_v40 = vsel %vm542_vm2, %v406_v36, %v606_v38 }
  0x8e   :  { %v718_v41 = vpack.c.bf16 %v654_v39, %v654_v39  ;;  %v734_v42 = vpack.c.bf16 %v670_v40, %v670_v40 }
  0x90   :  { %783 = vst.msk [vmem:[%s1477_s2] sm:$0xf] %vm782_vm3, %v718_v41 }
  0x91   :  { %799 = vst.msk [vmem:[%s1477_s2 + $0x40] sm:$0xf] %vm782_vm3, %v734_v42  ;;  %v446_v43 = vpop.f32.mrf.mxu2  ;;  %v486_v44 = vpop.f32.mrf.mxu3 }
  0x92   :  { %vm558_vm4 = vcmp.gt.f32.partialorder %v446_v43, 0.0  ;;  %v622_v45 = vmul.f32 0.2, %v446_v43  ;;  %vm574_vm5 = vcmp.gt.f32.partialorder %v486_v44, 0.0  ;;  %v638_v46 = vmul.f32 0.2, %v486_v44  ;;  %v368_v47 = vpop.f32.mrf.mxu0  ;;  %v408_v48 = vpop.f32.mrf.mxu1 }
  0x93   :  { %vm527_vm6 = vcmp.gt.f32.partialorder %v368_v47, 0.0  ;;  %v591_v49 = vmul.f32 0.2, %v368_v47  ;;  %vm543_vm7 = vcmp.gt.f32.partialorder %v408_v48, 0.0  ;;  %v607_v50 = vmul.f32 0.2, %v408_v48 }
  0x94   :  { %v686_v51 = vsel %vm558_vm4, %v446_v43, %v622_v45  ;;  %v702_v52 = vsel %vm574_vm5, %v486_v44, %v638_v46 }
  0x95   :  { %v750_v53 = vpack.c.bf16 %v686_v51, %v686_v51  ;;  %v766_v54 = vpack.c.bf16 %v702_v52, %v702_v52  ;;  %v655_v55 = vsel %vm527_vm6, %v368_v47, %v591_v49  ;;  %v671_v56 = vsel %vm543_vm7, %v408_v48, %v607_v50 }
  0x96   :  { %v719_v57 = vpack.c.bf16 %v655_v55, %v655_v55  ;;  %v735_v58 = vpack.c.bf16 %v671_v56, %v671_v56 }
  0x97   :  { %815 = vst.msk [vmem:[%s1477_s2 + $0x80] sm:$0xf] %vm782_vm3, %v750_v53 }
  0x98   :  { %831 = vst.msk [vmem:[%s1477_s2 + $0xc0] sm:$0xf] %vm782_vm3, %v766_v54 }
  0x99   :  { %784 = vst.msk [vmem:[%s1477_s2 + $0x4] sm:$0xf] %vm782_vm3, %v719_v57  ;;  %v448_v59 = vpop.f32.mrf.mxu2  ;;  %v488_v60 = vpop.f32.mrf.mxu3 }
  0x9a   :  { %800 = vst.msk [vmem:[%s1477_s2 + $0x44] sm:$0xf] %vm782_vm3, %v735_v58  ;;  %vm559_vm8 = vcmp.gt.f32.partialorder %v448_v59, 0.0  ;;  %v623_v61 = vmul.f32 0.2, %v448_v59  ;;  %vm575_vm9 = vcmp.gt.f32.partialorder %v488_v60, 0.0  ;;  %v371_v62 = vpop.f32.mrf.mxu0  ;;  %v411_v63 = vpop.f32.mrf.mxu1 }
  0x9b   :  { %v639_v0 = vmul.f32 0.2, %v488_v60  ;;  %vm528_vm10 = vcmp.gt.f32.partialorder %v371_v62, 0.0  ;;  %v592_v1 = vmul.f32 0.2, %v371_v62  ;;  %vm544_vm11 = vcmp.gt.f32.partialorder %v411_v63, 0.0 }
  0x9c   :  { %v687_v2 = vsel %vm559_vm8, %v448_v59, %v623_v61  ;;  %v608_v3 = vmul.f32 0.2, %v411_v63 }
  0x9d   :  { %v751_v4 = vpack.c.bf16 %v687_v2, %v687_v2  ;;  %v703_v5 = vsel %vm575_vm9, %v488_v60, %v639_v0  ;;  %v656_v6 = vsel %vm528_vm10, %v371_v62, %v592_v1 }
  0x9e   :  { %v767_v7 = vpack.c.bf16 %v703_v5, %v703_v5  ;;  %v720_v8 = vpack.c.bf16 %v656_v6, %v656_v6  ;;  %v672_v9 = vsel %vm544_vm11, %v411_v63, %v608_v3 }
  0x9f   :  { %816 = vst.msk [vmem:[%s1477_s2 + $0x84] sm:$0xf] %vm782_vm3, %v751_v4  ;;  %v736_v10 = vpack.c.bf16 %v672_v9, %v672_v9 }
  0xa0   :  { %832 = vst.msk [vmem:[%s1477_s2 + $0xc4] sm:$0xf] %vm782_vm3, %v767_v7 }
  0xa1   :  { %785 = vst.msk [vmem:[%s1477_s2 + $0x8] sm:$0xf] %vm782_vm3, %v720_v8  ;;  %v451_v11 = vpop.f32.mrf.mxu2  ;;  %v491_v12 = vpop.f32.mrf.mxu3 }
  0xa2   :  { %801 = vst.msk [vmem:[%s1477_s2 + $0x48] sm:$0xf] %vm782_vm3, %v736_v10  ;;  %vm560_vm12 = vcmp.gt.f32.partialorder %v451_v11, 0.0  ;;  %v624_v13 = vmul.f32 0.2, %v451_v11  ;;  %vm576_vm13 = vcmp.gt.f32.partialorder %v491_v12, 0.0  ;;  %v373_v14 = vpop.f32.mrf.mxu0  ;;  %v413_v15 = vpop.f32.mrf.mxu1 }
  0xa3   :  { %v640_v16 = vmul.f32 0.2, %v491_v12  ;;  %vm529_vm14 = vcmp.gt.f32.partialorder %v373_v14, 0.0  ;;  %v593_v17 = vmul.f32 0.2, %v373_v14  ;;  %vm545_vm15 = vcmp.gt.f32.partialorder %v413_v15, 0.0 }
  0xa4   :  { %v688_v18 = vsel %vm560_vm12, %v451_v11, %v624_v13  ;;  %v609_v19 = vmul.f32 0.2, %v413_v15 }
  0xa5   :  { %v752_v20 = vpack.c.bf16 %v688_v18, %v688_v18  ;;  %v704_v21 = vsel %vm576_vm13, %v491_v12, %v640_v16  ;;  %v657_v22 = vsel %vm529_vm14, %v373_v14, %v593_v17 }
  0xa6   :  { %v768_v23 = vpack.c.bf16 %v704_v21, %v704_v21  ;;  %v721_v24 = vpack.c.bf16 %v657_v22, %v657_v22  ;;  %v673_v25 = vsel %vm545_vm15, %v413_v15, %v609_v19 }
  0xa7   :  { %817 = vst.msk [vmem:[%s1477_s2 + $0x88] sm:$0xf] %vm782_vm3, %v752_v20  ;;  %v737_v26 = vpack.c.bf16 %v673_v25, %v673_v25 }
  0xa8   :  { %833 = vst.msk [vmem:[%s1477_s2 + $0xc8] sm:$0xf] %vm782_vm3, %v768_v23 }
  0xa9   :  { %786 = vst.msk [vmem:[%s1477_s2 + $0xc] sm:$0xf] %vm782_vm3, %v721_v24  ;;  %v453_v27 = vpop.f32.mrf.mxu2  ;;  %v493_v28 = vpop.f32.mrf.mxu3 }
  0xaa   :  { %802 = vst.msk [vmem:[%s1477_s2 + $0x4c] sm:$0xf] %vm782_vm3, %v737_v26  ;;  %vm561_vm0 = vcmp.gt.f32.partialorder %v453_v27, 0.0  ;;  %v625_v29 = vmul.f32 0.2, %v453_v27  ;;  %vm577_vm1 = vcmp.gt.f32.partialorder %v493_v28, 0.0  ;;  %v376_v30 = vpop.f32.mrf.mxu0  ;;  %v416_v31 = vpop.f32.mrf.mxu1 }
  0xab   :  { %v641_v32 = vmul.f32 0.2, %v493_v28  ;;  %vm530_vm2 = vcmp.gt.f32.partialorder %v376_v30, 0.0  ;;  %v594_v33 = vmul.f32 0.2, %v376_v30  ;;  %vm546_vm4 = vcmp.gt.f32.partialorder %v416_v31, 0.0 }
  0xac   :  { %v689_v34 = vsel %vm561_vm0, %v453_v27, %v625_v29  ;;  %v610_v35 = vmul.f32 0.2, %v416_v31 }
  0xad   :  { %v753_v36 = vpack.c.bf16 %v689_v34, %v689_v34  ;;  %v705_v37 = vsel %vm577_vm1, %v493_v28, %v641_v32  ;;  %v658_v38 = vsel %vm530_vm2, %v376_v30, %v594_v33 }
  0xae   :  { %v769_v39 = vpack.c.bf16 %v705_v37, %v705_v37  ;;  %v722_v40 = vpack.c.bf16 %v658_v38, %v658_v38  ;;  %v674_v41 = vsel %vm546_vm4, %v416_v31, %v610_v35 }
  0xaf   :  { %818 = vst.msk [vmem:[%s1477_s2 + $0x8c] sm:$0xf] %vm782_vm3, %v753_v36  ;;  %v738_v42 = vpack.c.bf16 %v674_v41, %v674_v41 }
  0xb0   :  { %834 = vst.msk [vmem:[%s1477_s2 + $0xcc] sm:$0xf] %vm782_vm3, %v769_v39 }
  0xb1   :  { %787 = vst.msk [vmem:[%s1477_s2 + $0x10] sm:$0xf] %vm782_vm3, %v722_v40  ;;  %v456_v43 = vpop.f32.mrf.mxu2  ;;  %v496_v44 = vpop.f32.mrf.mxu3 }
  0xb2   :  { %803 = vst.msk [vmem:[%s1477_s2 + $0x50] sm:$0xf] %vm782_vm3, %v738_v42  ;;  %vm562_vm5 = vcmp.gt.f32.partialorder %v456_v43, 0.0  ;;  %v626_v45 = vmul.f32 0.2, %v456_v43  ;;  %vm578_vm6 = vcmp.gt.f32.partialorder %v496_v44, 0.0  ;;  %v378_v46 = vpop.f32.mrf.mxu0  ;;  %v418_v47 = vpop.f32.mrf.mxu1 }
  0xb3   :  { %v642_v48 = vmul.f32 0.2, %v496_v44  ;;  %vm531_vm7 = vcmp.gt.f32.partialorder %v378_v46, 0.0  ;;  %v595_v49 = vmul.f32 0.2, %v378_v46  ;;  %vm547_vm8 = vcmp.gt.f32.partialorder %v418_v47, 0.0 }
  0xb4   :  { %v690_v50 = vsel %vm562_vm5, %v456_v43, %v626_v45  ;;  %v611_v51 = vmul.f32 0.2, %v418_v47 }
  0xb5   :  { %v754_v52 = vpack.c.bf16 %v690_v50, %v690_v50  ;;  %v706_v53 = vsel %vm578_vm6, %v496_v44, %v642_v48  ;;  %v659_v54 = vsel %vm531_vm7, %v378_v46, %v595_v49 }
  0xb6   :  { %v770_v55 = vpack.c.bf16 %v706_v53, %v706_v53  ;;  %v723_v56 = vpack.c.bf16 %v659_v54, %v659_v54  ;;  %v675_v57 = vsel %vm547_vm8, %v418_v47, %v611_v51 }
  0xb7   :  { %819 = vst.msk [vmem:[%s1477_s2 + $0x90] sm:$0xf] %vm782_vm3, %v754_v52  ;;  %v739_v58 = vpack.c.bf16 %v675_v57, %v675_v57 }
  0xb8   :  { %835 = vst.msk [vmem:[%s1477_s2 + $0xd0] sm:$0xf] %vm782_vm3, %v770_v55 }
  0xb9   :  { %788 = vst.msk [vmem:[%s1477_s2 + $0x14] sm:$0xf] %vm782_vm3, %v723_v56  ;;  %v458_v59 = vpop.f32.mrf.mxu2  ;;  %v498_v60 = vpop.f32.mrf.mxu3 }
  0xba   :  { %804 = vst.msk [vmem:[%s1477_s2 + $0x54] sm:$0xf] %vm782_vm3, %v739_v58  ;;  %vm563_vm9 = vcmp.gt.f32.partialorder %v458_v59, 0.0  ;;  %v627_v61 = vmul.f32 0.2, %v458_v59  ;;  %vm579_vm10 = vcmp.gt.f32.partialorder %v498_v60, 0.0  ;;  %v381_v62 = vpop.f32.mrf.mxu0  ;;  %v421_v63 = vpop.f32.mrf.mxu1 }
  0xbb   :  { %v643_v0 = vmul.f32 0.2, %v498_v60  ;;  %vm532_vm11 = vcmp.gt.f32.partialorder %v381_v62, 0.0  ;;  %v596_v1 = vmul.f32 0.2, %v381_v62  ;;  %vm548_vm12 = vcmp.gt.f32.partialorder %v421_v63, 0.0 }
  0xbc   :  { %v691_v2 = vsel %vm563_vm9, %v458_v59, %v627_v61  ;;  %v612_v3 = vmul.f32 0.2, %v421_v63 }
  0xbd   :  { %v755_v4 = vpack.c.bf16 %v691_v2, %v691_v2  ;;  %v707_v5 = vsel %vm579_vm10, %v498_v60, %v643_v0  ;;  %v660_v6 = vsel %vm532_vm11, %v381_v62, %v596_v1 }
  0xbe   :  { %v771_v7 = vpack.c.bf16 %v707_v5, %v707_v5  ;;  %v724_v8 = vpack.c.bf16 %v660_v6, %v660_v6  ;;  %v676_v9 = vsel %vm548_vm12, %v421_v63, %v612_v3 }
  0xbf   :  { %820 = vst.msk [vmem:[%s1477_s2 + $0x94] sm:$0xf] %vm782_vm3, %v755_v4  ;;  %v740_v10 = vpack.c.bf16 %v676_v9, %v676_v9 }
  0xc0   :  { %836 = vst.msk [vmem:[%s1477_s2 + $0xd4] sm:$0xf] %vm782_vm3, %v771_v7 }
  0xc1   :  { %789 = vst.msk [vmem:[%s1477_s2 + $0x18] sm:$0xf] %vm782_vm3, %v724_v8  ;;  %v461_v11 = vpop.f32.mrf.mxu2  ;;  %v501_v12 = vpop.f32.mrf.mxu3 }
  0xc2   :  { %805 = vst.msk [vmem:[%s1477_s2 + $0x58] sm:$0xf] %vm782_vm3, %v740_v10  ;;  %vm564_vm13 = vcmp.gt.f32.partialorder %v461_v11, 0.0  ;;  %v628_v13 = vmul.f32 0.2, %v461_v11  ;;  %vm580_vm14 = vcmp.gt.f32.partialorder %v501_v12, 0.0  ;;  %v383_v14 = vpop.f32.mrf.mxu0  ;;  %v423_v15 = vpop.f32.mrf.mxu1 }
  0xc3   :  { %v644_v16 = vmul.f32 0.2, %v501_v12  ;;  %vm533_vm15 = vcmp.gt.f32.partialorder %v383_v14, 0.0  ;;  %v597_v17 = vmul.f32 0.2, %v383_v14  ;;  %vm549_vm0 = vcmp.gt.f32.partialorder %v423_v15, 0.0 }
  0xc4   :  { %v692_v18 = vsel %vm564_vm13, %v461_v11, %v628_v13  ;;  %v613_v19 = vmul.f32 0.2, %v423_v15 }
  0xc5   :  { %v756_v20 = vpack.c.bf16 %v692_v18, %v692_v18  ;;  %v708_v21 = vsel %vm580_vm14, %v501_v12, %v644_v16  ;;  %v661_v22 = vsel %vm533_vm15, %v383_v14, %v597_v17 }
  0xc6   :  { %v772_v23 = vpack.c.bf16 %v708_v21, %v708_v21  ;;  %v725_v24 = vpack.c.bf16 %v661_v22, %v661_v22  ;;  %v677_v25 = vsel %vm549_vm0, %v423_v15, %v613_v19 }
  0xc7   :  { %821 = vst.msk [vmem:[%s1477_s2 + $0x98] sm:$0xf] %vm782_vm3, %v756_v20  ;;  %v741_v26 = vpack.c.bf16 %v677_v25, %v677_v25 }
  0xc8   :  { %837 = vst.msk [vmem:[%s1477_s2 + $0xd8] sm:$0xf] %vm782_vm3, %v772_v23 }
  0xc9   :  { %790 = vst.msk [vmem:[%s1477_s2 + $0x1c] sm:$0xf] %vm782_vm3, %v725_v24  ;;  %v463_v27 = vpop.f32.mrf.mxu2  ;;  %v503_v28 = vpop.f32.mrf.mxu3 }
  0xca   :  { %806 = vst.msk [vmem:[%s1477_s2 + $0x5c] sm:$0xf] %vm782_vm3, %v741_v26  ;;  %vm565_vm1 = vcmp.gt.f32.partialorder %v463_v27, 0.0  ;;  %v629_v29 = vmul.f32 0.2, %v463_v27  ;;  %vm581_vm2 = vcmp.gt.f32.partialorder %v503_v28, 0.0  ;;  %v386_v30 = vpop.f32.mrf.mxu0  ;;  %v426_v31 = vpop.f32.mrf.mxu1 }
  0xcb   :  { %v645_v32 = vmul.f32 0.2, %v503_v28  ;;  %vm534_vm4 = vcmp.gt.f32.partialorder %v386_v30, 0.0  ;;  %v598_v33 = vmul.f32 0.2, %v386_v30  ;;  %vm550_vm5 = vcmp.gt.f32.partialorder %v426_v31, 0.0 }
  0xcc   :  { %v693_v34 = vsel %vm565_vm1, %v463_v27, %v629_v29  ;;  %v614_v35 = vmul.f32 0.2, %v426_v31 }
  0xcd   :  { %v757_v36 = vpack.c.bf16 %v693_v34, %v693_v34  ;;  %v709_v37 = vsel %vm581_vm2, %v503_v28, %v645_v32  ;;  %v662_v38 = vsel %vm534_vm4, %v386_v30, %v598_v33 }
  0xce   :  { %v773_v39 = vpack.c.bf16 %v709_v37, %v709_v37  ;;  %v726_v40 = vpack.c.bf16 %v662_v38, %v662_v38  ;;  %v678_v41 = vsel %vm550_vm5, %v426_v31, %v614_v35 }
  0xcf   :  { %822 = vst.msk [vmem:[%s1477_s2 + $0x9c] sm:$0xf] %vm782_vm3, %v757_v36  ;;  %v742_v42 = vpack.c.bf16 %v678_v41, %v678_v41 }
  0xd0   :  { %838 = vst.msk [vmem:[%s1477_s2 + $0xdc] sm:$0xf] %vm782_vm3, %v773_v39 }
  0xd1   :  { %791 = vst.msk [vmem:[%s1477_s2 + $0x20] sm:$0xf] %vm782_vm3, %v726_v40  ;;  %v466_v43 = vpop.f32.mrf.mxu2  ;;  %v506_v44 = vpop.f32.mrf.mxu3 }
  0xd2   :  { %807 = vst.msk [vmem:[%s1477_s2 + $0x60] sm:$0xf] %vm782_vm3, %v742_v42  ;;  %vm566_vm6 = vcmp.gt.f32.partialorder %v466_v43, 0.0  ;;  %v630_v45 = vmul.f32 0.2, %v466_v43  ;;  %vm582_vm7 = vcmp.gt.f32.partialorder %v506_v44, 0.0  ;;  %v388_v46 = vpop.f32.mrf.mxu0  ;;  %v428_v47 = vpop.f32.mrf.mxu1 }
  0xd3   :  { %v646_v48 = vmul.f32 0.2, %v506_v44  ;;  %vm535_vm8 = vcmp.gt.f32.partialorder %v388_v46, 0.0  ;;  %v599_v49 = vmul.f32 0.2, %v388_v46  ;;  %vm551_vm9 = vcmp.gt.f32.partialorder %v428_v47, 0.0 }
  0xd4   :  { %v694_v50 = vsel %vm566_vm6, %v466_v43, %v630_v45  ;;  %v615_v51 = vmul.f32 0.2, %v428_v47 }
  0xd5   :  { %v758_v52 = vpack.c.bf16 %v694_v50, %v694_v50  ;;  %v710_v53 = vsel %vm582_vm7, %v506_v44, %v646_v48  ;;  %v663_v54 = vsel %vm535_vm8, %v388_v46, %v599_v49 }
  0xd6   :  { %v774_v55 = vpack.c.bf16 %v710_v53, %v710_v53  ;;  %v727_v56 = vpack.c.bf16 %v663_v54, %v663_v54  ;;  %v679_v57 = vsel %vm551_vm9, %v428_v47, %v615_v51 }
  0xd7   :  { %823 = vst.msk [vmem:[%s1477_s2 + $0xa0] sm:$0xf] %vm782_vm3, %v758_v52  ;;  %v743_v58 = vpack.c.bf16 %v679_v57, %v679_v57 }
  0xd8   :  { %839 = vst.msk [vmem:[%s1477_s2 + $0xe0] sm:$0xf] %vm782_vm3, %v774_v55 }
  0xd9   :  { %792 = vst.msk [vmem:[%s1477_s2 + $0x24] sm:$0xf] %vm782_vm3, %v727_v56  ;;  %v468_v59 = vpop.f32.mrf.mxu2  ;;  %v508_v60 = vpop.f32.mrf.mxu3 }
  0xda   :  { %808 = vst.msk [vmem:[%s1477_s2 + $0x64] sm:$0xf] %vm782_vm3, %v743_v58  ;;  %vm567_vm10 = vcmp.gt.f32.partialorder %v468_v59, 0.0  ;;  %v631_v61 = vmul.f32 0.2, %v468_v59  ;;  %vm583_vm11 = vcmp.gt.f32.partialorder %v508_v60, 0.0  ;;  %v391_v62 = vpop.f32.mrf.mxu0  ;;  %v431_v63 = vpop.f32.mrf.mxu1 }
  0xdb   :  { %v647_v0 = vmul.f32 0.2, %v508_v60  ;;  %vm536_vm12 = vcmp.gt.f32.partialorder %v391_v62, 0.0  ;;  %v600_v1 = vmul.f32 0.2, %v391_v62  ;;  %vm552_vm13 = vcmp.gt.f32.partialorder %v431_v63, 0.0 }
  0xdc   :  { %v695_v2 = vsel %vm567_vm10, %v468_v59, %v631_v61  ;;  %v616_v3 = vmul.f32 0.2, %v431_v63 }
  0xdd   :  { %v759_v4 = vpack.c.bf16 %v695_v2, %v695_v2  ;;  %v711_v5 = vsel %vm583_vm11, %v508_v60, %v647_v0  ;;  %v664_v6 = vsel %vm536_vm12, %v391_v62, %v600_v1 }
  0xde   :  { %v775_v7 = vpack.c.bf16 %v711_v5, %v711_v5  ;;  %v728_v8 = vpack.c.bf16 %v664_v6, %v664_v6  ;;  %v680_v9 = vsel %vm552_vm13, %v431_v63, %v616_v3 }
  0xdf   :  { %824 = vst.msk [vmem:[%s1477_s2 + $0xa4] sm:$0xf] %vm782_vm3, %v759_v4  ;;  %v744_v10 = vpack.c.bf16 %v680_v9, %v680_v9 }
  0xe0   :  { %840 = vst.msk [vmem:[%s1477_s2 + $0xe4] sm:$0xf] %vm782_vm3, %v775_v7 }
  0xe1   :  { %793 = vst.msk [vmem:[%s1477_s2 + $0x28] sm:$0xf] %vm782_vm3, %v728_v8  ;;  %v471_v11 = vpop.f32.mrf.mxu2  ;;  %v511_v12 = vpop.f32.mrf.mxu3 }
  0xe2   :  { %809 = vst.msk [vmem:[%s1477_s2 + $0x68] sm:$0xf] %vm782_vm3, %v744_v10  ;;  %vm568_vm14 = vcmp.gt.f32.partialorder %v471_v11, 0.0  ;;  %v632_v13 = vmul.f32 0.2, %v471_v11  ;;  %vm584_vm15 = vcmp.gt.f32.partialorder %v511_v12, 0.0  ;;  %v393_v14 = vpop.f32.mrf.mxu0  ;;  %v433_v15 = vpop.f32.mrf.mxu1 }
  0xe3   :  { %v648_v16 = vmul.f32 0.2, %v511_v12  ;;  %vm537_vm0 = vcmp.gt.f32.partialorder %v393_v14, 0.0  ;;  %v601_v17 = vmul.f32 0.2, %v393_v14  ;;  %vm553_vm1 = vcmp.gt.f32.partialorder %v433_v15, 0.0 }
  0xe4   :  { %v696_v18 = vsel %vm568_vm14, %v471_v11, %v632_v13  ;;  %v617_v19 = vmul.f32 0.2, %v433_v15 }
  0xe5   :  { %v760_v20 = vpack.c.bf16 %v696_v18, %v696_v18  ;;  %v712_v21 = vsel %vm584_vm15, %v511_v12, %v648_v16  ;;  %v665_v22 = vsel %vm537_vm0, %v393_v14, %v601_v17 }
  0xe6   :  { %v776_v23 = vpack.c.bf16 %v712_v21, %v712_v21  ;;  %v729_v24 = vpack.c.bf16 %v665_v22, %v665_v22  ;;  %v681_v25 = vsel %vm553_vm1, %v433_v15, %v617_v19 }
  0xe7   :  { %825 = vst.msk [vmem:[%s1477_s2 + $0xa8] sm:$0xf] %vm782_vm3, %v760_v20  ;;  %v745_v26 = vpack.c.bf16 %v681_v25, %v681_v25 }
  0xe8   :  { %841 = vst.msk [vmem:[%s1477_s2 + $0xe8] sm:$0xf] %vm782_vm3, %v776_v23 }
  0xe9   :  { %794 = vst.msk [vmem:[%s1477_s2 + $0x2c] sm:$0xf] %vm782_vm3, %v729_v24  ;;  %v473_v27 = vpop.f32.mrf.mxu2  ;;  %v513_v28 = vpop.f32.mrf.mxu3 }
  0xea   :  { %810 = vst.msk [vmem:[%s1477_s2 + $0x6c] sm:$0xf] %vm782_vm3, %v745_v26  ;;  %vm569_vm2 = vcmp.gt.f32.partialorder %v473_v27, 0.0  ;;  %v633_v29 = vmul.f32 0.2, %v473_v27  ;;  %vm585_vm4 = vcmp.gt.f32.partialorder %v513_v28, 0.0  ;;  %v396_v30 = vpop.f32.mrf.mxu0  ;;  %v436_v31 = vpop.f32.mrf.mxu1 }
  0xeb   :  { %v649_v32 = vmul.f32 0.2, %v513_v28  ;;  %vm538_vm5 = vcmp.gt.f32.partialorder %v396_v30, 0.0  ;;  %v602_v33 = vmul.f32 0.2, %v396_v30  ;;  %vm554_vm6 = vcmp.gt.f32.partialorder %v436_v31, 0.0 }
  0xec   :  { %v697_v34 = vsel %vm569_vm2, %v473_v27, %v633_v29  ;;  %v618_v35 = vmul.f32 0.2, %v436_v31 }
  0xed   :  { %v761_v36 = vpack.c.bf16 %v697_v34, %v697_v34  ;;  %v713_v37 = vsel %vm585_vm4, %v513_v28, %v649_v32  ;;  %v666_v38 = vsel %vm538_vm5, %v396_v30, %v602_v33 }
  0xee   :  { %v777_v39 = vpack.c.bf16 %v713_v37, %v713_v37  ;;  %v730_v40 = vpack.c.bf16 %v666_v38, %v666_v38  ;;  %v682_v41 = vsel %vm554_vm6, %v436_v31, %v618_v35 }
  0xef   :  { %826 = vst.msk [vmem:[%s1477_s2 + $0xac] sm:$0xf] %vm782_vm3, %v761_v36  ;;  %v746_v42 = vpack.c.bf16 %v682_v41, %v682_v41 }
  0xf0   :  { %842 = vst.msk [vmem:[%s1477_s2 + $0xec] sm:$0xf] %vm782_vm3, %v777_v39 }
  0xf1   :  { %795 = vst.msk [vmem:[%s1477_s2 + $0x30] sm:$0xf] %vm782_vm3, %v730_v40  ;;  %v476_v43 = vpop.f32.mrf.mxu2  ;;  %v516_v44 = vpop.f32.mrf.mxu3 }
  0xf2   :  { %811 = vst.msk [vmem:[%s1477_s2 + $0x70] sm:$0xf] %vm782_vm3, %v746_v42  ;;  %vm570_vm7 = vcmp.gt.f32.partialorder %v476_v43, 0.0  ;;  %v634_v45 = vmul.f32 0.2, %v476_v43  ;;  %vm586_vm8 = vcmp.gt.f32.partialorder %v516_v44, 0.0  ;;  %v398_v46 = vpop.f32.mrf.mxu0  ;;  %v438_v47 = vpop.f32.mrf.mxu1 }
  0xf3   :  { %v650_v48 = vmul.f32 0.2, %v516_v44  ;;  %vm539_vm9 = vcmp.gt.f32.partialorder %v398_v46, 0.0  ;;  %v603_v49 = vmul.f32 0.2, %v398_v46  ;;  %vm555_vm10 = vcmp.gt.f32.partialorder %v438_v47, 0.0 }
  0xf4   :  { %v698_v50 = vsel %vm570_vm7, %v476_v43, %v634_v45  ;;  %v619_v51 = vmul.f32 0.2, %v438_v47 }
  0xf5   :  { %v762_v52 = vpack.c.bf16 %v698_v50, %v698_v50  ;;  %v714_v53 = vsel %vm586_vm8, %v516_v44, %v650_v48  ;;  %v667_v54 = vsel %vm539_vm9, %v398_v46, %v603_v49 }
  0xf6   :  { %v778_v55 = vpack.c.bf16 %v714_v53, %v714_v53  ;;  %v731_v56 = vpack.c.bf16 %v667_v54, %v667_v54  ;;  %v683_v57 = vsel %vm555_vm10, %v438_v47, %v619_v51 }
  0xf7   :  { %827 = vst.msk [vmem:[%s1477_s2 + $0xb0] sm:$0xf] %vm782_vm3, %v762_v52  ;;  %v747_v58 = vpack.c.bf16 %v683_v57, %v683_v57 }
  0xf8   :  { %843 = vst.msk [vmem:[%s1477_s2 + $0xf0] sm:$0xf] %vm782_vm3, %v778_v55 }
  0xf9   :  { %796 = vst.msk [vmem:[%s1477_s2 + $0x34] sm:$0xf] %vm782_vm3, %v731_v56  ;;  %v478_v59 = vpop.f32.mrf.mxu2  ;;  %v518_v60 = vpop.f32.mrf.mxu3 }
  0xfa   :  { %812 = vst.msk [vmem:[%s1477_s2 + $0x74] sm:$0xf] %vm782_vm3, %v747_v58  ;;  %vm571_vm11 = vcmp.gt.f32.partialorder %v478_v59, 0.0  ;;  %v635_v61 = vmul.f32 0.2, %v478_v59  ;;  %vm587_vm12 = vcmp.gt.f32.partialorder %v518_v60, 0.0  ;;  %v401_v62 = vpop.f32.mrf.mxu0  ;;  %v441_v63 = vpop.f32.mrf.mxu1 }
  0xfb   :  { %v651_v0 = vmul.f32 0.2, %v518_v60  ;;  %vm540_vm13 = vcmp.gt.f32.partialorder %v401_v62, 0.0  ;;  %v604_v1 = vmul.f32 0.2, %v401_v62  ;;  %vm556_vm14 = vcmp.gt.f32.partialorder %v441_v63, 0.0 }
  0xfc   :  { %v699_v2 = vsel %vm571_vm11, %v478_v59, %v635_v61  ;;  %v620_v3 = vmul.f32 0.2, %v441_v63 }
  0xfd   :  { %v763_v4 = vpack.c.bf16 %v699_v2, %v699_v2  ;;  %v715_v5 = vsel %vm587_vm12, %v518_v60, %v651_v0  ;;  %v668_v6 = vsel %vm540_vm13, %v401_v62, %v604_v1 }
  0xfe   :  { %v779_v7 = vpack.c.bf16 %v715_v5, %v715_v5  ;;  %v732_v8 = vpack.c.bf16 %v668_v6, %v668_v6  ;;  %v684_v9 = vsel %vm556_vm14, %v441_v63, %v620_v3 }
  0xff   :  { %828 = vst.msk [vmem:[%s1477_s2 + $0xb4] sm:$0xf] %vm782_vm3, %v763_v4  ;;  %v748_v10 = vpack.c.bf16 %v684_v9, %v684_v9 }
 0x100   :  { %844 = vst.msk [vmem:[%s1477_s2 + $0xf4] sm:$0xf] %vm782_vm3, %v779_v7 }
 0x101   :  { %797 = vst.msk [vmem:[%s1477_s2 + $0x38] sm:$0xf] %vm782_vm3, %v732_v8  ;;  %v481_v11 = vpop.f32.mrf.mxu2  ;;  %v521_v12 = vpop.f32.mrf.mxu3 }
 0x102   :  { %813 = vst.msk [vmem:[%s1477_s2 + $0x78] sm:$0xf] %vm782_vm3, %v748_v10  ;;  %vm572_vm15 = vcmp.gt.f32.partialorder %v481_v11, 0.0  ;;  %v636_v13 = vmul.f32 0.2, %v481_v11  ;;  %vm588_vm0 = vcmp.gt.f32.partialorder %v521_v12, 0.0  ;;  %v403_v14 = vpop.f32.mrf.mxu0  ;;  %v443_v15 = vpop.f32.mrf.mxu1 }
 0x103   :  { %v652_v16 = vmul.f32 0.2, %v521_v12  ;;  %vm541_vm1 = vcmp.gt.f32.partialorder %v403_v14, 0.0  ;;  %v605_v17 = vmul.f32 0.2, %v403_v14  ;;  %vm557_vm2 = vcmp.gt.f32.partialorder %v443_v15, 0.0 }
 0x104   :  { %v700_v18 = vsel %vm572_vm15, %v481_v11, %v636_v13  ;;  %v621_v19 = vmul.f32 0.2, %v443_v15 }
 0x105   :  { %v764_v20 = vpack.c.bf16 %v700_v18, %v700_v18  ;;  %v716_v21 = vsel %vm588_vm0, %v521_v12, %v652_v16  ;;  %v669_v22 = vsel %vm541_vm1, %v403_v14, %v605_v17 }
 0x106   :  { %v780_v23 = vpack.c.bf16 %v716_v21, %v716_v21  ;;  %v733_v24 = vpack.c.bf16 %v669_v22, %v669_v22  ;;  %v685_v25 = vsel %vm557_vm2, %v443_v15, %v621_v19 }
 0x107   :  { %829 = vst.msk [vmem:[%s1477_s2 + $0xb8] sm:$0xf] %vm782_vm3, %v764_v20  ;;  %v749_v26 = vpack.c.bf16 %v685_v25, %v685_v25 }
 0x108   :  { %845 = vst.msk [vmem:[%s1477_s2 + $0xf8] sm:$0xf] %vm782_vm3, %v780_v23 }
 0x109   :  { %798 = vst.msk [vmem:[%s1477_s2 + $0x3c] sm:$0xf] %vm782_vm3, %v733_v24  ;;  %v483_v27 = vpop.f32.mrf.mxu2  ;;  %v523_v28 = vpop.f32.mrf.mxu3 }
 0x10a   :  { %814 = vst.msk [vmem:[%s1477_s2 + $0x7c] sm:$0xf] %vm782_vm3, %v749_v26  ;;  %vm573_vm4 = vcmp.gt.f32.partialorder %v483_v27, 0.0  ;;  %v637_v29 = vmul.f32 0.2, %v483_v27  ;;  %vm589_vm5 = vcmp.gt.f32.partialorder %v523_v28, 0.0 }
 0x10b   :  { %v653_v30 = vmul.f32 0.2, %v523_v28 }
 0x10c   :  { %v701_v31 = vsel %vm573_vm4, %v483_v27, %v637_v29 }
 0x10d   :  { %v765_v32 = vpack.c.bf16 %v701_v31, %v701_v31  ;;  %v717_v33 = vsel %vm589_vm5, %v523_v28, %v653_v30 }
 0x10e   :  { %v781_v34 = vpack.c.bf16 %v717_v33, %v717_v33 }
 0x10f   :  { %830 = vst.msk [vmem:[%s1477_s2 + $0xbc] sm:$0xf] %vm782_vm3, %v765_v32 }
 0x110   :  { %846 = vst.msk [vmem:[%s1477_s2 + $0xfc] sm:$0xf] %vm782_vm3, %v781_v34 }

// kernel: discriminador_forward.5
= control target key start
LH: loop header
LB: loop body
LE: loop exit
PB: predicated region body
PF: predicated region fallthrough
CT: control target
= control target key end

     0   :  { %s2993_s1 = inlined_call_operand.vmem [shape: bf16[1024,128], index: 1, kind: input, shape index: {}]   ;;  %s2994_s0 = inlined_call_operand.vmem [shape: bf16[128,1024], index: 0, kind: input, shape index: {}]   ;;  %s2995_s2 = inlined_call_operand.vmem [shape: bf16[128,128], index: 2, kind: output, shape index: {}]  }
   0x1   :  { %v2076_v0 = vld [vmem:[%s2993_s1 + $0x38] sm:$0xff]  ;;  %v2075_v4 = vld [vmem:[%s2993_s1 + $0x30] sm:$0xff]  ;;  %v2074_v8 = vld [vmem:[%s2993_s1 + $0x28] sm:$0xff] }
   0x2   :  { %v2084_v1 = vld [vmem:[%s2993_s1 + $0x78] sm:$0xff]  ;;  %907 = vmatpush.bf16.msra.mxu0 %v2076_v0  ;;  %v2083_v5 = vld [vmem:[%s2993_s1 + $0x70] sm:$0xff]  ;;  %v2082_v9 = vld [vmem:[%s2993_s1 + $0x68] sm:$0xff] }
   0x3   :  { %v2092_v2 = vld [vmem:[%s2993_s1 + $0xb8] sm:$0xff]  ;;  %956 = vmatpush.bf16.msra.mxu1 %v2084_v1  ;;  %v2091_v6 = vld [vmem:[%s2993_s1 + $0xb0] sm:$0xff]  ;;  %v2090_v10 = vld [vmem:[%s2993_s1 + $0xa8] sm:$0xff] }
   0x4   :  { %v2100_v3 = vld [vmem:[%s2993_s1 + $0xf8] sm:$0xff]  ;;  %1005 = vmatpush.bf16.msra.mxu2 %v2092_v2  ;;  %v2099_v7 = vld [vmem:[%s2993_s1 + $0xf0] sm:$0xff]  ;;  %v2098_v11 = vld [vmem:[%s2993_s1 + $0xe8] sm:$0xff] }
   0x5   :  { %1054 = vmatpush.bf16.msra.mxu3 %v2100_v3  ;;  %v2073_v12 = vld [vmem:[%s2993_s1 + $0x20] sm:$0xff]  ;;  %v2072_v16 = vld [vmem:[%s2993_s1 + $0x18] sm:$0xff]  ;;  %v2071_v20 = vld [vmem:[%s2993_s1 + $0x10] sm:$0xff] }
   0x6   :  { %908 = vmatpush.bf16.msra.mxu0 %v2075_v4  ;;  %v2081_v13 = vld [vmem:[%s2993_s1 + $0x60] sm:$0xff]  ;;  %v2080_v17 = vld [vmem:[%s2993_s1 + $0x58] sm:$0xff]  ;;  %v2079_v21 = vld [vmem:[%s2993_s1 + $0x50] sm:$0xff] }
   0x7   :  { %957 = vmatpush.bf16.msra.mxu1 %v2083_v5  ;;  %v2089_v14 = vld [vmem:[%s2993_s1 + $0xa0] sm:$0xff]  ;;  %v2088_v18 = vld [vmem:[%s2993_s1 + $0x98] sm:$0xff]  ;;  %v2087_v22 = vld [vmem:[%s2993_s1 + $0x90] sm:$0xff] }
   0x8   :  { %1006 = vmatpush.bf16.msra.mxu2 %v2091_v6  ;;  %v2097_v15 = vld [vmem:[%s2993_s1 + $0xe0] sm:$0xff]  ;;  %v2096_v19 = vld [vmem:[%s2993_s1 + $0xd8] sm:$0xff]  ;;  %v2095_v23 = vld [vmem:[%s2993_s1 + $0xd0] sm:$0xff] }
   0x9   :  { %1055 = vmatpush.bf16.msra.mxu3 %v2099_v7  ;;  %v2070_v24 = vld [vmem:[%s2993_s1 + $0x8] sm:$0xff]  ;;  %v2069_v28 = vld [vmem:[%s2993_s1] sm:$0xff]  ;;  %v2124_v40 = vld [vmem:[%s2993_s1 + $0x1b8] sm:$0xff] }
   0xa   :  { %909 = vmatpush.bf16.msra.mxu0 %v2074_v8  ;;  %v2078_v25 = vld [vmem:[%s2993_s1 + $0x48] sm:$0xff]  ;;  %v2077_v29 = vld [vmem:[%s2993_s1 + $0x40] sm:$0xff]  ;;  %v2108_v41 = vld [vmem:[%s2993_s1 + $0x138] sm:$0xff] }
   0xb   :  { %958 = vmatpush.bf16.msra.mxu1 %v2082_v9  ;;  %v2086_v26 = vld [vmem:[%s2993_s1 + $0x88] sm:$0xff]  ;;  %v2085_v30 = vld [vmem:[%s2993_s1 + $0x80] sm:$0xff]  ;;  %v2132_v46 = vld [vmem:[%s2993_s1 + $0x1f8] sm:$0xff] }
   0xc   :  { %1007 = vmatpush.bf16.msra.mxu2 %v2090_v10  ;;  %v2094_v27 = vld [vmem:[%s2993_s1 + $0xc8] sm:$0xff]  ;;  %v2093_v31 = vld [vmem:[%s2993_s1 + $0xc0] sm:$0xff]  ;;  %v2116_v47 = vld [vmem:[%s2993_s1 + $0x178] sm:$0xff] }
   0xd   :  { %1056 = vmatpush.bf16.msra.mxu3 %v2098_v11  ;;  %v1495_v32 = vld [vmem:[%s2994_s0] sm:$0xf]  ;;  %v2005_v34 = vld [vmem:[%s2994_s0 + $0x4] sm:$0xf]  ;;  %v1503_v36 = vld [vmem:[%s2994_s0 + $0x8] sm:$0xf] }
   0xe   :  { %910 = vmatpush.bf16.msra.mxu0 %v2073_v12  ;;  %v2009_v33 = vld [vmem:[%s2994_s0 + $0x1c] sm:$0xf0]  ;;  %v1497_v35 = vld [vmem:[%s2994_s0 + $0x20] sm:$0xf0]  ;;  %v2010_v37 = vld [vmem:[%s2994_s0 + $0x24] sm:$0xf0] }
   0xf   :  { %959 = vmatpush.bf16.msra.mxu1 %v2081_v13  ;;  %v2006_v38 = vld [vmem:[%s2994_s0 + $0xc] sm:$0xf]  ;;  %v1496_v42 = vor.u32 %v2009_v33, %v1495_v32  ;;  %v1500_v43 = vor.u32 %v2005_v34, %v1497_v35  ;;  %v1504_v44 = vor.u32 %v2010_v37, %v1503_v36  ;;  %v2123_v48 = vld [vmem:[%s2993_s1 + $0x1b0] sm:$0xff]  ;;  %v1527_v56 = vld [vmem:[%s2994_s0 + $0x40] sm:$0xf] }
  0x10   :  { %1008 = vmatpush.bf16.msra.mxu2 %v2089_v14  ;;  %v1505_v39 = vld [vmem:[%s2994_s0 + $0x28] sm:$0xf0]  ;;  %v2107_v49 = vld [vmem:[%s2993_s1 + $0x130] sm:$0xff]  ;;  %v2017_v57 = vld [vmem:[%s2994_s0 + $0x5c] sm:$0xf0] }
  0x11   :  { %1057 = vmatpush.bf16.msra.mxu3 %v2097_v15  ;;  %v1508_v45 = vor.u32 %v2006_v38, %v1505_v39  ;;  %v2131_v50 = vld [vmem:[%s2993_s1 + $0x1f0] sm:$0xff]  ;;  %v2122_v52 = vld [vmem:[%s2993_s1 + $0x1a8] sm:$0xff]  ;;  %v2013_v58 = vld [vmem:[%s2994_s0 + $0x44] sm:$0xf]  ;;  %v1528_v0 = vor.u32 %v2017_v57, %v1527_v56 }
  0x12   :  { %911 = vmatpush.bf16.msra.mxu0 %v2072_v16  ;;  %v2115_v51 = vld [vmem:[%s2993_s1 + $0x170] sm:$0xff]  ;;  %v2106_v53 = vld [vmem:[%s2993_s1 + $0x128] sm:$0xff]  ;;  %v1529_v59 = vld [vmem:[%s2994_s0 + $0x60] sm:$0xf0] }
  0x13   :  { %960 = vmatpush.bf16.msra.mxu1 %v2080_v17  ;;  %v2130_v54 = vld [vmem:[%s2993_s1 + $0x1e8] sm:$0xff]  ;;  %v1532_v1 = vor.u32 %v2013_v58, %v1529_v59  ;;  %v2121_v4 = vld [vmem:[%s2993_s1 + $0x1a0] sm:$0xff]  ;;  %v2119_v36 = vld [vmem:[%s2993_s1 + $0x190] sm:$0xff] }
  0x14   :  { %1009 = vmatpush.bf16.msra.mxu2 %v2088_v18  ;;  %v2114_v55 = vld [vmem:[%s2993_s1 + $0x168] sm:$0xff]  ;;  %v2105_v5 = vld [vmem:[%s2993_s1 + $0x120] sm:$0xff]  ;;  %v2103_v37 = vld [vmem:[%s2993_s1 + $0x110] sm:$0xff] }
  0x15   :  { %1058 = vmatpush.bf16.msra.mxu3 %v2096_v19  ;;  %v1535_v60 = vld [vmem:[%s2994_s0 + $0x48] sm:$0xf]  ;;  %v2014_v62 = vld [vmem:[%s2994_s0 + $0x4c] sm:$0xf]  ;;  %v2129_v6 = vld [vmem:[%s2993_s1 + $0x1e0] sm:$0xff] }
  0x16   :  { %912 = vmatpush.bf16.msra.mxu0 %v2071_v20  ;;  %v2018_v61 = vld [vmem:[%s2994_s0 + $0x64] sm:$0xf0]  ;;  %v1537_v63 = vld [vmem:[%s2994_s0 + $0x68] sm:$0xf0]  ;;  %v2113_v7 = vld [vmem:[%s2993_s1 + $0x160] sm:$0xff] }
  0x17   :  { %961 = vmatpush.bf16.msra.mxu1 %v2079_v21  ;;  %v1536_v2 = vor.u32 %v2018_v61, %v1535_v60  ;;  %v1540_v3 = vor.u32 %v2014_v62, %v1537_v63  ;;  %v1559_v8 = vld [vmem:[%s2994_s0 + $0x80] sm:$0xf]  ;;  %v2021_v10 = vld [vmem:[%s2994_s0 + $0x84] sm:$0xf]  ;;  %v1567_v12 = vld [vmem:[%s2994_s0 + $0x88] sm:$0xf] }
  0x18   :  { %1010 = vmatpush.bf16.msra.mxu2 %v2087_v22  ;;  %v2025_v9 = vld [vmem:[%s2994_s0 + $0x9c] sm:$0xf0]  ;;  %v1561_v11 = vld [vmem:[%s2994_s0 + $0xa0] sm:$0xf0]  ;;  %v2026_v13 = vld [vmem:[%s2994_s0 + $0xa4] sm:$0xf0] }
  0x19   :  { %1059 = vmatpush.bf16.msra.mxu3 %v2095_v23  ;;  %v2022_v14 = vld [vmem:[%s2994_s0 + $0x8c] sm:$0xf]  ;;  %v1560_v16 = vor.u32 %v2025_v9, %v1559_v8  ;;  %v1564_v17 = vor.u32 %v2021_v10, %v1561_v11  ;;  %v1568_v18 = vor.u32 %v2026_v13, %v1567_v12  ;;  %v2120_v20 = vld [vmem:[%s2993_s1 + $0x198] sm:$0xff]  ;;  %v2127_v38 = vld [vmem:[%s2993_s1 + $0x1d0] sm:$0xff] }
  0x1a   :  { %913 = vmatpush.bf16.msra.mxu0 %v2070_v24  ;;  %v1569_v15 = vld [vmem:[%s2994_s0 + $0xa8] sm:$0xf0]  ;;  %v2104_v21 = vld [vmem:[%s2993_s1 + $0x118] sm:$0xff]  ;;  %v1591_v24 = vld [vmem:[%s2994_s0 + $0xc0] sm:$0xf] }
  0x1b   :  { %962 = vmatpush.bf16.msra.mxu1 %v2078_v25  ;;  %v1572_v19 = vor.u32 %v2022_v14, %v1569_v15  ;;  %v2128_v22 = vld [vmem:[%s2993_s1 + $0x1d8] sm:$0xff]  ;;  %v2033_v25 = vld [vmem:[%s2994_s0 + $0xdc] sm:$0xf0]  ;;  %v2111_v39 = vld [vmem:[%s2993_s1 + $0x150] sm:$0xff] }
  0x1c   :  { %1011 = vmatpush.bf16.msra.mxu2 %v2086_v26  ;;  %v2112_v23 = vld [vmem:[%s2993_s1 + $0x158] sm:$0xff]  ;;  %v2029_v26 = vld [vmem:[%s2994_s0 + $0xc4] sm:$0xf]  ;;  %v1592_v32 = vor.u32 %v2033_v25, %v1591_v24  ;;  %v1655_v56 = vld [vmem:[%s2994_s0 + $0x140] sm:$0xf] }
  0x1d   :  { %1060 = vmatpush.bf16.msra.mxu3 %v2094_v27  ;;  %v1593_v27 = vld [vmem:[%s2994_s0 + $0xe0] sm:$0xf0]  ;;  %v2049_v57 = vld [vmem:[%s2994_s0 + $0x15c] sm:$0xf0]  ;;  %v1663_v60 = vld [vmem:[%s2994_s0 + $0x148] sm:$0xf] }
  0x1e   :  { %914 = vmatpush.bf16.msra.mxu0 %v2069_v28  ;;  %v1599_v28 = vld [vmem:[%s2994_s0 + $0xc8] sm:$0xf]  ;;  %v1596_v33 = vor.u32 %v2029_v26, %v1593_v27  ;;  %v2045_v58 = vld [vmem:[%s2994_s0 + $0x144] sm:$0xf]  ;;  %v2046_v62 = vld [vmem:[%s2994_s0 + $0x14c] sm:$0xf] }
  0x1f   :  { %963 = vmatpush.bf16.msra.mxu1 %v2077_v29  ;;  %v2034_v29 = vld [vmem:[%s2994_s0 + $0xe4] sm:$0xf0]  ;;  %v1657_v59 = vld [vmem:[%s2994_s0 + $0x160] sm:$0xf0]  ;;  %v1665_v63 = vld [vmem:[%s2994_s0 + $0x168] sm:$0xf0] }
  0x20   :  { %1012 = vmatpush.bf16.msra.mxu2 %v2085_v30  ;;  %v2030_v30 = vld [vmem:[%s2994_s0 + $0xcc] sm:$0xf]  ;;  %v1600_v34 = vor.u32 %v2034_v29, %v1599_v28  ;;  %v2050_v61 = vld [vmem:[%s2994_s0 + $0x164] sm:$0xf0]  ;;  %v1687_v8 = vld [vmem:[%s2994_s0 + $0x180] sm:$0xf] }
  0x21   :  { %1061 = vmatpush.bf16.msra.mxu3 %v2093_v31  ;;  %915 = vmatmul.bf16.vlgmr.msra.gmra.mxu0 %v1496_v42  ;;  %v1601_v31 = vld [vmem:[%s2994_s0 + $0xe8] sm:$0xf0]  ;;  %v2037_v42 = vld [vmem:[%s2994_s0 + $0x104] sm:$0xf]  ;;  %v2057_v9 = vld [vmem:[%s2994_s0 + $0x19c] sm:$0xf0] }
  0x22   :  { %1103 = vmatpush.bf16.msrb.mxu0 %v2108_v41  ;;  %964 = vmatmul.bf16.vlgmr.msra.gmra.mxu1 %v1500_v43  ;;  %v1604_v35 = vor.u32 %v2030_v30, %v1601_v31  ;;  %v2041_v41 = vld [vmem:[%s2994_s0 + $0x11c] sm:$0xf0]  ;;  %v1625_v43 = vld [vmem:[%s2994_s0 + $0x120] sm:$0xf0]  ;;  %v1695_v12 = vld [vmem:[%s2994_s0 + $0x188] sm:$0xf] }
  0x23   :  { %1013 = vmatmul.bf16.vlgmr.msra.gmra.mxu2 %v1504_v44  ;;  %1152 = vmatpush.bf16.msrb.mxu1 %v2116_v47  ;;  %v1631_v44 = vld [vmem:[%s2994_s0 + $0x108] sm:$0xf]  ;;  %v1633_v47 = vld [vmem:[%s2994_s0 + $0x128] sm:$0xf0]  ;;  %v2053_v10 = vld [vmem:[%s2994_s0 + $0x184] sm:$0xf] }
  0x24   :  { %1201 = vmatpush.bf16.msrb.mxu2 %v2124_v40  ;;  %1062 = vmatmul.bf16.vlgmr.msra.gmra.mxu3 %v1508_v45  ;;  %v1623_v40 = vld [vmem:[%s2994_s0 + $0x100] sm:$0xf]  ;;  %v2042_v45 = vld [vmem:[%s2994_s0 + $0x124] sm:$0xf0]  ;;  %v1689_v11 = vld [vmem:[%s2994_s0 + $0x1a0] sm:$0xf0] }
  0x25   :  { %1250 = vmatpush.bf16.msrb.mxu3 %v2132_v46  ;;  %v2038_v46 = vld [vmem:[%s2994_s0 + $0x10c] sm:$0xf]  ;;  %v2058_v13 = vld [vmem:[%s2994_s0 + $0x1a4] sm:$0xf0] }
  0x26   :  { %1104 = vmatpush.bf16.msrb.mxu0 %v2107_v49  ;;  %v1628_v49 = vor.u32 %v2037_v42, %v1625_v43  ;;  %v2054_v14 = vld [vmem:[%s2994_s0 + $0x18c] sm:$0xf]  ;;  %v1727_v24 = vld [vmem:[%s2994_s0 + $0x1c8] sm:$0xf] }
  0x27   :  { %1153 = vmatpush.bf16.msrb.mxu1 %v2115_v51  ;;  %v1636_v51 = vor.u32 %v2038_v46, %v1633_v47  ;;  %v1697_v15 = vld [vmem:[%s2994_s0 + $0x1a8] sm:$0xf0]  ;;  %v2066_v25 = vld [vmem:[%s2994_s0 + $0x1e4] sm:$0xf0] }
  0x28   :  { %1202 = vmatpush.bf16.msrb.mxu2 %v2123_v48  ;;  %v1624_v48 = vor.u32 %v2041_v41, %v1623_v40  ;;  %v2062_v26 = vld [vmem:[%s2994_s0 + $0x1cc] sm:$0xf]  ;;  %v1728_v30 = vor.u32 %v2066_v25, %v1727_v24 }
  0x29   :  { %1251 = vmatpush.bf16.msrb.mxu3 %v2131_v50  ;;  %v1632_v50 = vor.u32 %v2042_v45, %v1631_v44  ;;  %v1729_v27 = vld [vmem:[%s2994_s0 + $0x1e8] sm:$0xf0] }
  0x2a   :  { %1105 = vmatpush.bf16.msrb.mxu0 %v2106_v53  ;;  %v2102_v53 = vld [vmem:[%s2993_s1 + $0x108] sm:$0xff]  ;;  %v1732_v31 = vor.u32 %v2062_v26, %v1729_v27 }
  0x2b   :  { %1154 = vmatpush.bf16.msrb.mxu1 %v2114_v55  ;;  %v2110_v55 = vld [vmem:[%s2993_s1 + $0x148] sm:$0xff] }
  0x2c   :  { %1203 = vmatpush.bf16.msrb.mxu2 %v2122_v52  ;;  %v2118_v52 = vld [vmem:[%s2993_s1 + $0x188] sm:$0xff] }
  0x2d   :  { %1252 = vmatpush.bf16.msrb.mxu3 %v2130_v54  ;;  %v2126_v54 = vld [vmem:[%s2993_s1 + $0x1c8] sm:$0xff] }
  0x2e   :  { %1106 = vmatpush.bf16.msrb.mxu0 %v2105_v5  ;;  %v2101_v5 = vld [vmem:[%s2993_s1 + $0x100] sm:$0xff] }
  0x2f   :  { %1155 = vmatpush.bf16.msrb.mxu1 %v2113_v7  ;;  %v2109_v7 = vld [vmem:[%s2993_s1 + $0x140] sm:$0xff] }
  0x30   :  { %1204 = vmatpush.bf16.msrb.mxu2 %v2121_v4  ;;  %v2117_v4 = vld [vmem:[%s2993_s1 + $0x180] sm:$0xff] }
  0x31   :  { %920 = vmatmul.bf16.gmra.mxu0 %v1528_v0  ;;  %1253 = vmatpush.bf16.msrb.mxu3 %v2129_v6  ;;  %v1656_v0 = vor.u32 %v2049_v57, %v1655_v56  ;;  %v2125_v6 = vld [vmem:[%s2993_s1 + $0x1c0] sm:$0xff]  ;;  %v2015_v56 = vld [vmem:[%s2994_s0 + $0x54] sm:$0xf] }
  0x32   :  { %969 = vmatmul.bf16.gmra.mxu1 %v1532_v1  ;;  %1107 = vmatpush.bf16.msrb.mxu0 %v2104_v21  ;;  %v1660_v1 = vor.u32 %v2045_v58, %v1657_v59  ;;  %v2065_v21 = vld [vmem:[%s2994_s0 + $0x1dc] sm:$0xf0]  ;;  %v1545_v57 = vld [vmem:[%s2994_s0 + $0x70] sm:$0xf0]  ;;  %v1551_v58 = vld [vmem:[%s2994_s0 + $0x58] sm:$0xf] }
  0x33   :  { %1018 = vmatmul.bf16.gmra.mxu2 %v1536_v2  ;;  %1156 = vmatpush.bf16.msrb.mxu1 %v2112_v23  ;;  %v1664_v2 = vor.u32 %v2050_v61, %v1663_v60  ;;  %v1721_v23 = vld [vmem:[%s2994_s0 + $0x1e0] sm:$0xf0]  ;;  %v2020_v59 = vld [vmem:[%s2994_s0 + $0x74] sm:$0xf0]  ;;  %v2016_v60 = vld [vmem:[%s2994_s0 + $0x5c] sm:$0xf] }
  0x34   :  { %1067 = vmatmul.bf16.gmra.mxu3 %v1540_v3  ;;  %1205 = vmatpush.bf16.msrb.mxu2 %v2120_v20  ;;  %v1668_v3 = vor.u32 %v2046_v62, %v1665_v63  ;;  %v1719_v20 = vld [vmem:[%s2994_s0 + $0x1c0] sm:$0xf]  ;;  %v1553_v61 = vld [vmem:[%s2994_s0 + $0x78] sm:$0xf0] }
  0x35   :  { %1254 = vmatpush.bf16.msrb.mxu3 %v2128_v22  ;;  %v2061_v22 = vld [vmem:[%s2994_s0 + $0x1c4] sm:$0xf]  ;;  %v1720_v28 = vor.u32 %v2065_v21, %v1719_v20  ;;  %v1583_v20 = vld [vmem:[%s2994_s0 + $0x98] sm:$0xf] }
  0x36   :  { %1108 = vmatpush.bf16.msrb.mxu0 %v2103_v37  ;;  %v1724_v29 = vor.u32 %v2061_v22, %v1721_v23  ;;  %v2012_v37 = vld [vmem:[%s2994_s0 + $0x34] sm:$0xf0]  ;;  %v2024_v22 = vld [vmem:[%s2994_s0 + $0x9c] sm:$0xf] }
  0x37   :  { %1157 = vmatpush.bf16.msrb.mxu1 %v2111_v39  ;;  %v1521_v39 = vld [vmem:[%s2994_s0 + $0x38] sm:$0xf0]  ;;  %v2028_v21 = vld [vmem:[%s2994_s0 + $0xb4] sm:$0xf0] }
  0x38   :  { %1206 = vmatpush.bf16.msrb.mxu2 %v2119_v36  ;;  %v1519_v36 = vld [vmem:[%s2994_s0 + $0x18] sm:$0xf]  ;;  %v1585_v23 = vld [vmem:[%s2994_s0 + $0xb8] sm:$0xf0] }
  0x39   :  { %1255 = vmatpush.bf16.msrb.mxu3 %v2127_v38  ;;  %v2008_v38 = vld [vmem:[%s2994_s0 + $0x1c] sm:$0xf]  ;;  %v1520_v44 = vor.u32 %v2012_v37, %v1519_v36 }
  0x3a   :  { %1109 = vmatpush.bf16.msrb.mxu0 %v2102_v53  ;;  %v1524_v45 = vor.u32 %v2008_v38, %v1521_v39 }
  0x3b   :  { %1158 = vmatpush.bf16.msrb.mxu1 %v2110_v55  ;;  %v2019_v55 = vld [vmem:[%s2994_s0 + $0x6c] sm:$0xf0] }
  0x3c   :  { %1207 = vmatpush.bf16.msrb.mxu2 %v2118_v52 }
  0x3d   :  { %1256 = vmatpush.bf16.msrb.mxu3 %v2126_v54  ;;  %v1543_v54 = vld [vmem:[%s2994_s0 + $0x50] sm:$0xf] }
  0x3e   :  { %1110 = vmatpush.bf16.msrb.mxu0 %v2101_v5  ;;  %v1552_v5 = vor.u32 %v2020_v59, %v1551_v58 }
  0x3f   :  { %1159 = vmatpush.bf16.msrb.mxu1 %v2109_v7 }
  0x40   :  { %1208 = vmatpush.bf16.msrb.mxu2 %v2117_v4 }
  0x41   :  { %925 = vmatmul.bf16.gmra.mxu0 %v1560_v16  ;;  %1257 = vmatpush.bf16.msrb.mxu3 %v2125_v6  ;;  %v1688_v16 = vor.u32 %v2057_v9, %v1687_v8  ;;  %v1556_v6 = vor.u32 %v2016_v60, %v1553_v61 }
  0x42   :  { %974 = vmatmul.bf16.gmra.mxu1 %v1564_v17  ;;  %v1692_v17 = vor.u32 %v2053_v10, %v1689_v11 }
  0x43   :  { %1023 = vmatmul.bf16.gmra.mxu2 %v1568_v18  ;;  %v1696_v18 = vor.u32 %v2058_v13, %v1695_v12 }
  0x44   :  { %1072 = vmatmul.bf16.gmra.mxu3 %v1572_v19  ;;  %v1700_v19 = vor.u32 %v2054_v14, %v1697_v15 }
  0x51   :  { %930 = vmatmul.bf16.gmra.mxu0 %v1592_v32  ;;  %v1511_v32 = vld [vmem:[%s2994_s0 + $0x10] sm:$0xf] }
  0x52   :  { %979 = vmatmul.bf16.gmra.mxu1 %v1596_v33  ;;  %v2011_v33 = vld [vmem:[%s2994_s0 + $0x2c] sm:$0xf0] }
  0x53   :  { %1028 = vmatmul.bf16.gmra.mxu2 %v1600_v34  ;;  %v2007_v34 = vld [vmem:[%s2994_s0 + $0x14] sm:$0xf]  ;;  %v1512_v40 = vor.u32 %v2011_v33, %v1511_v32  ;;  %v1588_v32 = vor.u32 %v2024_v22, %v1585_v23 }
  0x54   :  { %1077 = vmatmul.bf16.gmra.mxu3 %v1604_v35  ;;  %v1513_v35 = vld [vmem:[%s2994_s0 + $0x30] sm:$0xf0] }
  0x55   :  { %v1516_v41 = vor.u32 %v2007_v34, %v1513_v35 }
  0x61   :  { %935 = vmatmul.bf16.gmra.mxu0 %v1624_v48 }
  0x62   :  { %984 = vmatmul.bf16.gmra.mxu1 %v1628_v49 }
  0x63   :  { %1033 = vmatmul.bf16.gmra.mxu2 %v1632_v50 }
  0x64   :  { %1082 = vmatmul.bf16.gmra.mxu3 %v1636_v51 }
  0x71   :  { %940 = vmatmul.bf16.gmra.mxu0 %v1656_v0  ;;  %v1544_v0 = vor.u32 %v2019_v55, %v1543_v54 }
  0x72   :  { %989 = vmatmul.bf16.gmra.mxu1 %v1660_v1  ;;  %v1548_v1 = vor.u32 %v2015_v56, %v1545_v57 }
  0x73   :  { %1038 = vmatmul.bf16.gmra.mxu2 %v1664_v2 }
  0x74   :  { %1087 = vmatmul.bf16.gmra.mxu3 %v1668_v3 }
  0x81   :  { %945 = vmatmul.bf16.gmra.mxu0 %v1688_v16  ;;  %v1575_v16 = vld [vmem:[%s2994_s0 + $0x90] sm:$0xf] }
  0x82   :  { %994 = vmatmul.bf16.gmra.mxu1 %v1692_v17  ;;  %v2027_v17 = vld [vmem:[%s2994_s0 + $0xac] sm:$0xf0] }
  0x83   :  { %1043 = vmatmul.bf16.gmra.mxu2 %v1696_v18  ;;  %v2023_v18 = vld [vmem:[%s2994_s0 + $0x94] sm:$0xf]  ;;  %v1576_v26 = vor.u32 %v2027_v17, %v1575_v16 }
  0x84   :  { %1092 = vmatmul.bf16.gmra.mxu3 %v1700_v19  ;;  %v1577_v19 = vld [vmem:[%s2994_s0 + $0xb0] sm:$0xf0] }
  0x85   :  { %v1580_v27 = vor.u32 %v2023_v18, %v1577_v19 }
  0x91   :  { %950 = vmatmul.bf16.gmra.mxu0 %v1720_v28 }
  0x92   :  { %999 = vmatmul.bf16.gmra.mxu1 %v1724_v29 }
  0x93   :  { %1048 = vmatmul.bf16.gmra.mxu2 %v1728_v30 }
  0x94   :  { %1097 = vmatmul.bf16.gmra.mxu3 %v1732_v31  ;;  %v1584_v31 = vor.u32 %v2028_v21, %v1583_v20 }
  0x9e   :  { %v916_v42 = vpop.f32.mrf.mxu0 }
  0x9f   :  { %v965_v43 = vpop.f32.mrf.mxu1 }
  0xa0   :  { %v966_v46 = vadd.f32 %v965_v43, %v916_v42  ;;  %v1607_v42 = vld [vmem:[%s2994_s0 + $0xd0] sm:$0xf] }
  0xa1   :  { %1111 = vmatmul.bf16.vlgmr.msrb.gmra.mxu0 %v1512_v40  ;;  %v2035_v43 = vld [vmem:[%s2994_s0 + $0xec] sm:$0xf0] }
  0xa2   :  { %1160 = vmatmul.bf16.vlgmr.msrb.gmra.mxu1 %v1516_v41 }
  0xa3   :  { %1209 = vmatmul.bf16.vlgmr.msrb.gmra.mxu2 %v1520_v44  ;;  %v2031_v44 = vld [vmem:[%s2994_s0 + $0xd4] sm:$0xf] }
  0xa4   :  { %1258 = vmatmul.bf16.vlgmr.msrb.gmra.mxu3 %v1524_v45  ;;  %v1609_v45 = vld [vmem:[%s2994_s0 + $0xf0] sm:$0xf0] }
  0xa5   :  { %v1612_v54 = vor.u32 %v2031_v44, %v1609_v45 }
  0xa6   :  { %v1014_v47 = vpop.f32.mrf.mxu2  ;;  %v918_v50 = vpop.f32.mrf.mxu0 }
  0xa7   :  { %v1063_v48 = vpop.f32.mrf.mxu3  ;;  %v1015_v49 = vadd.f32 %v1014_v47, %v966_v46  ;;  %v967_v51 = vpop.f32.mrf.mxu1  ;;  %v1615_v46 = vld [vmem:[%s2994_s0 + $0xd8] sm:$0xf] }
  0xa8   :  { %v968_v52 = vadd.f32 %v967_v51, %v918_v50  ;;  %v2036_v47 = vld [vmem:[%s2994_s0 + $0xf4] sm:$0xf0] }
  0xa9   :  { %v2609_v53 = vadd.f32 %v1063_v48, %v1015_v49  ;;  %v2032_v48 = vld [vmem:[%s2994_s0 + $0xdc] sm:$0xf]  ;;  %v1616_v58 = vor.u32 %v2036_v47, %v1615_v46 }
  0xaa   :  { %v1617_v49 = vld [vmem:[%s2994_s0 + $0xf8] sm:$0xf0] }
  0xab   :  { %v1620_v59 = vor.u32 %v2032_v48, %v1617_v49 }
  0xae   :  { %v1016_v62 = vpop.f32.mrf.mxu2  ;;  %v921_v3 = vpop.f32.mrf.mxu0 }
  0xaf   :  { %v1065_v63 = vpop.f32.mrf.mxu3  ;;  %v1017_v2 = vadd.f32 %v1016_v62, %v968_v52  ;;  %v970_v4 = vpop.f32.mrf.mxu1  ;;  %v1608_v52 = vor.u32 %v2035_v43, %v1607_v42  ;;  %v1681_v42 = vld [vmem:[%s2994_s0 + $0x178] sm:$0xf0] }
  0xb0   :  { %v971_v7 = vadd.f32 %v970_v4, %v921_v3 }
  0xb1   :  { %v2635_v8 = vadd.f32 %v1065_v63, %v1017_v2  ;;  %1116 = vmatmul.bf16.gmra.mxu0 %v1544_v0 }
  0xb2   :  { %1165 = vmatmul.bf16.gmra.mxu1 %v1548_v1 }
  0xb3   :  { %1214 = vmatmul.bf16.gmra.mxu2 %v1552_v5  ;;  %v1639_v5 = vld [vmem:[%s2994_s0 + $0x110] sm:$0xf] }
  0xb4   :  { %1263 = vmatmul.bf16.gmra.mxu3 %v1556_v6  ;;  %v2043_v6 = vld [vmem:[%s2994_s0 + $0x12c] sm:$0xf0] }
  0xb5   :  { %v1640_v17 = vor.u32 %v2043_v6, %v1639_v5  ;;  %v2060_v5 = vld [vmem:[%s2994_s0 + $0x1b4] sm:$0xf0]  ;;  %v2056_v6 = vld [vmem:[%s2994_s0 + $0x19c] sm:$0xf] }
  0xb6   :  { %v1019_v9 = vpop.f32.mrf.mxu2  ;;  %v923_v12 = vpop.f32.mrf.mxu0 }
  0xb7   :  { %v1068_v10 = vpop.f32.mrf.mxu3  ;;  %v1020_v11 = vadd.f32 %v1019_v9, %v971_v7  ;;  %v972_v13 = vpop.f32.mrf.mxu1  ;;  %v2039_v7 = vld [vmem:[%s2994_s0 + $0x114] sm:$0xf] }
  0xb8   :  { %v973_v14 = vadd.f32 %v972_v13, %v923_v12  ;;  %v1641_v9 = vld [vmem:[%s2994_s0 + $0x130] sm:$0xf0]  ;;  %v2040_v12 = vld [vmem:[%s2994_s0 + $0x11c] sm:$0xf] }
  0xb9   :  { %v2637_v15 = vadd.f32 %v1068_v10, %v1020_v11  ;;  %v1647_v10 = vld [vmem:[%s2994_s0 + $0x118] sm:$0xf]  ;;  %v1649_v13 = vld [vmem:[%s2994_s0 + $0x138] sm:$0xf0]  ;;  %v1644_v18 = vor.u32 %v2039_v7, %v1641_v9 }
  0xba   :  { %v2044_v11 = vld [vmem:[%s2994_s0 + $0x134] sm:$0xf0]  ;;  %v1652_v23 = vor.u32 %v2040_v12, %v1649_v13  ;;  %v1713_v7 = vld [vmem:[%s2994_s0 + $0x1b8] sm:$0xf0] }
  0xbb   :  { %v1648_v22 = vor.u32 %v2044_v11, %v1647_v10 }
  0xbe   :  { %v1021_v24 = vpop.f32.mrf.mxu2  ;;  %v926_v29 = vpop.f32.mrf.mxu0 }
  0xbf   :  { %v1070_v25 = vpop.f32.mrf.mxu3  ;;  %v1022_v28 = vadd.f32 %v1021_v24, %v973_v14  ;;  %v975_v30 = vpop.f32.mrf.mxu1 }
  0xc0   :  { %v976_v33 = vadd.f32 %v975_v30, %v926_v29 }
  0xc1   :  { %v2663_v34 = vadd.f32 %v1070_v25, %v1022_v28  ;;  %1121 = vmatmul.bf16.gmra.mxu0 %v1576_v26 }
  0xc2   :  { %1170 = vmatmul.bf16.gmra.mxu1 %v1580_v27 }
  0xc3   :  { %1219 = vmatmul.bf16.gmra.mxu2 %v1584_v31 }
  0xc4   :  { %1268 = vmatmul.bf16.gmra.mxu3 %v1588_v32 }
  0xc6   :  { %v1024_v35 = vpop.f32.mrf.mxu2  ;;  %v928_v38 = vpop.f32.mrf.mxu0 }
  0xc7   :  { %v1073_v36 = vpop.f32.mrf.mxu3  ;;  %v1025_v37 = vadd.f32 %v1024_v35, %v976_v33  ;;  %v977_v39 = vpop.f32.mrf.mxu1  ;;  %v1671_v33 = vld [vmem:[%s2994_s0 + $0x150] sm:$0xf] }
  0xc8   :  { %v978_v40 = vadd.f32 %v977_v39, %v928_v38  ;;  %v2051_v35 = vld [vmem:[%s2994_s0 + $0x16c] sm:$0xf0]  ;;  %v1679_v38 = vld [vmem:[%s2994_s0 + $0x158] sm:$0xf] }
  0xc9   :  { %v2665_v41 = vadd.f32 %v1073_v36, %v1025_v37  ;;  %v2047_v36 = vld [vmem:[%s2994_s0 + $0x154] sm:$0xf]  ;;  %v2052_v39 = vld [vmem:[%s2994_s0 + $0x174] sm:$0xf0]  ;;  %v1672_v45 = vor.u32 %v2051_v35, %v1671_v33 }
  0xca   :  { %v1673_v37 = vld [vmem:[%s2994_s0 + $0x170] sm:$0xf0]  ;;  %v1743_v35 = vld [vmem:[%s2994_s0 + $0x1d8] sm:$0xf] }
  0xcb   :  { %v1676_v46 = vor.u32 %v2047_v36, %v1673_v37  ;;  %v1737_v33 = vld [vmem:[%s2994_s0 + $0x1f0] sm:$0xf0]  ;;  %v2068_v36 = vld [vmem:[%s2994_s0 + $0x1f4] sm:$0xf0]  ;;  %v2064_v37 = vld [vmem:[%s2994_s0 + $0x1dc] sm:$0xf] }
  0xce   :  { %v1026_v50 = vpop.f32.mrf.mxu2  ;;  %v931_v56 = vpop.f32.mrf.mxu0 }
  0xcf   :  { %v1075_v51 = vpop.f32.mrf.mxu3  ;;  %v1027_v55 = vadd.f32 %v1026_v50, %v978_v40  ;;  %v980_v57 = vpop.f32.mrf.mxu1  ;;  %v2048_v40 = vld [vmem:[%s2994_s0 + $0x15c] sm:$0xf]  ;;  %v1680_v50 = vor.u32 %v2052_v39, %v1679_v38 }
  0xd0   :  { %v981_v60 = vadd.f32 %v980_v57, %v931_v56  ;;  %v1745_v38 = vld [vmem:[%s2994_s0 + $0x1f8] sm:$0xf0] }
  0xd1   :  { %v2691_v61 = vadd.f32 %v1075_v51, %v1027_v55  ;;  %1126 = vmatmul.bf16.gmra.mxu0 %v1608_v52  ;;  %v1684_v51 = vor.u32 %v2048_v40, %v1681_v42 }
  0xd2   :  { %1175 = vmatmul.bf16.gmra.mxu1 %v1612_v54 }
  0xd3   :  { %1224 = vmatmul.bf16.gmra.mxu2 %v1616_v58 }
  0xd4   :  { %1273 = vmatmul.bf16.gmra.mxu3 %v1620_v59 }
  0xd6   :  { %v1029_v62 = vpop.f32.mrf.mxu2  ;;  %v933_v1 = vpop.f32.mrf.mxu0 }
  0xd7   :  { %v1078_v63 = vpop.f32.mrf.mxu3  ;;  %v1030_v0 = vadd.f32 %v1029_v62, %v981_v60  ;;  %v982_v2 = vpop.f32.mrf.mxu1 }
  0xd8   :  { %v983_v3 = vadd.f32 %v982_v2, %v933_v1  ;;  %v2055_v1 = vld [vmem:[%s2994_s0 + $0x194] sm:$0xf] }
  0xd9   :  { %v2693_v4 = vadd.f32 %v1078_v63, %v1030_v0  ;;  %v1703_v63 = vld [vmem:[%s2994_s0 + $0x190] sm:$0xf]  ;;  %v1705_v2 = vld [vmem:[%s2994_s0 + $0x1b0] sm:$0xf0] }
  0xda   :  { %v2059_v0 = vld [vmem:[%s2994_s0 + $0x1ac] sm:$0xf0]  ;;  %v1708_v12 = vor.u32 %v2055_v1, %v1705_v2 }
  0xdb   :  { %v1704_v11 = vor.u32 %v2059_v0, %v1703_v63 }
  0xde   :  { %v1031_v14 = vpop.f32.mrf.mxu2  ;;  %v936_v20 = vpop.f32.mrf.mxu0 }
  0xdf   :  { %v1080_v16 = vpop.f32.mrf.mxu3  ;;  %v1032_v19 = vadd.f32 %v1031_v14, %v983_v3  ;;  %v985_v21 = vpop.f32.mrf.mxu1  ;;  %v1711_v3 = vld [vmem:[%s2994_s0 + $0x198] sm:$0xf] }
  0xe0   :  { %v986_v24 = vadd.f32 %v985_v21, %v936_v20 }
  0xe1   :  { %v2719_v25 = vadd.f32 %v1080_v16, %v1032_v19  ;;  %1131 = vmatmul.bf16.gmra.mxu0 %v1640_v17  ;;  %v1712_v17 = vor.u32 %v2060_v5, %v1711_v3 }
  0xe2   :  { %1180 = vmatmul.bf16.gmra.mxu1 %v1644_v18  ;;  %v1716_v18 = vor.u32 %v2056_v6, %v1713_v7 }
  0xe3   :  { %1229 = vmatmul.bf16.gmra.mxu2 %v1648_v22 }
  0xe4   :  { %1278 = vmatmul.bf16.gmra.mxu3 %v1652_v23 }
  0xe6   :  { %v1034_v26 = vpop.f32.mrf.mxu2  ;;  %v938_v29 = vpop.f32.mrf.mxu0 }
  0xe7   :  { %v1083_v27 = vpop.f32.mrf.mxu3  ;;  %v1035_v28 = vadd.f32 %v1034_v26, %v986_v24  ;;  %v987_v30 = vpop.f32.mrf.mxu1 }
  0xe8   :  { %v988_v31 = vadd.f32 %v987_v30, %v938_v29  ;;  %v1735_v29 = vld [vmem:[%s2994_s0 + $0x1d0] sm:$0xf] }
  0xe9   :  { %v2721_v32 = vadd.f32 %v1083_v27, %v1035_v28  ;;  %v2067_v30 = vld [vmem:[%s2994_s0 + $0x1ec] sm:$0xf0] }
  0xea   :  { %v1736_v42 = vor.u32 %v2067_v30, %v1735_v29 }
  0xee   :  { %v1036_v43 = vpop.f32.mrf.mxu2  ;;  %v941_v48 = vpop.f32.mrf.mxu0 }
  0xef   :  { %v1085_v44 = vpop.f32.mrf.mxu3  ;;  %v1037_v47 = vadd.f32 %v1036_v43, %v988_v31  ;;  %v990_v49 = vpop.f32.mrf.mxu1  ;;  %v2063_v31 = vld [vmem:[%s2994_s0 + $0x1d4] sm:$0xf] }
  0xf0   :  { %v991_v52 = vadd.f32 %v990_v49, %v941_v48  ;;  %v1740_v43 = vor.u32 %v2063_v31, %v1737_v33  ;;  %v1748_v48 = vor.u32 %v2064_v37, %v1745_v38 }
  0xf1   :  { %v2747_v54 = vadd.f32 %v1085_v44, %v1037_v47  ;;  %1136 = vmatmul.bf16.gmra.mxu0 %v1672_v45  ;;  %v1744_v47 = vor.u32 %v2068_v36, %v1743_v35 }
  0xf2   :  { %1185 = vmatmul.bf16.gmra.mxu1 %v1676_v46 }
  0xf3   :  { %1234 = vmatmul.bf16.gmra.mxu2 %v1680_v50 }
  0xf4   :  { %1283 = vmatmul.bf16.gmra.mxu3 %v1684_v51 }
  0xf6   :  { %v1039_v55 = vpop.f32.mrf.mxu2  ;;  %v943_v58 = vpop.f32.mrf.mxu0 }
  0xf7   :  { %v1088_v56 = vpop.f32.mrf.mxu3  ;;  %v1040_v57 = vadd.f32 %v1039_v55, %v991_v52  ;;  %v992_v59 = vpop.f32.mrf.mxu1 }
  0xf8   :  { %v993_v60 = vadd.f32 %v992_v59, %v943_v58 }
  0xf9   :  { %v2749_v62 = vadd.f32 %v1088_v56, %v1040_v57 }
  0xfe   :  { %v1041_v9 = vpop.f32.mrf.mxu2  ;;  %v946_v14 = vpop.f32.mrf.mxu0 }
  0xff   :  { %v1090_v10 = vpop.f32.mrf.mxu3  ;;  %v1042_v13 = vadd.f32 %v1041_v9, %v993_v60  ;;  %v995_v16 = vpop.f32.mrf.mxu1 }
 0x100   :  { %v996_v19 = vadd.f32 %v995_v16, %v946_v14 }
 0x101   :  { %v2775_v20 = vadd.f32 %v1090_v10, %v1042_v13  ;;  %1141 = vmatmul.bf16.gmra.mxu0 %v1704_v11 }
 0x102   :  { %1190 = vmatmul.bf16.gmra.mxu1 %v1708_v12 }
 0x103   :  { %1239 = vmatmul.bf16.gmra.mxu2 %v1712_v17 }
 0x104   :  { %1288 = vmatmul.bf16.gmra.mxu3 %v1716_v18 }
 0x106   :  { %v1044_v21 = vpop.f32.mrf.mxu2  ;;  %v948_v24 = vpop.f32.mrf.mxu0 }
 0x107   :  { %v1093_v22 = vpop.f32.mrf.mxu3  ;;  %v1045_v23 = vadd.f32 %v1044_v21, %v996_v19  ;;  %v997_v26 = vpop.f32.mrf.mxu1 }
 0x108   :  { %v998_v27 = vadd.f32 %v997_v26, %v948_v24 }
 0x109   :  { %v2777_v28 = vadd.f32 %v1093_v22, %v1045_v23 }
 0x10e   :  { %v1046_v39 = vpop.f32.mrf.mxu2  ;;  %v951_v45 = vpop.f32.mrf.mxu0 }
 0x10f   :  { %v1095_v40 = vpop.f32.mrf.mxu3  ;;  %v1047_v44 = vadd.f32 %v1046_v39, %v998_v27  ;;  %v1000_v46 = vpop.f32.mrf.mxu1 }
 0x110   :  { %v1001_v49 = vadd.f32 %v1000_v46, %v951_v45 }
 0x111   :  { %v2803_v50 = vadd.f32 %v1095_v40, %v1047_v44  ;;  %1146 = vmatmul.bf16.gmra.mxu0 %v1736_v42 }
 0x112   :  { %1195 = vmatmul.bf16.gmra.mxu1 %v1740_v43 }
 0x113   :  { %1244 = vmatmul.bf16.gmra.mxu2 %v1744_v47 }
 0x114   :  { %1293 = vmatmul.bf16.gmra.mxu3 %v1748_v48 }
 0x116   :  { %v1049_v51 = vpop.f32.mrf.mxu2  ;;  %v953_v56 = vpop.f32.mrf.mxu0 }
 0x117   :  { %v1098_v52 = vpop.f32.mrf.mxu3  ;;  %v1050_v55 = vadd.f32 %v1049_v51, %v1001_v49  ;;  %v1002_v57 = vpop.f32.mrf.mxu1 }
 0x118   :  { %v1003_v58 = vadd.f32 %v1002_v57, %v953_v56 }
 0x119   :  { %v2805_v59 = vadd.f32 %v1098_v52, %v1050_v55 }
 0x11e   :  { %v1051_v60 = vpop.f32.mrf.mxu2  ;;  %v1112_v1 = vpop.f32.mrf.mxu0 }
 0x11f   :  { %v1100_v63 = vpop.f32.mrf.mxu3  ;;  %v1052_v0 = vadd.f32 %v1051_v60, %v1003_v58  ;;  %v1161_v2 = vpop.f32.mrf.mxu1  ;;  %v1113_v3 = vadd.f32 %v1112_v1, %v2609_v53 }
 0x121   :  { %v2808_v5 = vadd.f32 %v1100_v63, %v1052_v0  ;;  %v1162_v6 = vadd.f32 %v1161_v2, %v1113_v3 }
 0x126   :  { %v1210_v7 = vpop.f32.mrf.mxu2  ;;  %v1114_v11 = vpop.f32.mrf.mxu0 }
 0x127   :  { %v1259_v9 = vpop.f32.mrf.mxu3  ;;  %v1211_v10 = vadd.f32 %v1210_v7, %v1162_v6  ;;  %v1163_v12 = vpop.f32.mrf.mxu1  ;;  %v1115_v13 = vadd.f32 %v1114_v11, %v2635_v8 }
 0x129   :  { %v2811_v14 = vadd.f32 %v1259_v9, %v1211_v10  ;;  %v1164_v16 = vadd.f32 %v1163_v12, %v1115_v13 }
 0x12e   :  { %v1212_v17 = vpop.f32.mrf.mxu2  ;;  %v1117_v21 = vpop.f32.mrf.mxu0 }
 0x12f   :  { %v1261_v18 = vpop.f32.mrf.mxu3  ;;  %v1213_v19 = vadd.f32 %v1212_v17, %v1164_v16  ;;  %v1166_v22 = vpop.f32.mrf.mxu1  ;;  %v1118_v53 = vadd.f32 %v1117_v21, %v2637_v15 }
 0x131   :  { %v2814_v23 = vadd.f32 %v1261_v18, %v1213_v19  ;;  %v1167_v24 = vadd.f32 %v1166_v22, %v1118_v53 }
 0x133   :  { %v1299_v26 = vadd.f32 %v2814_v23, %v2811_v14 }
 0x136   :  { %v1215_v27 = vpop.f32.mrf.mxu2  ;;  %v1119_v8 = vpop.f32.mrf.mxu0 }
 0x137   :  { %v1264_v29 = vpop.f32.mrf.mxu3  ;;  %v1216_v30 = vadd.f32 %v1215_v27, %v1167_v24  ;;  %v1168_v31 = vpop.f32.mrf.mxu1  ;;  %v1120_v33 = vadd.f32 %v1119_v8, %v2663_v34 }
 0x139   :  { %v2819_v35 = vadd.f32 %v1264_v29, %v1216_v30  ;;  %v1169_v36 = vadd.f32 %v1168_v31, %v1120_v33 }
 0x13b   :  { %v1300_v37 = vadd.f32 %v1299_v26, %v2819_v35 }
 0x13e   :  { %v1217_v38 = vpop.f32.mrf.mxu2  ;;  %v1122_v40 = vpop.f32.mrf.mxu0 }
 0x13f   :  { %v1266_v15 = vpop.f32.mrf.mxu3  ;;  %v1218_v39 = vadd.f32 %v1217_v38, %v1169_v36  ;;  %v1171_v42 = vpop.f32.mrf.mxu1  ;;  %v1123_v43 = vadd.f32 %v1122_v40, %v2665_v41 }
 0x141   :  { %v2823_v44 = vadd.f32 %v1266_v15, %v1218_v39  ;;  %v1172_v45 = vadd.f32 %v1171_v42, %v1123_v43 }
 0x143   :  { %v1301_v46 = vadd.f32 %v1300_v37, %v2823_v44 }
 0x146   :  { %v1220_v47 = vpop.f32.mrf.mxu2  ;;  %v1124_v49 = vpop.f32.mrf.mxu0 }
 0x147   :  { %v1269_v48 = vpop.f32.mrf.mxu3  ;;  %v1221_v34 = vadd.f32 %v1220_v47, %v1172_v45  ;;  %v1173_v51 = vpop.f32.mrf.mxu1  ;;  %v1125_v55 = vadd.f32 %v1124_v49, %v2691_v61 }
 0x149   :  { %v2826_v52 = vadd.f32 %v1269_v48, %v1221_v34  ;;  %v1174_v57 = vadd.f32 %v1173_v51, %v1125_v55 }
 0x14b   :  { %v1302_v56 = vadd.f32 %v1301_v46, %v2826_v52 }
 0x14e   :  { %v1222_v58 = vpop.f32.mrf.mxu2  ;;  %v1127_v63 = vpop.f32.mrf.mxu0 }
 0x14f   :  { %v1271_v60 = vpop.f32.mrf.mxu3  ;;  %v1223_v41 = vadd.f32 %v1222_v58, %v1174_v57  ;;  %v1176_v0 = vpop.f32.mrf.mxu1  ;;  %v1128_v2 = vadd.f32 %v1127_v63, %v2693_v4 }
 0x151   :  { %v2830_v1 = vadd.f32 %v1271_v60, %v1223_v41  ;;  %v1177_v6 = vadd.f32 %v1176_v0, %v1128_v2 }
 0x153   :  { %v1303_v3 = vadd.f32 %v1302_v56, %v2830_v1 }
 0x156   :  { %v1225_v7 = vpop.f32.mrf.mxu2  ;;  %v1129_v11 = vpop.f32.mrf.mxu0 }
 0x157   :  { %v1274_v9 = vpop.f32.mrf.mxu3  ;;  %v1226_v10 = vadd.f32 %v1225_v7, %v1177_v6  ;;  %v1178_v61 = vpop.f32.mrf.mxu1  ;;  %v1130_v13 = vadd.f32 %v1129_v11, %v2719_v25 }
 0x159   :  { %v2834_v12 = vadd.f32 %v1274_v9, %v1226_v10  ;;  %v1179_v17 = vadd.f32 %v1178_v61, %v1130_v13 }
 0x15b   :  { %v1304_v16 = vadd.f32 %v1303_v3, %v2834_v12 }
 0x15e   :  { %v1227_v18 = vpop.f32.mrf.mxu2  ;;  %v1132_v22 = vpop.f32.mrf.mxu0 }
 0x15f   :  { %v1276_v19 = vpop.f32.mrf.mxu3  ;;  %v1228_v21 = vadd.f32 %v1227_v18, %v1179_v17  ;;  %v1181_v4 = vpop.f32.mrf.mxu1  ;;  %v1133_v24 = vadd.f32 %v1132_v22, %v2721_v32 }
 0x161   :  { %v2838_v53 = vadd.f32 %v1276_v19, %v1228_v21  ;;  %v1182_v27 = vadd.f32 %v1181_v4, %v1133_v24 }
 0x163   :  { %v1305_v26 = vadd.f32 %v1304_v16, %v2838_v53 }
 0x166   :  { %v1230_v29 = vpop.f32.mrf.mxu2  ;;  %v1134_v31 = vpop.f32.mrf.mxu0 }
 0x167   :  { %v1279_v30 = vpop.f32.mrf.mxu3  ;;  %v1231_v8 = vadd.f32 %v1230_v29, %v1182_v27  ;;  %v1183_v25 = vpop.f32.mrf.mxu1  ;;  %v1135_v36 = vadd.f32 %v1134_v31, %v2747_v54 }
 0x169   :  { %v2842_v33 = vadd.f32 %v1279_v30, %v1231_v8  ;;  %v1184_v38 = vadd.f32 %v1183_v25, %v1135_v36  ;;  %v2185_v30 = vmov 128.0  }
 0x16a   :  { %2181 = vrcp.f32 %v2185_v30 }
 0x16b   :  { %v1306_v37 = vadd.f32 %v1305_v26, %v2842_v33 }
 0x16e   :  { %v1232_v15 = vpop.f32.mrf.mxu2  ;;  %v1137_v42 = vpop.f32.mrf.mxu0 }
 0x16f   :  { %v1281_v39 = vpop.f32.mrf.mxu3  ;;  %v1233_v40 = vadd.f32 %v1232_v15, %v1184_v38  ;;  %v1186_v32 = vpop.f32.mrf.mxu1  ;;  %v1138_v45 = vadd.f32 %v1137_v42, %v2749_v62 }
 0x170   :  { %v2182_v38 = vpop.eup %2181 }
 0x171   :  { %v2846_v43 = vadd.f32 %v1281_v39, %v1233_v40  ;;  %v1187_v47 = vadd.f32 %v1186_v32, %v1138_v45  ;;  %v1321_v32 = vmul.f32 128.0, %v2182_v38  ;;  %vm1325_vm0 = vweird.f32 %v2182_v38 }
 0x173   :  { %v1307_v46 = vadd.f32 %v1306_v37, %v2846_v43 }
 0x176   :  { %v1235_v48 = vpop.f32.mrf.mxu2  ;;  %v1139_v51 = vpop.f32.mrf.mxu0 }
 0x177   :  { %v1284_v34 = vpop.f32.mrf.mxu3  ;;  %v1236_v49 = vadd.f32 %v1235_v48, %v1187_v47  ;;  %v1188_v54 = vpop.f32.mrf.mxu1  ;;  %v1140_v56 = vadd.f32 %v1139_v51, %v2775_v20  ;;  %v1322_v47 = vsub.f32 1.0, %v1321_v32 }
 0x179   :  { %v2850_v55 = vadd.f32 %v1284_v34, %v1236_v49  ;;  %v1189_v58 = vadd.f32 %v1188_v54, %v1140_v56  ;;  %v1323_v49 = vmul.f32 %v2182_v38, %v1322_v47 }
 0x17b   :  { %v1308_v57 = vadd.f32 %v1307_v46, %v2850_v55  ;;  %v1324_v56 = vadd.f32 %v2182_v38, %v1323_v49 }
 0x17e   :  { %v1237_v60 = vpop.f32.mrf.mxu2  ;;  %v1142_v0 = vpop.f32.mrf.mxu0 }
 0x17f   :  { %v1286_v41 = vpop.f32.mrf.mxu3  ;;  %v1238_v63 = vadd.f32 %v1237_v60, %v1189_v58  ;;  %v1191_v62 = vpop.f32.mrf.mxu1  ;;  %v1143_v3 = vadd.f32 %v1142_v0, %v2777_v28 }
 0x181   :  { %v2854_v2 = vadd.f32 %v1286_v41, %v1238_v63  ;;  %v1192_v7 = vadd.f32 %v1191_v62, %v1143_v3 }
 0x183   :  { %v1309_v6 = vadd.f32 %v1308_v57, %v2854_v2 }
 0x186   :  { %v1240_v9 = vpop.f32.mrf.mxu2  ;;  %v1144_v61 = vpop.f32.mrf.mxu0 }
 0x187   :  { %v1289_v10 = vpop.f32.mrf.mxu3  ;;  %v1241_v11 = vadd.f32 %v1240_v9, %v1192_v7  ;;  %v1193_v20 = vpop.f32.mrf.mxu1  ;;  %v1145_v16 = vadd.f32 %v1144_v61, %v2803_v50 }
 0x189   :  { %v1290_v13 = vadd.f32 %v1289_v10, %v1241_v11  ;;  %v1194_v18 = vadd.f32 %v1193_v20, %v1145_v16 }
 0x18b   :  { %v1310_v17 = vadd.f32 %v1309_v6, %v1290_v13 }
 0x18e   :  { %v1242_v19 = vpop.f32.mrf.mxu2  ;;  %v1147_v4 = vpop.f32.mrf.mxu0 }
 0x18f   :  { %v1291_v21 = vpop.f32.mrf.mxu3  ;;  %v1243_v22 = vadd.f32 %v1242_v19, %v1194_v18  ;;  %v1148_v28 = vadd.f32 %v1147_v4, %v2805_v59  ;;  %v1196_v26 = vpop.f32.mrf.mxu1 }
 0x191   :  { %v1292_v24 = vadd.f32 %v1291_v21, %v1243_v22  ;;  %v1197_v29 = vadd.f32 %v1196_v26, %v1148_v28 }
 0x193   :  { %v1311_v27 = vadd.f32 %v1310_v17, %v1292_v24 }
 0x196   :  { %v1245_v8 = vpop.f32.mrf.mxu2  ;;  %v1149_v36 = vpop.f32.mrf.mxu0 }
 0x197   :  { %v1294_v31 = vpop.f32.mrf.mxu3  ;;  %v1246_v25 = vadd.f32 %v1245_v8, %v1197_v29  ;;  %v1150_v50 = vadd.f32 %v1149_v36, %v2808_v5  ;;  %v1198_v39 = vpop.f32.mrf.mxu1  ;;  %v1326_v5 = vsel %vm1325_vm0, %v2182_v38, %v1324_v56 }
 0x199   :  { %v1295_v37 = vadd.f32 %v1294_v31, %v1246_v25  ;;  %v1199_v40 = vadd.f32 %v1198_v39, %v1150_v50 }
 0x19b   :  { %v1312_v15 = vadd.f32 %v1311_v27, %v1295_v37 }
 0x19e   :  { %v1247_v42 = vpop.f32.mrf.mxu2 }
 0x19f   :  { %v1248_v45 = vadd.f32 %v1247_v42, %v1199_v40  ;;  %v1296_v59 = vpop.f32.mrf.mxu3 }
 0x1a1   :  { %v1297_v46 = vadd.f32 %v1296_v59, %v1248_v45 }
 0x1a3   :  { %v1313_v48 = vadd.f32 %v1312_v15, %v1297_v46 }
 0x1a5   :  { %v1314_v34 = vrot.slane %v1313_v48, 4 }
 0x1a7   :  { %v1315_v51 = vadd.f32 %v1314_v34, %v1313_v48 }
 0x1a9   :  { %v1316_v54 = vrot.slane %v1315_v51, 2 }
 0x1ab   :  { %v1317_v57 = vadd.f32 %v1316_v54, %v1315_v51 }
 0x1ad   :  { %v1318_v58 = vrot.slane %v1317_v57, 1 }
 0x1af   :  { %v1319_v60 = vadd.f32 %v1318_v58, %v1317_v57 }
 0x1b1   :  { %v1327_v41 = vmul.f32 %v1326_v5, %v1319_v60 }
 0x1b3   :  { %v2862_v63 = vsub.f32 %v2811_v14, %v1327_v41  ;;  %v2865_v0 = vsub.f32 %v2814_v23, %v1327_v41  ;;  %v2868_v62 = vsub.f32 %v2819_v35, %v1327_v41  ;;  %v2871_v3 = vsub.f32 %v2823_v44, %v1327_v41 }
 0x1b4   :  { %v2874_v6 = vsub.f32 %v2826_v52, %v1327_v41  ;;  %v2877_v7 = vsub.f32 %v2830_v1, %v1327_v41  ;;  %v2880_v9 = vsub.f32 %v2834_v12, %v1327_v41  ;;  %v2883_v14 = vsub.f32 %v2838_v53, %v1327_v41 }
 0x1b5   :  { %v2886_v23 = vsub.f32 %v2842_v33, %v1327_v41  ;;  %v2889_v35 = vsub.f32 %v2846_v43, %v1327_v41  ;;  %v2892_v44 = vsub.f32 %v2850_v55, %v1327_v41  ;;  %v2895_v52 = vsub.f32 %v2854_v2, %v1327_v41 }
 0x1b6   :  { %v2897_v1 = vsub.f32 %v1290_v13, %v1327_v41  ;;  %v2899_v10 = vsub.f32 %v1292_v24, %v1327_v41  ;;  %v2901_v12 = vsub.f32 %v1295_v37, %v1327_v41  ;;  %v2903_v53 = vsub.f32 %v1297_v46, %v1327_v41 }
 0x1b7   :  { %v1344_v33 = vmul.f32 %v2862_v63, %v2862_v63  ;;  %v1345_v43 = vmul.f32 %v2865_v0, %v2865_v0  ;;  %v1346_v55 = vmul.f32 %v2868_v62, %v2868_v62  ;;  %v1347_v2 = vmul.f32 %v2871_v3, %v2871_v3 }
 0x1b8   :  { %v1348_v20 = vmul.f32 %v2874_v6, %v2874_v6  ;;  %v1349_v16 = vmul.f32 %v2877_v7, %v2877_v7  ;;  %v1350_v18 = vmul.f32 %v2880_v9, %v2880_v9  ;;  %v1351_v21 = vmul.f32 %v2883_v14, %v2883_v14 }
 0x1b9   :  { %v1360_v11 = vadd.f32 %v1345_v43, %v1344_v33  ;;  %v1352_v4 = vmul.f32 %v2886_v23, %v2886_v23  ;;  %v1353_v28 = vmul.f32 %v2889_v35, %v2889_v35  ;;  %v1354_v27 = vmul.f32 %v2892_v44, %v2892_v44 }
 0x1ba   :  { %v1355_v30 = vmul.f32 %v2895_v52, %v2895_v52  ;;  %v1356_v31 = vmul.f32 %v2897_v1, %v2897_v1  ;;  %v1357_v36 = vmul.f32 %v2899_v10, %v2899_v10  ;;  %v1358_v50 = vmul.f32 %v2901_v12, %v2901_v12 }
 0x1bb   :  { %v1361_v61 = vadd.f32 %v1360_v11, %v1346_v55  ;;  %v1359_v15 = vmul.f32 %v2903_v53, %v2903_v53 }
 0x1bd   :  { %v1362_v13 = vadd.f32 %v1361_v61, %v1347_v2 }
 0x1bf   :  { %v1363_v17 = vadd.f32 %v1362_v13, %v1348_v20 }
 0x1c1   :  { %v1364_v19 = vadd.f32 %v1363_v17, %v1349_v16 }
 0x1c3   :  { %v1365_v22 = vadd.f32 %v1364_v19, %v1350_v18 }
 0x1c5   :  { %v1366_v24 = vadd.f32 %v1365_v22, %v1351_v21 }
 0x1c7   :  { %v1367_v26 = vadd.f32 %v1366_v24, %v1352_v4 }
 0x1c9   :  { %v1368_v29 = vadd.f32 %v1367_v26, %v1353_v28 }
 0x1cb   :  { %v1369_v8 = vadd.f32 %v1368_v29, %v1354_v27 }
 0x1cd   :  { %v1370_v25 = vadd.f32 %v1369_v8, %v1355_v30 }
 0x1cf   :  { %v1371_v37 = vadd.f32 %v1370_v25, %v1356_v31 }
 0x1d1   :  { %v1372_v38 = vadd.f32 %v1371_v37, %v1357_v36 }
 0x1d3   :  { %v1373_v39 = vadd.f32 %v1372_v38, %v1358_v50 }
 0x1d5   :  { %v1374_v40 = vadd.f32 %v1373_v39, %v1359_v15 }
 0x1d7   :  { %v1375_v42 = vrot.slane %v1374_v40, 4 }
 0x1d9   :  { %v1376_v32 = vadd.f32 %v1375_v42, %v1374_v40 }
 0x1db   :  { %v1377_v45 = vrot.slane %v1376_v32, 2 }
 0x1dd   :  { %v1378_v59 = vadd.f32 %v1377_v45, %v1376_v32 }
 0x1df   :  { %v1379_v46 = vrot.slane %v1378_v59, 1 }
 0x1e1   :  { %v1380_v47 = vadd.f32 %v1379_v46, %v1378_v59 }
 0x1e3   :  { %v1381_v48 = vmul.f32 %v1380_v47, %v1326_v5 }
 0x1e5   :  { %v1382_v34 = vadd.f32 1e-05, %v1381_v48 }
 0x1e7   :  { %2183 = vrsqrt.f32 %v1382_v34  ;;  %vm1389_vm2 = vweird.f32 %v1382_v34 }
 0x1ed   :  { %v2184_v49 = vpop.eup %2183 }
 0x1ee   :  { %v1384_v51 = vmul.f32 %v2184_v49, %v1382_v34  ;;  %vm1390_vm1 = vweird.f32 %v2184_v49 }
 0x1ef   :  { %vm1391_vm3 = vmor %vm1389_vm2, %vm1390_vm1 }
 0x1f0   :  { %v1385_v54 = vmul.f32 %v2184_v49, %v1384_v51 }
 0x1f2   :  { %v1386_v56 = vmul.f32 0.5, %v1385_v54 }
 0x1f4   :  { %v1387_v57 = vsub.f32 1.5, %v1386_v56 }
 0x1f6   :  { %v1388_v58 = vmul.f32 %v2184_v49, %v1387_v57 }
 0x1f8   :  { %v1392_v60 = vsel %vm1391_vm3, %v2184_v49, %v1388_v58 }
 0x1f9   :  { %v1393_v41 = vmul.f32 %v1392_v60, %v2862_v63  ;;  %v1394_v33 = vmul.f32 %v1392_v60, %v2865_v0  ;;  %v1395_v43 = vmul.f32 %v1392_v60, %v2868_v62  ;;  %v1396_v5 = vmul.f32 %v1392_v60, %v2871_v3 }
 0x1fa   :  { %v1397_v55 = vmul.f32 %v1392_v60, %v2874_v6  ;;  %v1398_v11 = vmul.f32 %v1392_v60, %v2877_v7  ;;  %v1399_v2 = vmul.f32 %v1392_v60, %v2880_v9  ;;  %v1400_v61 = vmul.f32 %v1392_v60, %v2883_v14 }
 0x1fb   :  { %v1401_v20 = vmul.f32 %v1392_v60, %v2886_v23  ;;  %v1402_v13 = vmul.f32 %v1392_v60, %v2889_v35  ;;  %v1403_v63 = vmul.f32 %v1392_v60, %v2892_v44  ;;  %v1404_v0 = vmul.f32 %v1392_v60, %v2895_v52 }
 0x1fc   :  { %v1405_v62 = vmul.f32 %v1392_v60, %v2897_v1  ;;  %v1406_v3 = vmul.f32 %v1392_v60, %v2899_v10  ;;  %v1407_v6 = vmul.f32 %v1392_v60, %v2901_v12  ;;  %v1408_v7 = vmul.f32 %v1392_v60, %v2903_v53 }
 0x1fd   :  { %vm1409_vm4 = vcmp.gt.f32.partialorder %v1393_v41, 0.0  ;;  %vm1410_vm5 = vcmp.gt.f32.partialorder %v1394_v33, 0.0  ;;  %vm1411_vm6 = vcmp.gt.f32.partialorder %v1395_v43, 0.0  ;;  %vm1412_vm7 = vcmp.gt.f32.partialorder %v1396_v5, 0.0 }
 0x1fe   :  { %vm1413_vm8 = vcmp.gt.f32.partialorder %v1397_v55, 0.0  ;;  %vm1414_vm9 = vcmp.gt.f32.partialorder %v1398_v11, 0.0  ;;  %vm1415_vm10 = vcmp.gt.f32.partialorder %v1399_v2, 0.0  ;;  %vm1416_vm11 = vcmp.gt.f32.partialorder %v1400_v61, 0.0 }
 0x1ff   :  { %vm1417_vm12 = vcmp.gt.f32.partialorder %v1401_v20, 0.0  ;;  %vm1418_vm13 = vcmp.gt.f32.partialorder %v1402_v13, 0.0  ;;  %vm1419_vm14 = vcmp.gt.f32.partialorder %v1403_v63, 0.0  ;;  %vm1420_vm15 = vcmp.gt.f32.partialorder %v1404_v0, 0.0 }
 0x200   :  { %vm1421_vm0 = vcmp.gt.f32.partialorder %v1405_v62, 0.0  ;;  %vm1422_vm1 = vcmp.gt.f32.partialorder %v1406_v3, 0.0  ;;  %vm1423_vm2 = vcmp.gt.f32.partialorder %v1407_v6, 0.0  ;;  %vm1424_vm3 = vcmp.gt.f32.partialorder %v1408_v7, 0.0 }
 0x201   :  { %v1425_v9 = vmul.f32 0.2, %v1393_v41  ;;  %v1426_v14 = vmul.f32 0.2, %v1394_v33  ;;  %v1427_v23 = vmul.f32 0.2, %v1395_v43 }
 0x202   :  { %v1428_v35 = vmul.f32 0.2, %v1396_v5  ;;  %v1429_v44 = vmul.f32 0.2, %v1397_v55  ;;  %v1430_v52 = vmul.f32 0.2, %v1398_v11 }
 0x203   :  { %v1431_v1 = vmul.f32 0.2, %v1399_v2  ;;  %v1432_v10 = vmul.f32 0.2, %v1400_v61  ;;  %v1433_v12 = vmul.f32 0.2, %v1401_v20  ;;  %v1441_v53 = vsel %vm1409_vm4, %v1393_v41, %v1425_v9 }
 0x204   :  { %v1434_v16 = vmul.f32 0.2, %v1402_v13  ;;  %v1435_v17 = vmul.f32 0.2, %v1403_v63  ;;  %v1436_v18 = vmul.f32 0.2, %v1404_v0  ;;  %v1442_v19 = vsel %vm1410_vm5, %v1394_v33, %v1426_v14 }
 0x205   :  { %v1437_v21 = vmul.f32 0.2, %v1405_v62  ;;  %v1438_v22 = vmul.f32 0.2, %v1406_v3  ;;  %v1439_v4 = vmul.f32 0.2, %v1407_v6  ;;  %v1443_v24 = vsel %vm1411_vm6, %v1395_v43, %v1427_v23 }
 0x206   :  { %v1440_v28 = vmul.f32 0.2, %v1408_v7  ;;  %v1444_v26 = vsel %vm1412_vm7, %v1396_v5, %v1428_v35  ;;  %v1445_v27 = vsel %vm1413_vm8, %v1397_v55, %v1429_v44  ;;  %v1446_v29 = vsel %vm1414_vm9, %v1398_v11, %v1430_v52 }
 0x207   :  { %v1447_v30 = vsel %vm1415_vm10, %v1399_v2, %v1431_v1  ;;  %v1448_v8 = vsel %vm1416_vm11, %v1400_v61, %v1432_v10  ;;  %v1449_v31 = vsel %vm1417_vm12, %v1401_v20, %v1433_v12  ;;  %v1450_v25 = vsel %vm1418_vm13, %v1402_v13, %v1434_v16 }
 0x208   :  { %v1451_v36 = vsel %vm1419_vm14, %v1403_v63, %v1435_v17  ;;  %v1452_v37 = vsel %vm1420_vm15, %v1404_v0, %v1436_v18  ;;  %v1453_v50 = vsel %vm1421_vm0, %v1405_v62, %v1437_v21  ;;  %v1454_v38 = vsel %vm1422_vm1, %v1406_v3, %v1438_v22 }
 0x209   :  { %v1455_v15 = vsel %vm1423_vm2, %v1407_v6, %v1439_v4  ;;  %v1456_v39 = vsel %vm1424_vm3, %v1408_v7, %v1440_v28  ;;  %v2136_v40 = vpack.c.bf16 %v1442_v19, %v1441_v53  ;;  %v2141_v42 = vpack.c.bf16 %v1444_v26, %v1443_v24 }
 0x20a   :  { %v2146_v32 = vpack.c.bf16 %v1446_v29, %v1445_v27  ;;  %v2151_v45 = vpack.c.bf16 %v1448_v8, %v1447_v30  ;;  %v2156_v59 = vpack.c.bf16 %v1450_v25, %v1449_v31  ;;  %v2161_v46 = vpack.c.bf16 %v1452_v37, %v1451_v36 }
 0x20b   :  { %2137 = vst [vmem:[%s2995_s2] sm:$0xff] %v2136_v40   ;;  %v2166_v47 = vpack.c.bf16 %v1454_v38, %v1453_v50  ;;  %v2171_v48 = vpack.c.bf16 %v1456_v39, %v1455_v15 }
 0x20c   :  { %2173 = vst [vmem:[%s2995_s2 + $0x8] sm:$0xff] %v2141_v42  }
 0x20d   :  { %2174 = vst [vmem:[%s2995_s2 + $0x10] sm:$0xff] %v2146_v32  }
 0x20e   :  { %2175 = vst [vmem:[%s2995_s2 + $0x18] sm:$0xff] %v2151_v45  }
 0x20f   :  { %2176 = vst [vmem:[%s2995_s2 + $0x20] sm:$0xff] %v2156_v59  }
 0x210   :  { %2177 = vst [vmem:[%s2995_s2 + $0x28] sm:$0xff] %v2161_v46  }
 0x211   :  { %2178 = vst [vmem:[%s2995_s2 + $0x30] sm:$0xff] %v2166_v47  }
 0x212   :  { %2179 = vst [vmem:[%s2995_s2 + $0x38] sm:$0xff] %v2171_v48  }

// kernel: discriminador_forward.7
= control target key start
LH: loop header
LB: loop body
LE: loop exit
PB: predicated region body
PF: predicated region fallthrough
CT: control target
= control target key end

     0   :  { %vm195_vm0 = vcmask 1041408   ;;  %vm197_vm1 = vcmask 1045508   ;;  %vm199_vm2 = vcmask 1043456   ;;  %vm403_vm6 = vcmask 1024   ;;  %s560_s1 = inlined_call_operand.vmem [shape: bf16[1,4096], index: 1, kind: input, shape index: {}]   ;;  %s561_s0 = inlined_call_operand.vmem [shape: bf16[2,4096], index: 0, kind: input, shape index: {}]   ;;  %s562_s2 = inlined_call_operand.vmem [shape: f32[2,1], index: 2, kind: output, shape index: {}]  }
   0x1   :  { %v23_v0 = vld [vmem:[%s560_s1] sm:$0xff]  ;;  %v24_v4 = vld [vmem:[%s560_s1 + $0x8] sm:$0xff]  ;;  %v25_v14 = vld [vmem:[%s560_s1 + $0x10] sm:$0xff] }
   0x2   :  { %v27_v1 = vunpack.c.l.bf16 %v23_v0  ;;  %v28_v2 = vunpack.c.h.bf16 %v23_v0  ;;  %v434_v3 = vld [vmem:[%s561_s0] sm:$0xff]  ;;  %v442_v11 = vld [vmem:[%s561_s0 + $0x8] sm:$0xff]  ;;  %v29_v15 = vunpack.c.l.bf16 %v24_v4  ;;  %v30_v26 = vunpack.c.h.bf16 %v24_v4  ;;  %v26_v28 = vld [vmem:[%s560_s1 + $0x18] sm:$0xff] }
   0x3   :  { %v15_v12 = vunpack.c.l.bf16 %v434_v3  ;;  %v16_v13 = vunpack.c.h.bf16 %v434_v3  ;;  %v17_v24 = vunpack.c.l.bf16 %v442_v11  ;;  %v18_v25 = vunpack.c.h.bf16 %v442_v11 }
   0x4   :  { %v44_v5 = vperm.slane %v27_v1, 2  ;;  %v45_v6 = vperm.slane %v27_v1, 4  ;;  %v46_v7 = vperm.slane %v27_v1, 6  ;;  %v48_v8 = vperm.slane %v28_v2, 2 }
   0x5   :  { %v49_v9 = vperm.slane %v28_v2, 4  ;;  %v50_v10 = vperm.slane %v28_v2, 6  ;;  %v43_v16 = vperm.slane %v27_v1, 0  ;;  %v47_v17 = vperm.slane %v28_v2, 0 }
   0x6   :  { %v108_v18 = vperm.slane %v44_v5, 0  ;;  %v109_v19 = vperm.slane %v45_v6, 0  ;;  %v110_v20 = vperm.slane %v46_v7, 0  ;;  %v112_v21 = vperm.slane %v48_v8, 0 }
   0x7   :  { %v113_v22 = vperm.slane %v49_v9, 0  ;;  %v114_v23 = vperm.slane %v50_v10, 0  ;;  %v451_v27 = vunpack.c.l.bf16 %v25_v14  ;;  %v456_v29 = vunpack.c.h.bf16 %v25_v14 }
   0x8   :  { %v52_v30 = vperm.slane %v29_v15, 2  ;;  %v53_v31 = vperm.slane %v29_v15, 4  ;;  %v54_v32 = vperm.slane %v29_v15, 6  ;;  %v107_v33 = vperm.slane %v43_v16, 0 }
   0x9   :  { %v111_v34 = vperm.slane %v47_v17, 0  ;;  %v171_v35 = vrot.slane %v108_v18, 6  ;;  %v172_v36 = vrot.slane %v109_v19, 4  ;;  %v173_v37 = vrot.slane %v110_v20, 2 }
   0xa   :  { %v174_v38 = vrot.slane %v112_v21, 6  ;;  %v175_v39 = vrot.slane %v113_v22, 4  ;;  %v176_v40 = vrot.slane %v114_v23, 2  ;;  %v458_v41 = vunpack.c.l.bf16 %v26_v28 }
   0xb   :  { %v56_v42 = vperm.slane %v30_v26, 2  ;;  %v57_v43 = vperm.slane %v30_v26, 4  ;;  %v58_v44 = vperm.slane %v30_v26, 6  ;;  %v460_v45 = vunpack.c.h.bf16 %v26_v28 }
   0xc   :  { %v51_v46 = vperm.slane %v29_v15, 0  ;;  %v55_v47 = vperm.slane %v30_v26, 0  ;;  %v59_v48 = vperm.slane %v451_v27, 0  ;;  %v60_v49 = vperm.slane %v451_v27, 2 }
   0xd   :  { %v116_v50 = vperm.slane %v52_v30, 0  ;;  %v117_v51 = vperm.slane %v53_v31, 0  ;;  %v118_v52 = vperm.slane %v54_v32, 0  ;;  %v196_v53 = vsel %vm195_vm0, %v107_v33, %v171_v35 }
   0xe   :  { %v198_v54 = vsel %vm197_vm1, %v172_v36, %v173_v37  ;;  %v201_v55 = vsel %vm195_vm0, %v111_v34, %v174_v38  ;;  %v202_v56 = vsel %vm197_vm1, %v175_v39, %v176_v40  ;;  %v61_v57 = vperm.slane %v451_v27, 4 }
   0xf   :  { %v120_v58 = vperm.slane %v56_v42, 0  ;;  %v121_v59 = vperm.slane %v57_v43, 0  ;;  %v122_v60 = vperm.slane %v58_v44, 0  ;;  %v62_v61 = vperm.slane %v451_v27, 6 }
  0x10   :  { %v63_v62 = vperm.slane %v456_v29, 0  ;;  %v64_v63 = vperm.slane %v456_v29, 2  ;;  %v200_v0 = vsel %vm199_vm2, %v196_v53, %v198_v54  ;;  %v65_v1 = vperm.slane %v456_v29, 4  ;;  %v13_v54 = vld [vmem:[%s561_s0 + $0x10] sm:$0xff] }
  0x11   :  { %v66_v2 = vperm.slane %v456_v29, 6  ;;  %v115_v4 = vperm.slane %v51_v46, 0  ;;  %v203_v5 = vsel %vm199_vm2, %v201_v55, %v202_v56  ;;  %v119_v6 = vperm.slane %v55_v47, 0 }
  0x12   :  { %v177_v7 = vrot.slane %v116_v50, 6  ;;  %v178_v8 = vrot.slane %v117_v51, 4  ;;  %v179_v9 = vrot.slane %v118_v52, 2  ;;  %v180_v10 = vrot.slane %v120_v58, 6 }
  0x13   :  { %v181_v14 = vrot.slane %v121_v59, 4  ;;  %v182_v15 = vrot.slane %v122_v60, 2  ;;  %v230_v16 = vmul.f32 %v200_v0, %v15_v12  ;;  %v67_v17 = vperm.slane %v458_v41, 0 }
  0x14   :  { %v68_v18 = vperm.slane %v458_v41, 2  ;;  %v69_v19 = vperm.slane %v458_v41, 4  ;;  %v231_v20 = vmul.f32 %v203_v5, %v16_v13  ;;  %v70_v21 = vperm.slane %v458_v41, 6 }
  0x15   :  { %v71_v22 = vperm.slane %v460_v45, 0  ;;  %v124_v23 = vperm.slane %v60_v49, 0  ;;  %v125_v26 = vperm.slane %v61_v57, 0  ;;  %246 = vst [vmem:[#allocation1] ss:$4 sm:$0xff] %v230_v16  ;;  %v126_v27 = vperm.slane %v62_v61, 0 }
  0x16   :  { %v128_v28 = vperm.slane %v64_v63, 0  ;;  %v204_v12 = vsel %vm195_vm0, %v115_v4, %v177_v7  ;;  %v205_v29 = vsel %vm197_vm1, %v178_v8, %v179_v9  ;;  %248 = vst [vmem:[#allocation1 + $0x20] ss:$4 sm:$0xff] %v231_v20  ;;  %v129_v30 = vperm.slane %v65_v1, 0 }
  0x17   :  { %v130_v31 = vperm.slane %v66_v2, 0  ;;  %v207_v32 = vsel %vm195_vm0, %v119_v6, %v180_v10  ;;  %v208_v3 = vsel %vm197_vm1, %v181_v14, %v182_v15  ;;  %v72_v13 = vperm.slane %v460_v45, 2 }
  0x18   :  { %v73_v33 = vperm.slane %v460_v45, 4  ;;  %v74_v34 = vperm.slane %v460_v45, 6  ;;  %v123_v35 = vperm.slane %v59_v48, 0  ;;  %v127_v36 = vperm.slane %v63_v62, 0 }
  0x19   :  { %v492_v37 = vperm.slane %v68_v18, 0  ;;  %v494_v38 = vperm.slane %v69_v19, 0  ;;  %v206_v39 = vsel %vm199_vm2, %v204_v12, %v205_v29  ;;  %v497_v40 = vperm.slane %v70_v21, 0 }
  0x1a   :  { %v183_v41 = vrot.slane %v124_v23, 6  ;;  %v184_v42 = vrot.slane %v125_v26, 4  ;;  %v209_v43 = vsel %vm199_vm2, %v207_v32, %v208_v3  ;;  %v185_v44 = vrot.slane %v126_v27, 2 }
  0x1b   :  { %v186_v46 = vrot.slane %v128_v28, 6  ;;  %v187_v47 = vrot.slane %v129_v30, 4  ;;  %v188_v49 = vrot.slane %v130_v31, 2  ;;  %v232_v45 = vmul.f32 %v206_v39, %v17_v24 }
  0x1c   :  { %v249_v48 = vld.sshfl [vmem:[#allocation1] sm:$0xff pattern:$0x73625140]  ;;  %v250_v50 = vld.sshfl [vmem:[#allocation1 + $0x8] sm:$0xff pattern:$0x73625140]  ;;  %v233_v51 = vmul.f32 %v209_v43, %v18_v25  ;;  %v210_v25 = vsel %vm195_vm0, %v123_v35, %v183_v41  ;;  %v211_v62 = vsel %vm197_vm1, %v184_v42, %v185_v44  ;;  %v19_v5 = vunpack.c.l.bf16 %v13_v54 }
  0x1d   :  { %v251_v52 = vld.sshfl [vmem:[#allocation1 + $0x10] sm:$0xff pattern:$0x73625140]  ;;  %v252_v53 = vld.sshfl [vmem:[#allocation1 + $0x18] sm:$0xff pattern:$0x73625140]  ;;  %v213_v1 = vsel %vm195_vm0, %v127_v36, %v186_v46  ;;  %v214_v2 = vsel %vm197_vm1, %v187_v47, %v188_v49  ;;  %v20_v6 = vunpack.c.h.bf16 %v13_v54  ;;  %v212_v14 = vsel %vm199_vm2, %v210_v25, %v211_v62 }
  0x1e   :  { %v253_v55 = vld.sshfl [vmem:[#allocation1 + $0x20] sm:$0xff pattern:$0x73625140]  ;;  %v254_v56 = vld.sshfl [vmem:[#allocation1 + $0x28] sm:$0xff pattern:$0x73625140]  ;;  %v215_v19 = vsel %vm199_vm2, %v213_v1, %v214_v2  ;;  %v234_v27 = vmul.f32 %v212_v14, %v19_v5 }
  0x1f   :  { %v255_v57 = vld.sshfl [vmem:[#allocation1 + $0x30] sm:$0xff pattern:$0x73625140]  ;;  %v256_v58 = vld.sshfl [vmem:[#allocation1 + $0x38] sm:$0xff pattern:$0x73625140]  ;;  %v235_v30 = vmul.f32 %v215_v19, %v20_v6 }
  0x20   :  { %v136_v59 = vperm.slane %v72_v13, 0  ;;  %257 = vst [vmem:[#allocation1] ss:$4 sm:$0xff] %v232_v45  ;;  %v319_v60 = vsel %vm195_vm0, %v249_v48, 0.0  ;;  %v320_v24 = vsel %vm195_vm0, %v250_v50, 0.0  ;;  %v322_v61 = vsel %vm195_vm0, %v251_v52, 0.0 }
  0x21   :  { %v137_v11 = vperm.slane %v73_v33, 0  ;;  %258 = vst [vmem:[#allocation1 + $0x20] ss:$4 sm:$0xff] %v233_v51  ;;  %v321_v63 = vadd.f32 %v320_v24, %v319_v60  ;;  %v138_v0 = vperm.slane %v74_v34, 0  ;;  %v324_v4 = vsel %vm195_vm0, %v252_v53, 0.0  ;;  %v14_v36 = vld [vmem:[%s561_s0 + $0x18] sm:$0xff] }
  0x22   :  { %v131_v7 = vperm.slane %v67_v17, 0  ;;  %v135_v9 = vperm.slane %v71_v22, 0  ;;  %v189_v10 = vrot.slane %v492_v37, 6  ;;  %v326_v15 = vsel %vm195_vm0, %v253_v55, 0.0 }
  0x23   :  { %v323_v8 = vadd.f32 %v322_v61, %v321_v63  ;;  %v190_v16 = vrot.slane %v494_v38, 4  ;;  %v191_v18 = vrot.slane %v497_v40, 2  ;;  %v192_v21 = vrot.slane %v136_v59, 6 }
  0x24   :  { %v193_v23 = vrot.slane %v137_v11, 4  ;;  %v194_v26 = vrot.slane %v138_v0, 2  ;;  %v328_v17 = vsel %vm195_vm0, %v254_v56, 0.0  ;;  %v330_v12 = vsel %vm195_vm0, %v255_v57, 0.0 }
  0x25   :  { %v325_v20 = vadd.f32 %v324_v4, %v323_v8  ;;  %v332_v29 = vsel %vm195_vm0, %v256_v58, 0.0  ;;  %v216_v39 = vsel %vm195_vm0, %v131_v7, %v189_v10  ;;  %v217_v40 = vsel %vm197_vm1, %v190_v16, %v191_v18 }
  0x26   :  { %v219_v42 = vsel %vm195_vm0, %v135_v9, %v192_v21  ;;  %v220_v43 = vsel %vm197_vm1, %v193_v23, %v194_v26  ;;  %v21_v46 = vunpack.c.l.bf16 %v14_v36  ;;  %v22_v49 = vunpack.c.h.bf16 %v14_v36 }
  0x27   :  { %v259_v22 = vld.sshfl [vmem:[#allocation1] sm:$0xff pattern:$0x73625140]  ;;  %v327_v28 = vadd.f32 %v326_v15, %v325_v20  ;;  %v260_v31 = vld.sshfl [vmem:[#allocation1 + $0x8] sm:$0xff pattern:$0x73625140]  ;;  %v218_v45 = vsel %vm199_vm2, %v216_v39, %v217_v40  ;;  %v221_v50 = vsel %vm199_vm2, %v219_v42, %v220_v43 }
  0x28   :  { %v261_v32 = vld.sshfl [vmem:[#allocation1 + $0x10] sm:$0xff pattern:$0x73625140]  ;;  %v262_v3 = vld.sshfl [vmem:[#allocation1 + $0x18] sm:$0xff pattern:$0x73625140]  ;;  %v236_v53 = vmul.f32 %v218_v45, %v21_v46  ;;  %v237_v56 = vmul.f32 %v221_v50, %v22_v49 }
  0x29   :  { %v263_v13 = vld.sshfl [vmem:[#allocation1 + $0x20] sm:$0xff pattern:$0x73625140]  ;;  %v329_v33 = vadd.f32 %v328_v17, %v327_v28  ;;  %v264_v34 = vld.sshfl [vmem:[#allocation1 + $0x28] sm:$0xff pattern:$0x73625140] }
  0x2a   :  { %v265_v35 = vld.sshfl [vmem:[#allocation1 + $0x30] sm:$0xff pattern:$0x73625140]  ;;  %v266_v37 = vld.sshfl [vmem:[#allocation1 + $0x38] sm:$0xff pattern:$0x73625140] }
  0x2b   :  { %267 = vst [vmem:[#allocation1] ss:$4 sm:$0xff] %v234_v27  ;;  %v331_v38 = vadd.f32 %v330_v12, %v329_v33  ;;  %v334_v41 = vsel %vm195_vm0, %v259_v22, 0.0  ;;  %v336_v47 = vsel %vm195_vm0, %v260_v31, 0.0  ;;  %v338_v51 = vsel %vm195_vm0, %v261_v32, 0.0 }
  0x2c   :  { %268 = vst [vmem:[#allocation1 + $0x20] ss:$4 sm:$0xff] %v235_v30  ;;  %v340_v54 = vsel %vm195_vm0, %v262_v3, 0.0  ;;  %v342_v55 = vsel %vm195_vm0, %v263_v13, 0.0  ;;  %v344_v0 = vsel %vm195_vm0, %v264_v34, 0.0  ;;  %v346_v2 = vsel %vm195_vm0, %v265_v35, 0.0 }
  0x2d   :  { %v333_v44 = vadd.f32 %v332_v29, %v331_v38  ;;  %v348_v5 = vsel %vm195_vm0, %v266_v37, 0.0 }
  0x2f   :  { %v335_v48 = vadd.f32 %v334_v41, %v333_v44 }
  0x31   :  { %v337_v52 = vadd.f32 %v336_v47, %v335_v48 }
  0x32   :  { %v269_v57 = vld.sshfl [vmem:[#allocation1] sm:$0xff pattern:$0x73625140]  ;;  %v270_v58 = vld.sshfl [vmem:[#allocation1 + $0x8] sm:$0xff pattern:$0x73625140] }
  0x33   :  { %v271_v59 = vld.sshfl [vmem:[#allocation1 + $0x10] sm:$0xff pattern:$0x73625140]  ;;  %v339_v60 = vadd.f32 %v338_v51, %v337_v52  ;;  %v272_v24 = vld.sshfl [vmem:[#allocation1 + $0x18] sm:$0xff pattern:$0x73625140] }
  0x34   :  { %v273_v61 = vld.sshfl [vmem:[#allocation1 + $0x20] sm:$0xff pattern:$0x73625140]  ;;  %v274_v11 = vld.sshfl [vmem:[#allocation1 + $0x28] sm:$0xff pattern:$0x73625140] }
  0x35   :  { %v275_v25 = vld.sshfl [vmem:[#allocation1 + $0x30] sm:$0xff pattern:$0x73625140]  ;;  %v341_v62 = vadd.f32 %v340_v54, %v339_v60  ;;  %v276_v63 = vld.sshfl [vmem:[#allocation1 + $0x38] sm:$0xff pattern:$0x73625140] }
  0x36   :  { %277 = vst [vmem:[#allocation1] ss:$4 sm:$0xff] %v236_v53  ;;  %v350_v7 = vsel %vm195_vm0, %v269_v57, 0.0  ;;  %v352_v9 = vsel %vm195_vm0, %v270_v58, 0.0  ;;  %v354_v14 = vsel %vm195_vm0, %v271_v59, 0.0  ;;  %v356_v16 = vsel %vm195_vm0, %v272_v24, 0.0 }
  0x37   :  { %278 = vst [vmem:[#allocation1 + $0x20] ss:$4 sm:$0xff] %v237_v56  ;;  %v343_v1 = vadd.f32 %v342_v55, %v341_v62  ;;  %v358_v19 = vsel %vm195_vm0, %v273_v61, 0.0  ;;  %v360_v21 = vsel %vm195_vm0, %v274_v11, 0.0  ;;  %v362_v26 = vsel %vm195_vm0, %v275_v25, 0.0 }
  0x38   :  { %v364_v22 = vsel %vm195_vm0, %v276_v63, 0.0 }
  0x39   :  { %v345_v4 = vadd.f32 %v344_v0, %v343_v1 }
  0x3b   :  { %v347_v6 = vadd.f32 %v346_v2, %v345_v4 }
  0x3d   :  { %v349_v8 = vadd.f32 %v348_v5, %v347_v6  ;;  %v279_v17 = vld.sshfl [vmem:[#allocation1] sm:$0xff pattern:$0x73625140]  ;;  %v280_v28 = vld.sshfl [vmem:[#allocation1 + $0x8] sm:$0xff pattern:$0x73625140] }
  0x3e   :  { %v366_v29 = vsel %vm195_vm0, %v279_v17, 0.0  ;;  %v281_v30 = vld.sshfl [vmem:[#allocation1 + $0x10] sm:$0xff pattern:$0x73625140]  ;;  %v368_v32 = vsel %vm195_vm0, %v280_v28, 0.0 }
  0x3f   :  { %v351_v10 = vadd.f32 %v350_v7, %v349_v8  ;;  %v282_v3 = vld.sshfl [vmem:[#allocation1 + $0x18] sm:$0xff pattern:$0x73625140]  ;;  %v370_v33 = vsel %vm195_vm0, %v281_v30, 0.0 }
  0x40   :  { %v283_v34 = vld.sshfl [vmem:[#allocation1 + $0x20] sm:$0xff pattern:$0x73625140]  ;;  %v372_v36 = vsel %vm195_vm0, %v282_v3, 0.0 }
  0x41   :  { %v353_v15 = vadd.f32 %v352_v9, %v351_v10  ;;  %v284_v37 = vld.sshfl [vmem:[#allocation1 + $0x28] sm:$0xff pattern:$0x73625140]  ;;  %v374_v39 = vsel %vm195_vm0, %v283_v34, 0.0 }
  0x42   :  { %v285_v40 = vld.sshfl [vmem:[#allocation1 + $0x30] sm:$0xff pattern:$0x73625140]  ;;  %v376_v42 = vsel %vm195_vm0, %v284_v37, 0.0 }
  0x43   :  { %v355_v18 = vadd.f32 %v354_v14, %v353_v15  ;;  %v286_v43 = vld.sshfl [vmem:[#allocation1 + $0x38] sm:$0xff pattern:$0x73625140]  ;;  %v378_v46 = vsel %vm195_vm0, %v285_v40, 0.0 }
  0x44   :  { %v380_v49 = vsel %vm195_vm0, %v286_v43, 0.0 }
  0x45   :  { %v357_v20 = vadd.f32 %v356_v16, %v355_v18 }
  0x47   :  { %v359_v23 = vadd.f32 %v358_v19, %v357_v20 }
  0x49   :  { %v361_v27 = vadd.f32 %v360_v21, %v359_v23 }
  0x4b   :  { %v363_v12 = vadd.f32 %v362_v26, %v361_v27 }
  0x4d   :  { %v365_v31 = vadd.f32 %v364_v22, %v363_v12 }
  0x4f   :  { %v367_v13 = vadd.f32 %v366_v29, %v365_v31 }
  0x51   :  { %v369_v35 = vadd.f32 %v368_v32, %v367_v13 }
  0x53   :  { %v371_v38 = vadd.f32 %v370_v33, %v369_v35 }
  0x55   :  { %v373_v41 = vadd.f32 %v372_v36, %v371_v38 }
  0x57   :  { %v375_v44 = vadd.f32 %v374_v39, %v373_v41 }
  0x59   :  { %v377_v47 = vadd.f32 %v376_v42, %v375_v44 }
  0x5b   :  { %v379_v45 = vadd.f32 %v378_v46, %v377_v47 }
  0x5d   :  { %v381_v48 = vadd.f32 %v380_v49, %v379_v45 }
  0x5f   :  { %382 = vadd.xlane.f32.xlu0 %v381_v48 }
  0xd2   :  { %v383_v50 = vpop.xlane.xlu0 %382 }
  0xd3   :  { %v384_v51 = vsub.f32 0.0, %v383_v50 }
  0xd5   :  { %v385_v52 = vmul.f32 1.442695, %v384_v51 }
  0xd7   :  { %409 = vpow2.f32 %v385_v52 }
  0xdd   :  { %v410_v53 = vpop.eup %409 }
  0xde   :  { %v387_v54 = vadd.f32 1.0, %v410_v53 }
  0xe0   :  { %411 = vrcp.f32 %v387_v54  ;;  %v399_v58 = vand.u32 2147483648, %v387_v54  ;;  %v397_v60 = vand.u32 2147483647, %v387_v54  ;;  %vm393_vm4 = vweird.f32 %v387_v54 }
  0xe2   :  { %v400_v61 = vor.u32 1.1754944e-38, %v399_v58  ;;  %vm398_vm7 = vcmp.eq.f32.partialorder %v397_v60, 8.507059e+37 }
  0xe6   :  { %v412_v55 = vpop.eup %411 }
  0xe7   :  { %v389_v56 = vmul.f32 %v412_v55, %v387_v54  ;;  %vm394_vm3 = vweird.f32 %v412_v55 }
  0xe8   :  { %vm395_vm5 = vmor %vm393_vm4, %vm394_vm3 }
  0xe9   :  { %v390_v57 = vsub.f32 1.0, %v389_v56 }
  0xeb   :  { %v391_v59 = vmul.f32 %v412_v55, %v390_v57 }
  0xed   :  { %v392_v24 = vadd.f32 %v412_v55, %v391_v59 }
  0xef   :  { %v396_v11 = vsel %vm395_vm5, %v412_v55, %v392_v24 }
  0xf0   :  { %v401_v25 = vsel %vm398_vm7, %v400_v61, %v396_v11 }
  0xf1   :  { %404 = vst.msk [vmem:[%s562_s2] sm:$0x3] %vm403_vm6, %v401_v25 }

// kernel: discriminador_forward.6
= control target key start
LH: loop header
LB: loop body
LE: loop exit
PB: predicated region body
PF: predicated region fallthrough
CT: control target
= control target key end

     0   :  { %s5871_s1 = inlined_call_operand.vmem [shape: bf16[2048,256], index: 1, kind: input, shape index: {}]   ;;  %s5872_s0 = inlined_call_operand.vmem [shape: bf16[32,2048], index: 0, kind: input, shape index: {}]   ;;  %s5873_s2 = inlined_call_operand.vmem [shape: bf16[32,256], index: 2, kind: output, shape index: {}]  }
   0x1   :  { %v2662_v0 = vld [vmem:[%s5871_s1 + $0x70] sm:$0xf]  ;;  %v3675_v1 = vld [vmem:[%s5871_s1 + $0x74] sm:$0xf0]  ;;  %v2654_v11 = vld [vmem:[%s5871_s1 + $0x60] sm:$0xf] }
   0x2   :  { %v2726_v2 = vld [vmem:[%s5871_s1 + $0xf0] sm:$0xf]  ;;  %v2663_v3 = vor.u32 %v3675_v1, %v2662_v0  ;;  %v3691_v4 = vld [vmem:[%s5871_s1 + $0xf4] sm:$0xf0]  ;;  %v3673_v13 = vld [vmem:[%s5871_s1 + $0x64] sm:$0xf0] }
   0x3   :  { %v2790_v5 = vld [vmem:[%s5871_s1 + $0x170] sm:$0xf]  ;;  %v3707_v6 = vld [vmem:[%s5871_s1 + $0x174] sm:$0xf0]  ;;  %v2727_v7 = vor.u32 %v3691_v4, %v2726_v2  ;;  %v2718_v14 = vld [vmem:[%s5871_s1 + $0xe0] sm:$0xf]  ;;  %v2655_v16 = vor.u32 %v3673_v13, %v2654_v11 }
   0x4   :  { %v2791_v8 = vor.u32 %v3707_v6, %v2790_v5  ;;  %v2854_v9 = vld [vmem:[%s5871_s1 + $0x1f0] sm:$0xf]  ;;  %v3723_v10 = vld [vmem:[%s5871_s1 + $0x1f4] sm:$0xf0]  ;;  %1739 = vmatpush.bf16.msra.mxu0 %v2663_v3  ;;  %v3689_v15 = vld [vmem:[%s5871_s1 + $0xe4] sm:$0xf0] }
   0x5   :  { %v2855_v12 = vor.u32 %v3723_v10, %v2854_v9  ;;  %1758 = vmatpush.bf16.msra.mxu1 %v2727_v7  ;;  %v2719_v17 = vor.u32 %v3689_v15, %v2718_v14  ;;  %v2782_v18 = vld [vmem:[%s5871_s1 + $0x160] sm:$0xf]  ;;  %v3705_v19 = vld [vmem:[%s5871_s1 + $0x164] sm:$0xf0]  ;;  %v2646_v23 = vld [vmem:[%s5871_s1 + $0x50] sm:$0xf] }
   0x6   :  { %1777 = vmatpush.bf16.msra.mxu2 %v2791_v8  ;;  %v2846_v20 = vld [vmem:[%s5871_s1 + $0x1e0] sm:$0xf]  ;;  %v2783_v21 = vor.u32 %v3705_v19, %v2782_v18  ;;  %v3721_v22 = vld [vmem:[%s5871_s1 + $0x1e4] sm:$0xf0]  ;;  %v3671_v24 = vld [vmem:[%s5871_s1 + $0x54] sm:$0xf0] }
   0x7   :  { %1796 = vmatpush.bf16.msra.mxu3 %v2855_v12  ;;  %v2847_v25 = vor.u32 %v3721_v22, %v2846_v20  ;;  %v2710_v26 = vld [vmem:[%s5871_s1 + $0xd0] sm:$0xf]  ;;  %v3687_v27 = vld [vmem:[%s5871_s1 + $0xd4] sm:$0xf0]  ;;  %v2647_v29 = vor.u32 %v3671_v24, %v2646_v23  ;;  %v2638_v35 = vld [vmem:[%s5871_s1 + $0x40] sm:$0xf] }
   0x8   :  { %v2774_v28 = vld [vmem:[%s5871_s1 + $0x150] sm:$0xf]  ;;  %1740 = vmatpush.bf16.msra.mxu0 %v2655_v16  ;;  %v3703_v30 = vld [vmem:[%s5871_s1 + $0x154] sm:$0xf0]  ;;  %v2711_v33 = vor.u32 %v3687_v27, %v2710_v26  ;;  %v3669_v36 = vld [vmem:[%s5871_s1 + $0x44] sm:$0xf0] }
   0x9   :  { %v2838_v31 = vld [vmem:[%s5871_s1 + $0x1d0] sm:$0xf]  ;;  %v3719_v32 = vld [vmem:[%s5871_s1 + $0x1d4] sm:$0xf0]  ;;  %1759 = vmatpush.bf16.msra.mxu1 %v2719_v17  ;;  %v2775_v34 = vor.u32 %v3703_v30, %v2774_v28  ;;  %v2702_v37 = vld [vmem:[%s5871_s1 + $0xc0] sm:$0xf]  ;;  %v2639_v44 = vor.u32 %v3669_v36, %v2638_v35 }
   0xa   :  { %1778 = vmatpush.bf16.msra.mxu2 %v2783_v21  ;;  %v2839_v38 = vor.u32 %v3719_v32, %v2838_v31  ;;  %v3685_v39 = vld [vmem:[%s5871_s1 + $0xc4] sm:$0xf0]  ;;  %v2766_v40 = vld [vmem:[%s5871_s1 + $0x140] sm:$0xf]  ;;  %v2630_v47 = vld [vmem:[%s5871_s1 + $0x30] sm:$0xf] }
   0xb   :  { %1797 = vmatpush.bf16.msra.mxu3 %v2847_v25  ;;  %v3701_v41 = vld [vmem:[%s5871_s1 + $0x144] sm:$0xf0]  ;;  %v2830_v42 = vld [vmem:[%s5871_s1 + $0x1c0] sm:$0xf]  ;;  %v2703_v45 = vor.u32 %v3685_v39, %v2702_v37  ;;  %v3667_v48 = vld [vmem:[%s5871_s1 + $0x34] sm:$0xf0] }
   0xc   :  { %v3717_v43 = vld [vmem:[%s5871_s1 + $0x1c4] sm:$0xf0]  ;;  %1741 = vmatpush.bf16.msra.mxu0 %v2647_v29  ;;  %v2767_v46 = vor.u32 %v3701_v41, %v2766_v40  ;;  %v2694_v49 = vld [vmem:[%s5871_s1 + $0xb0] sm:$0xf]  ;;  %v3683_v51 = vld [vmem:[%s5871_s1 + $0xb4] sm:$0xf0]  ;;  %v2631_v56 = vor.u32 %v3667_v48, %v2630_v47 }
   0xd   :  { %1760 = vmatpush.bf16.msra.mxu1 %v2711_v33  ;;  %v2831_v50 = vor.u32 %v3717_v43, %v2830_v42  ;;  %v2758_v52 = vld [vmem:[%s5871_s1 + $0x130] sm:$0xf]  ;;  %v3699_v53 = vld [vmem:[%s5871_s1 + $0x134] sm:$0xf0]  ;;  %v2695_v57 = vor.u32 %v3683_v51, %v2694_v49  ;;  %v2622_v59 = vld [vmem:[%s5871_s1 + $0x20] sm:$0xf] }
   0xe   :  { %1779 = vmatpush.bf16.msra.mxu2 %v2775_v34  ;;  %v2822_v54 = vld [vmem:[%s5871_s1 + $0x1b0] sm:$0xf]  ;;  %v3715_v55 = vld [vmem:[%s5871_s1 + $0x1b4] sm:$0xf0]  ;;  %v2759_v58 = vor.u32 %v3699_v53, %v2758_v52  ;;  %v3665_v60 = vld [vmem:[%s5871_s1 + $0x24] sm:$0xf0] }
   0xf   :  { %1798 = vmatpush.bf16.msra.mxu3 %v2839_v38  ;;  %v2686_v61 = vld [vmem:[%s5871_s1 + $0xa0] sm:$0xf]  ;;  %v2823_v62 = vor.u32 %v3715_v55, %v2822_v54  ;;  %v3681_v63 = vld [vmem:[%s5871_s1 + $0xa4] sm:$0xf0]  ;;  %v2623_v4 = vor.u32 %v3665_v60, %v2622_v59  ;;  %v2614_v7 = vld [vmem:[%s5871_s1 + $0x10] sm:$0xf] }
  0x10   :  { %1742 = vmatpush.bf16.msra.mxu0 %v2639_v44  ;;  %v2750_v0 = vld [vmem:[%s5871_s1 + $0x120] sm:$0xf]  ;;  %v3697_v1 = vld [vmem:[%s5871_s1 + $0x124] sm:$0xf0]  ;;  %v2687_v5 = vor.u32 %v3681_v63, %v2686_v61  ;;  %v3663_v8 = vld [vmem:[%s5871_s1 + $0x14] sm:$0xf0] }
  0x11   :  { %1761 = vmatpush.bf16.msra.mxu1 %v2703_v45  ;;  %v2814_v2 = vld [vmem:[%s5871_s1 + $0x1a0] sm:$0xf]  ;;  %v3713_v3 = vld [vmem:[%s5871_s1 + $0x1a4] sm:$0xf0]  ;;  %v2751_v6 = vor.u32 %v3697_v1, %v2750_v0  ;;  %v2678_v9 = vld [vmem:[%s5871_s1 + $0x90] sm:$0xf]  ;;  %v2615_v17 = vor.u32 %v3663_v8, %v2614_v7 }
  0x12   :  { %1780 = vmatpush.bf16.msra.mxu2 %v2767_v46  ;;  %v2815_v10 = vor.u32 %v3713_v3, %v2814_v2  ;;  %v3679_v11 = vld [vmem:[%s5871_s1 + $0x94] sm:$0xf0]  ;;  %v2742_v12 = vld [vmem:[%s5871_s1 + $0x110] sm:$0xf]  ;;  %v2606_v16 = vld [vmem:[%s5871_s1] sm:$0xf] }
  0x13   :  { %1799 = vmatpush.bf16.msra.mxu3 %v2831_v50  ;;  %v3695_v13 = vld [vmem:[%s5871_s1 + $0x114] sm:$0xf0]  ;;  %v2806_v14 = vld [vmem:[%s5871_s1 + $0x190] sm:$0xf]  ;;  %v3661_v18 = vld [vmem:[%s5871_s1 + $0x4] sm:$0xf0]  ;;  %v2679_v21 = vor.u32 %v3679_v11, %v2678_v9 }
  0x14   :  { %1743 = vmatpush.bf16.msra.mxu0 %v2631_v56  ;;  %v3711_v15 = vld [vmem:[%s5871_s1 + $0x194] sm:$0xf0]  ;;  %v2670_v19 = vld [vmem:[%s5871_s1 + $0x80] sm:$0xf]  ;;  %v3677_v20 = vld [vmem:[%s5871_s1 + $0x84] sm:$0xf0]  ;;  %v2743_v22 = vor.u32 %v3695_v13, %v2742_v12  ;;  %v2607_v34 = vor.u32 %v3661_v18, %v2606_v16 }
  0x15   :  { %1762 = vmatpush.bf16.msra.mxu1 %v2695_v57  ;;  %v2734_v23 = vld [vmem:[%s5871_s1 + $0x100] sm:$0xf]  ;;  %v3693_v24 = vld [vmem:[%s5871_s1 + $0x104] sm:$0xf0]  ;;  %v2807_v26 = vor.u32 %v3711_v15, %v2806_v14  ;;  %v3628_v30 = vld [vmem:[%s5872_s0 + $0x4] sm:$0xf]  ;;  %v2671_v38 = vor.u32 %v3677_v20, %v2670_v19 }
  0x16   :  { %1781 = vmatpush.bf16.msra.mxu2 %v2759_v58  ;;  %v2798_v25 = vld [vmem:[%s5871_s1 + $0x180] sm:$0xf]  ;;  %v3709_v27 = vld [vmem:[%s5871_s1 + $0x184] sm:$0xf0]  ;;  %v2480_v31 = vld [vmem:[%s5872_s0 + $0x40] sm:$0xf0]  ;;  %v2735_v39 = vor.u32 %v3693_v24, %v2734_v23 }
  0x17   :  { %1800 = vmatpush.bf16.msra.mxu3 %v2823_v62  ;;  %v2478_v28 = vld [vmem:[%s5872_s0] sm:$0xf]  ;;  %v3046_v32 = vld [vmem:[%s5871_s1 + $0x370] sm:$0xf]  ;;  %v3771_v33 = vld [vmem:[%s5871_s1 + $0x374] sm:$0xf0]  ;;  %v2799_v43 = vor.u32 %v3709_v27, %v2798_v25  ;;  %v4187_v53 = vor.u32 %v3628_v30, %v2480_v31 }
  0x18   :  { %1744 = vmatpush.bf16.msra.mxu0 %v2623_v4  ;;  %v3636_v29 = vld [vmem:[%s5872_s0 + $0x3c] sm:$0xf0]  ;;  %v2486_v35 = vld [vmem:[%s5872_s0 + $0x8] sm:$0xf]  ;;  %v2982_v36 = vld [vmem:[%s5871_s1 + $0x2f0] sm:$0xf]  ;;  %v3047_v44 = vor.u32 %v3771_v33, %v3046_v32 }
  0x19   :  { %1763 = vmatpush.bf16.msra.mxu1 %v2687_v5  ;;  %v3755_v37 = vld [vmem:[%s5871_s1 + $0x2f4] sm:$0xf0]  ;;  %v3637_v40 = vld [vmem:[%s5872_s0 + $0x44] sm:$0xf0]  ;;  %v3629_v41 = vld [vmem:[%s5872_s0 + $0xc] sm:$0xf]  ;;  %v4176_v48 = vor.u32 %v3636_v29, %v2478_v28 }
  0x1a   :  { %1782 = vmatpush.bf16.msra.mxu2 %v2751_v6  ;;  %v2488_v42 = vld [vmem:[%s5872_s0 + $0x48] sm:$0xf0]  ;;  %v2918_v45 = vld [vmem:[%s5871_s1 + $0x270] sm:$0xf]  ;;  %v3739_v46 = vld [vmem:[%s5871_s1 + $0x274] sm:$0xf0]  ;;  %v2983_v49 = vor.u32 %v3755_v37, %v2982_v36  ;;  %v4189_v54 = vor.u32 %v3637_v40, %v2486_v35 }
  0x1b   :  { %1801 = vmatpush.bf16.msra.mxu3 %v2815_v10  ;;  %v3110_v47 = vld [vmem:[%s5871_s1 + $0x3f0] sm:$0xf]  ;;  %v3787_v50 = vld [vmem:[%s5871_s1 + $0x3f4] sm:$0xf0]  ;;  %v3038_v51 = vld [vmem:[%s5871_s1 + $0x360] sm:$0xf]  ;;  %v4197_v57 = vor.u32 %v3629_v41, %v2488_v42  ;;  %v2919_v58 = vor.u32 %v3739_v46, %v2918_v45 }
  0x1c   :  { %1745 = vmatpush.bf16.msra.mxu0 %v2615_v17  ;;  %v3769_v52 = vld [vmem:[%s5871_s1 + $0x364] sm:$0xf0]  ;;  %v2974_v55 = vld [vmem:[%s5871_s1 + $0x2e0] sm:$0xf]  ;;  %v3111_v59 = vor.u32 %v3787_v50, %v3110_v47  ;;  %v3030_v2 = vld [vmem:[%s5871_s1 + $0x350] sm:$0xf] }
  0x1d   :  { %1764 = vmatpush.bf16.msra.mxu1 %v2679_v21  ;;  %v3753_v56 = vld [vmem:[%s5871_s1 + $0x2e4] sm:$0xf0]  ;;  %v3039_v60 = vor.u32 %v3769_v52, %v3038_v51  ;;  %v2910_v61 = vld [vmem:[%s5871_s1 + $0x260] sm:$0xf]  ;;  %v3767_v3 = vld [vmem:[%s5871_s1 + $0x354] sm:$0xf0] }
  0x1e   :  { %1783 = vmatpush.bf16.msra.mxu2 %v2743_v22  ;;  %v3737_v62 = vld [vmem:[%s5871_s1 + $0x264] sm:$0xf0]  ;;  %v3102_v63 = vld [vmem:[%s5871_s1 + $0x3e0] sm:$0xf]  ;;  %v2975_v0 = vor.u32 %v3753_v56, %v2974_v55  ;;  %v2966_v4 = vld [vmem:[%s5871_s1 + $0x2d0] sm:$0xf]  ;;  %v3031_v8 = vor.u32 %v3767_v3, %v3030_v2 }
  0x1f   :  { %1802 = vmatpush.bf16.msra.mxu3 %v2807_v26  ;;  %v3785_v1 = vld [vmem:[%s5871_s1 + $0x3e4] sm:$0xf0]  ;;  %v3751_v5 = vld [vmem:[%s5871_s1 + $0x2d4] sm:$0xf0]  ;;  %v2911_v6 = vor.u32 %v3737_v62, %v2910_v61  ;;  %v2902_v9 = vld [vmem:[%s5871_s1 + $0x250] sm:$0xf] }
  0x20   :  { %1746 = vmatpush.bf16.msra.mxu0 %v2607_v34  ;;  %v3103_v7 = vor.u32 %v3785_v1, %v3102_v63  ;;  %v3735_v10 = vld [vmem:[%s5871_s1 + $0x254] sm:$0xf0]  ;;  %v3094_v11 = vld [vmem:[%s5871_s1 + $0x3d0] sm:$0xf]  ;;  %v2967_v12 = vor.u32 %v3751_v5, %v2966_v4  ;;  %v3022_v14 = vld [vmem:[%s5871_s1 + $0x340] sm:$0xf] }
  0x21   :  { %1765 = vmatpush.bf16.msra.mxu1 %v2671_v38  ;;  %v3783_v13 = vld [vmem:[%s5871_s1 + $0x3d4] sm:$0xf0]  ;;  %v3765_v15 = vld [vmem:[%s5871_s1 + $0x344] sm:$0xf0]  ;;  %v2958_v16 = vld [vmem:[%s5871_s1 + $0x2c0] sm:$0xf]  ;;  %v2903_v18 = vor.u32 %v3735_v10, %v2902_v9 }
  0x22   :  { %1784 = vmatpush.bf16.msra.mxu2 %v2735_v39  ;;  %v3749_v17 = vld [vmem:[%s5871_s1 + $0x2c4] sm:$0xf0]  ;;  %v2894_v19 = vld [vmem:[%s5871_s1 + $0x240] sm:$0xf]  ;;  %v3095_v22 = vor.u32 %v3783_v13, %v3094_v11  ;;  %v3023_v23 = vor.u32 %v3765_v15, %v3022_v14  ;;  %v3644_v28 = vld [vmem:[%s5872_s0 + $0x84] sm:$0xf] }
  0x23   :  { %1803 = vmatpush.bf16.msra.mxu3 %v2799_v43  ;;  %1747 = vmatmul.bf16.vlgmr.msra.gmra.mxu0 %v4176_v48  ;;  %v3733_v20 = vld [vmem:[%s5871_s1 + $0x244] sm:$0xf0]  ;;  %v3086_v21 = vld [vmem:[%s5871_s1 + $0x3c0] sm:$0xf]  ;;  %v2959_v27 = vor.u32 %v3749_v17, %v2958_v16  ;;  %v2544_v29 = vld [vmem:[%s5872_s0 + $0xc0] sm:$0xf0] }
  0x24   :  { %1766 = vmatmul.bf16.vlgmr.msra.gmra.mxu1 %v4187_v53  ;;  %1815 = vmatpush.bf16.msrb.mxu0 %v2919_v58  ;;  %v3781_v24 = vld [vmem:[%s5871_s1 + $0x3c4] sm:$0xf0]  ;;  %v2542_v25 = vld [vmem:[%s5872_s0 + $0x80] sm:$0xf]  ;;  %v3014_v30 = vld [vmem:[%s5871_s1 + $0x330] sm:$0xf]  ;;  %v2895_v35 = vor.u32 %v3733_v20, %v2894_v19  ;;  %v4319_v50 = vor.u32 %v3644_v28, %v2544_v29 }
  0x25   :  { %1834 = vmatpush.bf16.msrb.mxu1 %v2983_v49  ;;  %1785 = vmatmul.bf16.vlgmr.msra.gmra.mxu2 %v4189_v54  ;;  %v3652_v26 = vld [vmem:[%s5872_s0 + $0xbc] sm:$0xf0]  ;;  %v3763_v31 = vld [vmem:[%s5871_s1 + $0x334] sm:$0xf0]  ;;  %v2550_v32 = vld [vmem:[%s5872_s0 + $0x88] sm:$0xf]  ;;  %v3087_v39 = vor.u32 %v3781_v24, %v3086_v21 }
  0x26   :  { %1853 = vmatpush.bf16.msrb.mxu2 %v3047_v44  ;;  %1804 = vmatmul.bf16.vlgmr.msra.gmra.mxu3 %v4197_v57  ;;  %v2950_v33 = vld [vmem:[%s5871_s1 + $0x2b0] sm:$0xf]  ;;  %v3747_v34 = vld [vmem:[%s5871_s1 + $0x2b4] sm:$0xf0]  ;;  %v3653_v36 = vld [vmem:[%s5872_s0 + $0xc4] sm:$0xf0]  ;;  %v3015_v40 = vor.u32 %v3763_v31, %v3014_v30  ;;  %v4308_v44 = vor.u32 %v3652_v26, %v2542_v25 }
  0x27   :  { %1872 = vmatpush.bf16.msrb.mxu3 %v3111_v59  ;;  %v3645_v37 = vld [vmem:[%s5872_s0 + $0x8c] sm:$0xf]  ;;  %v2886_v41 = vld [vmem:[%s5871_s1 + $0x230] sm:$0xf]  ;;  %v3731_v42 = vld [vmem:[%s5871_s1 + $0x234] sm:$0xf0]  ;;  %v2951_v45 = vor.u32 %v3747_v34, %v2950_v33  ;;  %v4321_v51 = vor.u32 %v3653_v36, %v2550_v32 }
  0x28   :  { %1816 = vmatpush.bf16.msrb.mxu0 %v2911_v6  ;;  %v2552_v38 = vld [vmem:[%s5872_s0 + $0xc8] sm:$0xf0]  ;;  %v3078_v43 = vld [vmem:[%s5871_s1 + $0x3b0] sm:$0xf]  ;;  %v3779_v46 = vld [vmem:[%s5871_s1 + $0x3b4] sm:$0xf0]  ;;  %v2887_v58 = vor.u32 %v3731_v42, %v2886_v41 }
  0x29   :  { %1835 = vmatpush.bf16.msrb.mxu1 %v2975_v0  ;;  %v3006_v47 = vld [vmem:[%s5871_s1 + $0x320] sm:$0xf]  ;;  %v3761_v49 = vld [vmem:[%s5871_s1 + $0x324] sm:$0xf0]  ;;  %v4329_v56 = vor.u32 %v3645_v37, %v2552_v38  ;;  %v3079_v59 = vor.u32 %v3779_v46, %v3078_v43  ;;  %v2998_v2 = vld [vmem:[%s5871_s1 + $0x310] sm:$0xf] }
  0x2a   :  { %1854 = vmatpush.bf16.msrb.mxu2 %v3039_v60  ;;  %v2942_v52 = vld [vmem:[%s5871_s1 + $0x2a0] sm:$0xf]  ;;  %v3745_v55 = vld [vmem:[%s5871_s1 + $0x2a4] sm:$0xf0]  ;;  %v3007_v60 = vor.u32 %v3761_v49, %v3006_v47  ;;  %v3759_v3 = vld [vmem:[%s5871_s1 + $0x314] sm:$0xf0] }
  0x2b   :  { %1873 = vmatpush.bf16.msrb.mxu3 %v3103_v7  ;;  %v2878_v61 = vld [vmem:[%s5871_s1 + $0x220] sm:$0xf]  ;;  %v3729_v62 = vld [vmem:[%s5871_s1 + $0x224] sm:$0xf0]  ;;  %v2943_v0 = vor.u32 %v3745_v55, %v2942_v52  ;;  %v2934_v4 = vld [vmem:[%s5871_s1 + $0x290] sm:$0xf]  ;;  %v2999_v9 = vor.u32 %v3759_v3, %v2998_v2 }
  0x2c   :  { %1817 = vmatpush.bf16.msrb.mxu0 %v2903_v18  ;;  %v3070_v63 = vld [vmem:[%s5871_s1 + $0x3a0] sm:$0xf]  ;;  %v3777_v1 = vld [vmem:[%s5871_s1 + $0x3a4] sm:$0xf0]  ;;  %v3743_v5 = vld [vmem:[%s5871_s1 + $0x294] sm:$0xf0]  ;;  %v2879_v6 = vor.u32 %v3729_v62, %v2878_v61 }
  0x2d   :  { %1836 = vmatpush.bf16.msrb.mxu1 %v2967_v12  ;;  %v2870_v7 = vld [vmem:[%s5871_s1 + $0x210] sm:$0xf]  ;;  %v3727_v10 = vld [vmem:[%s5871_s1 + $0x214] sm:$0xf0]  ;;  %v2935_v13 = vor.u32 %v3743_v5, %v2934_v4  ;;  %v2990_v14 = vld [vmem:[%s5871_s1 + $0x300] sm:$0xf] }
  0x2e   :  { %1855 = vmatpush.bf16.msrb.mxu2 %v3031_v8  ;;  %v3071_v8 = vor.u32 %v3777_v1, %v3070_v63  ;;  %v3062_v11 = vld [vmem:[%s5871_s1 + $0x390] sm:$0xf]  ;;  %v3775_v12 = vld [vmem:[%s5871_s1 + $0x394] sm:$0xf0]  ;;  %v3757_v15 = vld [vmem:[%s5871_s1 + $0x304] sm:$0xf0]  ;;  %v2871_v20 = vor.u32 %v3727_v10, %v2870_v7 }
  0x2f   :  { %1874 = vmatpush.bf16.msrb.mxu3 %v3095_v22  ;;  %v2926_v16 = vld [vmem:[%s5871_s1 + $0x280] sm:$0xf]  ;;  %v3741_v17 = vld [vmem:[%s5871_s1 + $0x284] sm:$0xf0]  ;;  %v3302_v18 = vld [vmem:[%s5871_s1 + $0x570] sm:$0xf]  ;;  %v3063_v24 = vor.u32 %v3775_v12, %v3062_v11  ;;  %v2991_v25 = vor.u32 %v3757_v15, %v2990_v14 }
  0x30   :  { %1818 = vmatpush.bf16.msrb.mxu0 %v2895_v35  ;;  %v3835_v19 = vld [vmem:[%s5871_s1 + $0x574] sm:$0xf0]  ;;  %v2862_v21 = vld [vmem:[%s5871_s1 + $0x200] sm:$0xf]  ;;  %v3238_v22 = vld [vmem:[%s5871_s1 + $0x4f0] sm:$0xf]  ;;  %v2927_v29 = vor.u32 %v3741_v17, %v2926_v16 }
  0x31   :  { %1837 = vmatpush.bf16.msrb.mxu1 %v2959_v27  ;;  %v3725_v26 = vld [vmem:[%s5871_s1 + $0x204] sm:$0xf0]  ;;  %v3054_v27 = vld [vmem:[%s5871_s1 + $0x380] sm:$0xf]  ;;  %v2494_v30 = vld [vmem:[%s5872_s0 + $0x10] sm:$0xf]  ;;  %v3303_v34 = vor.u32 %v3835_v19, %v3302_v18 }
  0x32   :  { %1856 = vmatpush.bf16.msrb.mxu2 %v3023_v23  ;;  %v3819_v23 = vld [vmem:[%s5871_s1 + $0x4f4] sm:$0xf0]  ;;  %v3773_v28 = vld [vmem:[%s5871_s1 + $0x384] sm:$0xf0]  ;;  %v3638_v31 = vld [vmem:[%s5872_s0 + $0x4c] sm:$0xf0]  ;;  %v2863_v42 = vor.u32 %v3725_v26, %v2862_v21 }
  0x33   :  { %1875 = vmatpush.bf16.msrb.mxu3 %v3087_v39  ;;  %1752 = vmatmul.bf16.gmra.mxu0 %v4308_v44  ;;  %v3630_v32 = vld [vmem:[%s5872_s0 + $0x14] sm:$0xf]  ;;  %v3174_v35 = vld [vmem:[%s5871_s1 + $0x470] sm:$0xf]  ;;  %v3803_v36 = vld [vmem:[%s5871_s1 + $0x474] sm:$0xf0]  ;;  %v3239_v38 = vor.u32 %v3819_v23, %v3238_v22  ;;  %v3055_v47 = vor.u32 %v3773_v28, %v3054_v27 }
  0x34   :  { %1771 = vmatmul.bf16.gmra.mxu1 %v4319_v50  ;;  %1819 = vmatpush.bf16.msrb.mxu0 %v2887_v58  ;;  %v2496_v33 = vld [vmem:[%s5872_s0 + $0x50] sm:$0xf0]  ;;  %v3366_v37 = vld [vmem:[%s5871_s1 + $0x5f0] sm:$0xf]  ;;  %v3851_v39 = vld [vmem:[%s5871_s1 + $0x5f4] sm:$0xf0]  ;;  %v3175_v52 = vor.u32 %v3803_v36, %v3174_v35 }
  0x35   :  { %1838 = vmatpush.bf16.msrb.mxu1 %v2951_v45  ;;  %1790 = vmatmul.bf16.gmra.mxu2 %v4321_v51  ;;  %v3833_v41 = vld [vmem:[%s5871_s1 + $0x564] sm:$0xf0]  ;;  %v2502_v43 = vld [vmem:[%s5872_s0 + $0x18] sm:$0xf]  ;;  %v3631_v46 = vld [vmem:[%s5872_s0 + $0x1c] sm:$0xf]  ;;  %v4466_v1 = vor.u32 %v3630_v32, %v2496_v33 }
  0x36   :  { %1857 = vmatpush.bf16.msrb.mxu2 %v3015_v40  ;;  %1809 = vmatmul.bf16.gmra.mxu3 %v4329_v56  ;;  %v3294_v40 = vld [vmem:[%s5871_s1 + $0x560] sm:$0xf]  ;;  %v3639_v45 = vld [vmem:[%s5872_s0 + $0x54] sm:$0xf0]  ;;  %v2504_v49 = vld [vmem:[%s5872_s0 + $0x58] sm:$0xf0] }
  0x37   :  { %1876 = vmatpush.bf16.msrb.mxu3 %v3079_v59  ;;  %v3166_v55 = vld [vmem:[%s5871_s1 + $0x460] sm:$0xf]  ;;  %v3801_v58 = vld [vmem:[%s5871_s1 + $0x464] sm:$0xf0]  ;;  %v3367_v59 = vor.u32 %v3851_v39, %v3366_v37  ;;  %v3286_v3 = vld [vmem:[%s5871_s1 + $0x550] sm:$0xf]  ;;  %v4477_v5 = vor.u32 %v3639_v45, %v2502_v43 }
  0x38   :  { %1820 = vmatpush.bf16.msrb.mxu0 %v2879_v6  ;;  %v3230_v61 = vld [vmem:[%s5871_s1 + $0x4e0] sm:$0xf]  ;;  %v3817_v62 = vld [vmem:[%s5871_s1 + $0x4e4] sm:$0xf0]  ;;  %v3831_v4 = vld [vmem:[%s5871_s1 + $0x554] sm:$0xf0]  ;;  %v4479_v6 = vor.u32 %v3631_v46, %v2504_v49  ;;  %v3167_v7 = vor.u32 %v3801_v58, %v3166_v55 }
  0x39   :  { %1839 = vmatpush.bf16.msrb.mxu1 %v2943_v0  ;;  %v3358_v63 = vld [vmem:[%s5871_s1 + $0x5e0] sm:$0xf]  ;;  %v4464_v0 = vor.u32 %v3638_v31, %v2494_v30  ;;  %v3849_v2 = vld [vmem:[%s5871_s1 + $0x5e4] sm:$0xf0]  ;;  %v3799_v10 = vld [vmem:[%s5871_s1 + $0x454] sm:$0xf0]  ;;  %v3287_v12 = vor.u32 %v3831_v4, %v3286_v3 }
  0x3a   :  { %1858 = vmatpush.bf16.msrb.mxu2 %v3007_v60  ;;  %v3295_v60 = vor.u32 %v3833_v41, %v3294_v40  ;;  %v3359_v11 = vor.u32 %v3849_v2, %v3358_v63  ;;  %v3815_v14 = vld [vmem:[%s5871_s1 + $0x4d4] sm:$0xf0]  ;;  %v3350_v15 = vld [vmem:[%s5871_s1 + $0x5d0] sm:$0xf]  ;;  %v3278_v17 = vld [vmem:[%s5871_s1 + $0x540] sm:$0xf] }
  0x3b   :  { %1877 = vmatpush.bf16.msrb.mxu3 %v3071_v8  ;;  %v3231_v8 = vor.u32 %v3817_v62, %v3230_v61  ;;  %v3847_v16 = vld [vmem:[%s5871_s1 + $0x5d4] sm:$0xf0]  ;;  %v3829_v18 = vld [vmem:[%s5871_s1 + $0x544] sm:$0xf0]  ;;  %v3150_v21 = vld [vmem:[%s5871_s1 + $0x440] sm:$0xf] }
  0x3c   :  { %1821 = vmatpush.bf16.msrb.mxu0 %v2871_v20  ;;  %v3797_v22 = vld [vmem:[%s5871_s1 + $0x444] sm:$0xf0]  ;;  %v3351_v23 = vor.u32 %v3847_v16, %v3350_v15  ;;  %v3342_v27 = vld [vmem:[%s5871_s1 + $0x5c0] sm:$0xf]  ;;  %v3827_v30 = vld [vmem:[%s5871_s1 + $0x534] sm:$0xf0] }
  0x3d   :  { %1840 = vmatpush.bf16.msrb.mxu1 %v2935_v13  ;;  %v3222_v13 = vld [vmem:[%s5871_s1 + $0x4d0] sm:$0xf]  ;;  %v3813_v26 = vld [vmem:[%s5871_s1 + $0x4c4] sm:$0xf0]  ;;  %v3151_v31 = vor.u32 %v3797_v22, %v3150_v21  ;;  %v2560_v39 = vld [vmem:[%s5872_s0 + $0xd0] sm:$0xf0] }
  0x3e   :  { %1859 = vmatpush.bf16.msrb.mxu2 %v2999_v9  ;;  %v3158_v9 = vld [vmem:[%s5871_s1 + $0x450] sm:$0xf]  ;;  %v3223_v20 = vor.u32 %v3815_v14, %v3222_v13  ;;  %v3845_v28 = vld [vmem:[%s5871_s1 + $0x5c4] sm:$0xf0]  ;;  %v3843_v45 = vld [vmem:[%s5871_s1 + $0x5b4] sm:$0xf0] }
  0x3f   :  { %1878 = vmatpush.bf16.msrb.mxu3 %v3063_v24  ;;  %v3159_v19 = vor.u32 %v3799_v10, %v3158_v9  ;;  %v3279_v24 = vor.u32 %v3829_v18, %v3278_v17  ;;  %v3142_v33 = vld [vmem:[%s5871_s1 + $0x430] sm:$0xf]  ;;  %v3343_v35 = vor.u32 %v3845_v28, %v3342_v27  ;;  %v3262_v46 = vld [vmem:[%s5871_s1 + $0x520] sm:$0xf]  ;;  %v2566_v49 = vld [vmem:[%s5872_s0 + $0x98] sm:$0xf] }
  0x40   :  { %1822 = vmatpush.bf16.msrb.mxu0 %v2863_v42  ;;  %v2558_v36 = vld [vmem:[%s5872_s0 + $0x90] sm:$0xf]  ;;  %v3811_v42 = vld [vmem:[%s5871_s1 + $0x4b4] sm:$0xf0]  ;;  %v3647_v55 = vld [vmem:[%s5872_s0 + $0x9c] sm:$0xf] }
  0x41   :  { %1841 = vmatpush.bf16.msrb.mxu1 %v2927_v29  ;;  %v3270_v29 = vld [vmem:[%s5871_s1 + $0x530] sm:$0xf]  ;;  %v2568_v58 = vld [vmem:[%s5872_s0 + $0xd8] sm:$0xf0]  ;;  %v3134_v61 = vld [vmem:[%s5871_s1 + $0x420] sm:$0xf] }
  0x42   :  { %1860 = vmatpush.bf16.msrb.mxu2 %v2991_v25  ;;  %v3214_v25 = vld [vmem:[%s5871_s1 + $0x4c0] sm:$0xf]  ;;  %v3654_v37 = vld [vmem:[%s5872_s0 + $0xcc] sm:$0xf0]  ;;  %v3271_v40 = vor.u32 %v3827_v30, %v3270_v29  ;;  %v3793_v62 = vld [vmem:[%s5871_s1 + $0x424] sm:$0xf0]  ;;  %v4611_v14 = vor.u32 %v3647_v55, %v2568_v58 }
  0x43   :  { %1879 = vmatpush.bf16.msrb.mxu3 %v3055_v47  ;;  %1823 = vmatmul.bf16.vlgmr.msrb.gmra.mxu0 %v4464_v0  ;;  %v3215_v32 = vor.u32 %v3813_v26, %v3214_v25  ;;  %v3206_v41 = vld [vmem:[%s5871_s1 + $0x4b0] sm:$0xf]  ;;  %v3825_v47 = vld [vmem:[%s5871_s1 + $0x524] sm:$0xf0]  ;;  %v3198_v3 = vld [vmem:[%s5871_s1 + $0x4a0] sm:$0xf]  ;;  %v3135_v15 = vor.u32 %v3793_v62, %v3134_v61 }
  0x44   :  { %1891 = vmatpush.bf16.msra.mxu0 %v3175_v52  ;;  %1842 = vmatmul.bf16.vlgmr.msrb.gmra.mxu1 %v4466_v1  ;;  %v3334_v43 = vld [vmem:[%s5871_s1 + $0x5b0] sm:$0xf]  ;;  %v3655_v52 = vld [vmem:[%s5872_s0 + $0xd4] sm:$0xf0]  ;;  %v3263_v2 = vor.u32 %v3825_v47, %v3262_v46  ;;  %v3809_v4 = vld [vmem:[%s5871_s1 + $0x4a4] sm:$0xf0] }
  0x45   :  { %1910 = vmatpush.bf16.msra.mxu1 %v3239_v38  ;;  %1861 = vmatmul.bf16.vlgmr.msrb.gmra.mxu2 %v4477_v5  ;;  %v3646_v38 = vld [vmem:[%s5872_s0 + $0x94] sm:$0xf]  ;;  %v3335_v63 = vor.u32 %v3843_v45, %v3334_v43  ;;  %v3841_v10 = vld [vmem:[%s5871_s1 + $0x5a4] sm:$0xf0]  ;;  %v4609_v13 = vor.u32 %v3655_v52, %v2566_v49  ;;  %v3199_v16 = vor.u32 %v3809_v4, %v3198_v3  ;;  %v3126_v17 = vld [vmem:[%s5871_s1 + $0x410] sm:$0xf] }
  0x46   :  { %1929 = vmatpush.bf16.msra.mxu2 %v3303_v34  ;;  %1880 = vmatmul.bf16.vlgmr.msrb.gmra.mxu3 %v4479_v6  ;;  %v3795_v34 = vld [vmem:[%s5871_s1 + $0x434] sm:$0xf0]  ;;  %v4598_v9 = vor.u32 %v3646_v38, %v2560_v39  ;;  %v3190_v21 = vld [vmem:[%s5871_s1 + $0x490] sm:$0xf]  ;;  %v3246_v25 = vld [vmem:[%s5871_s1 + $0x500] sm:$0xf] }
  0x47   :  { %1948 = vmatpush.bf16.msra.mxu3 %v3367_v59  ;;  %v3143_v59 = vor.u32 %v3795_v34, %v3142_v33  ;;  %v3791_v18 = vld [vmem:[%s5871_s1 + $0x414] sm:$0xf0]  ;;  %v3821_v26 = vld [vmem:[%s5871_s1 + $0x504] sm:$0xf0]  ;;  %v3558_v27 = vld [vmem:[%s5871_s1 + $0x770] sm:$0xf] }
  0x48   :  { %1892 = vmatpush.bf16.msra.mxu0 %v3167_v7  ;;  %v3326_v7 = vld [vmem:[%s5871_s1 + $0x5a0] sm:$0xf]  ;;  %v3807_v22 = vld [vmem:[%s5871_s1 + $0x494] sm:$0xf0]  ;;  %v3127_v29 = vor.u32 %v3791_v18, %v3126_v17  ;;  %v3837_v38 = vld [vmem:[%s5871_s1 + $0x584] sm:$0xf0] }
  0x49   :  { %1911 = vmatpush.bf16.msra.mxu1 %v3231_v8  ;;  %v4596_v8 = vor.u32 %v3654_v37, %v2558_v36  ;;  %v3899_v28 = vld [vmem:[%s5871_s1 + $0x774] sm:$0xf0]  ;;  %v3191_v30 = vor.u32 %v3807_v22, %v3190_v21  ;;  %v3182_v33 = vld [vmem:[%s5871_s1 + $0x480] sm:$0xf]  ;;  %v3805_v36 = vld [vmem:[%s5871_s1 + $0x484] sm:$0xf0] }
  0x4a   :  { %1930 = vmatpush.bf16.msra.mxu2 %v3295_v60  ;;  %v3207_v60 = vor.u32 %v3811_v42, %v3206_v41  ;;  %v3310_v37 = vld [vmem:[%s5871_s1 + $0x580] sm:$0xf]  ;;  %v3559_v39 = vor.u32 %v3899_v28, %v3558_v27  ;;  %v3867_v41 = vld [vmem:[%s5871_s1 + $0x674] sm:$0xf0]  ;;  %v3494_v42 = vld [vmem:[%s5871_s1 + $0x6f0] sm:$0xf]  ;;  %v3183_v49 = vor.u32 %v3805_v36, %v3182_v33 }
  0x4b   :  { %1949 = vmatpush.bf16.msra.mxu3 %v3359_v11  ;;  %v3254_v11 = vld [vmem:[%s5871_s1 + $0x510] sm:$0xf]  ;;  %v3883_v43 = vld [vmem:[%s5871_s1 + $0x6f4] sm:$0xf0]  ;;  %v3550_v52 = vld [vmem:[%s5871_s1 + $0x760] sm:$0xf]  ;;  %v3311_v58 = vor.u32 %v3837_v38, %v3310_v37 }
  0x4c   :  { %1893 = vmatpush.bf16.msra.mxu0 %v3159_v19  ;;  %v3327_v19 = vor.u32 %v3841_v10, %v3326_v7  ;;  %v3622_v45 = vld [vmem:[%s5871_s1 + $0x7f0] sm:$0xf]  ;;  %v3915_v46 = vld [vmem:[%s5871_s1 + $0x7f4] sm:$0xf0]  ;;  %v3897_v55 = vld [vmem:[%s5871_s1 + $0x764] sm:$0xf0] }
  0x4d   :  { %1912 = vmatpush.bf16.msra.mxu1 %v3223_v20  ;;  %v3632_v61 = vld [vmem:[%s5872_s0 + $0x24] sm:$0xf]  ;;  %v3623_v3 = vor.u32 %v3915_v46, %v3622_v45  ;;  %v3422_v4 = vld [vmem:[%s5871_s1 + $0x660] sm:$0xf]  ;;  %v3865_v7 = vld [vmem:[%s5871_s1 + $0x664] sm:$0xf0] }
  0x4e   :  { %1931 = vmatpush.bf16.msra.mxu2 %v3287_v12  ;;  %v3823_v12 = vld [vmem:[%s5871_s1 + $0x514] sm:$0xf0]  ;;  %v2518_v10 = vld [vmem:[%s5872_s0 + $0x28] sm:$0xf]  ;;  %v3486_v17 = vld [vmem:[%s5871_s1 + $0x6e0] sm:$0xf] }
  0x4f   :  { %1950 = vmatpush.bf16.msra.mxu3 %v3351_v23  ;;  %v3255_v20 = vor.u32 %v3823_v12, %v3254_v11  ;;  %v3318_v23 = vld [vmem:[%s5871_s1 + $0x590] sm:$0xf]  ;;  %v3641_v11 = vld [vmem:[%s5872_s0 + $0x64] sm:$0xf0]  ;;  %v3633_v12 = vld [vmem:[%s5872_s0 + $0x2c] sm:$0xf] }
  0x50   :  { %1894 = vmatpush.bf16.msra.mxu0 %v3151_v31  ;;  %v3118_v31 = vld [vmem:[%s5871_s1 + $0x400] sm:$0xf]  ;;  %v3881_v18 = vld [vmem:[%s5871_s1 + $0x6e4] sm:$0xf0]  ;;  %v3542_v22 = vld [vmem:[%s5871_s1 + $0x750] sm:$0xf]  ;;  %v4747_v28 = vor.u32 %v3641_v11, %v2518_v10 }
  0x51   :  { %1913 = vmatpush.bf16.msra.mxu1 %v3215_v32  ;;  %v3789_v32 = vld [vmem:[%s5871_s1 + $0x404] sm:$0xf0]  ;;  %v3863_v27 = vld [vmem:[%s5871_s1 + $0x654] sm:$0xf0]  ;;  %v3606_v36 = vld [vmem:[%s5871_s1 + $0x7d0] sm:$0xf] }
  0x52   :  { %1932 = vmatpush.bf16.msra.mxu2 %v3279_v24  ;;  %v3839_v24 = vld [vmem:[%s5871_s1 + $0x594] sm:$0xf0]  ;;  %v3119_v47 = vor.u32 %v3789_v32, %v3118_v31  ;;  %v3913_v21 = vld [vmem:[%s5871_s1 + $0x7e4] sm:$0xf0]  ;;  %v3478_v32 = vld [vmem:[%s5871_s1 + $0x6d0] sm:$0xf] }
  0x53   :  { %1951 = vmatpush.bf16.msra.mxu3 %v3343_v35  ;;  %1828 = vmatmul.bf16.gmra.mxu0 %v4596_v8  ;;  %v3319_v34 = vor.u32 %v3839_v24, %v3318_v23  ;;  %v3247_v35 = vor.u32 %v3821_v26, %v3246_v25  ;;  %v3895_v25 = vld [vmem:[%s5871_s1 + $0x754] sm:$0xf0]  ;;  %v3414_v26 = vld [vmem:[%s5871_s1 + $0x650] sm:$0xf]  ;;  %v3534_v38 = vld [vmem:[%s5871_s1 + $0x740] sm:$0xf] }
  0x54   :  { %1895 = vmatpush.bf16.msra.mxu0 %v3143_v59  ;;  %1847 = vmatmul.bf16.gmra.mxu1 %v4598_v9  ;;  %v2510_v59 = vld [vmem:[%s5872_s0 + $0x20] sm:$0xf]  ;;  %v3879_v33 = vld [vmem:[%s5871_s1 + $0x6d4] sm:$0xf0]  ;;  %v3877_v46 = vld [vmem:[%s5871_s1 + $0x6c4] sm:$0xf0] }
  0x55   :  { %1914 = vmatpush.bf16.msra.mxu1 %v3207_v60  ;;  %1866 = vmatmul.bf16.gmra.mxu2 %v4609_v13  ;;  %v3640_v60 = vld [vmem:[%s5872_s0 + $0x5c] sm:$0xf0]  ;;  %v3911_v37 = vld [vmem:[%s5871_s1 + $0x7d4] sm:$0xf0]  ;;  %v3648_v10 = vld [vmem:[%s5872_s0 + $0xa4] sm:$0xf] }
  0x56   :  { %1933 = vmatpush.bf16.msra.mxu2 %v3271_v40  ;;  %1885 = vmatmul.bf16.gmra.mxu3 %v4611_v14  ;;  %v3430_v40 = vld [vmem:[%s5871_s1 + $0x670] sm:$0xf]  ;;  %v4734_v23 = vor.u32 %v3640_v60, %v2510_v59  ;;  %v3470_v45 = vld [vmem:[%s5871_s1 + $0x6c0] sm:$0xf]  ;;  %v3891_v59 = vld [vmem:[%s5871_s1 + $0x734] sm:$0xf0] }
  0x57   :  { %1952 = vmatpush.bf16.msra.mxu3 %v3335_v63  ;;  %v3431_v62 = vor.u32 %v3867_v41, %v3430_v40  ;;  %v2512_v63 = vld [vmem:[%s5872_s0 + $0x60] sm:$0xf0]  ;;  %v3406_v40 = vld [vmem:[%s5871_s1 + $0x640] sm:$0xf]  ;;  %v3861_v41 = vld [vmem:[%s5871_s1 + $0x644] sm:$0xf0] }
  0x58   :  { %1896 = vmatpush.bf16.msra.mxu0 %v3135_v15  ;;  %v3551_v15 = vor.u32 %v3897_v55, %v3550_v52  ;;  %v4736_v24 = vor.u32 %v3632_v61, %v2512_v63  ;;  %v3598_v52 = vld [vmem:[%s5871_s1 + $0x7c0] sm:$0xf]  ;;  %v3909_v55 = vld [vmem:[%s5871_s1 + $0x7c4] sm:$0xf0]  ;;  %v3398_v60 = vld [vmem:[%s5871_s1 + $0x630] sm:$0xf] }
  0x59   :  { %1915 = vmatpush.bf16.msra.mxu1 %v3199_v16  ;;  %v2520_v16 = vld [vmem:[%s5872_s0 + $0x68] sm:$0xf0]  ;;  %v3859_v61 = vld [vmem:[%s5871_s1 + $0x634] sm:$0xf0]  ;;  %v3599_v63 = vor.u32 %v3909_v55, %v3598_v52  ;;  %v2576_v11 = vld [vmem:[%s5872_s0 + $0xe0] sm:$0xf0] }
  0x5a   :  { %1934 = vmatpush.bf16.msra.mxu2 %v3263_v2  ;;  %v3495_v2 = vor.u32 %v3883_v43, %v3494_v42  ;;  %v3479_v42 = vor.u32 %v3879_v33, %v3478_v32  ;;  %v3607_v43 = vor.u32 %v3911_v37, %v3606_v36  ;;  %v3454_v32 = vld [vmem:[%s5871_s1 + $0x6a0] sm:$0xf]  ;;  %v3873_v33 = vld [vmem:[%s5871_s1 + $0x6a4] sm:$0xf0]  ;;  %v3446_v52 = vld [vmem:[%s5871_s1 + $0x690] sm:$0xf] }
  0x5b   :  { %1953 = vmatpush.bf16.msra.mxu3 %v3327_v19  ;;  %v3423_v19 = vor.u32 %v3865_v7, %v3422_v4  ;;  %v2574_v4 = vld [vmem:[%s5872_s0 + $0xa0] sm:$0xf]  ;;  %v3905_v37 = vld [vmem:[%s5871_s1 + $0x7a4] sm:$0xf0]  ;;  %v3871_v55 = vld [vmem:[%s5871_s1 + $0x694] sm:$0xf0] }
  0x5c   :  { %1897 = vmatpush.bf16.msra.mxu0 %v3127_v29  ;;  %v4749_v29 = vor.u32 %v3633_v12, %v2520_v16  ;;  %v3656_v7 = vld [vmem:[%s5872_s0 + $0xdc] sm:$0xf0]  ;;  %v3590_v16 = vld [vmem:[%s5871_s1 + $0x7b0] sm:$0xf] }
  0x5d   :  { %1916 = vmatpush.bf16.msra.mxu1 %v3191_v30  ;;  %v3487_v30 = vor.u32 %v3881_v18, %v3486_v17  ;;  %v3907_v17 = vld [vmem:[%s5871_s1 + $0x7b4] sm:$0xf0]  ;;  %v3518_v18 = vld [vmem:[%s5871_s1 + $0x720] sm:$0xf] }
  0x5e   :  { %1935 = vmatpush.bf16.msra.mxu2 %v3255_v20  ;;  %v3614_v20 = vld [vmem:[%s5871_s1 + $0x7e0] sm:$0xf] }
  0x5f   :  { %1954 = vmatpush.bf16.msra.mxu3 %v3319_v34  ;;  %v3615_v31 = vor.u32 %v3913_v21, %v3614_v20  ;;  %v3543_v34 = vor.u32 %v3895_v25, %v3542_v22  ;;  %v3390_v20 = vld [vmem:[%s5871_s1 + $0x620] sm:$0xf]  ;;  %v3857_v21 = vld [vmem:[%s5871_s1 + $0x624] sm:$0xf0] }
  0x60   :  { %1898 = vmatpush.bf16.msra.mxu0 %v3119_v47  ;;  %v2582_v22 = vld [vmem:[%s5872_s0 + $0xa8] sm:$0xf]  ;;  %v3582_v36 = vld [vmem:[%s5871_s1 + $0x7a0] sm:$0xf] }
  0x61   :  { %1917 = vmatpush.bf16.msra.mxu1 %v3183_v49  ;;  %v3407_v49 = vor.u32 %v3861_v41, %v3406_v40  ;;  %v3657_v25 = vld [vmem:[%s5872_s0 + $0xe4] sm:$0xf0]  ;;  %v4868_v40 = vor.u32 %v3648_v10, %v2576_v11  ;;  %v3887_v41 = vld [vmem:[%s5871_s1 + $0x714] sm:$0xf0]  ;;  %v3674_v10 = vld [vmem:[%s5871_s1 + $0x74] sm:$0xf] }
  0x62   :  { %1936 = vmatpush.bf16.msra.mxu2 %v3247_v35  ;;  %v3415_v35 = vor.u32 %v3863_v27, %v3414_v26  ;;  %v3649_v26 = vld [vmem:[%s5872_s0 + $0xac] sm:$0xf]  ;;  %v2664_v11 = vld [vmem:[%s5871_s1 + $0x78] sm:$0xf0] }
  0x63   :  { %1955 = vmatpush.bf16.msra.mxu3 %v3311_v58  ;;  %1899 = vmatmul.bf16.vlgmr.msra.gmra.mxu0 %v4734_v23  ;;  %v3526_v58 = vld [vmem:[%s5871_s1 + $0x730] sm:$0xf]  ;;  %v2584_v27 = vld [vmem:[%s5872_s0 + $0xe8] sm:$0xf0] }
  0x64   :  { %1967 = vmatpush.bf16.msrb.mxu0 %v3431_v62  ;;  %1918 = vmatmul.bf16.vlgmr.msra.gmra.mxu1 %v4736_v24  ;;  %v3471_v62 = vor.u32 %v3877_v46, %v3470_v45  ;;  %v3527_v12 = vor.u32 %v3891_v59, %v3526_v58  ;;  %v4879_v45 = vor.u32 %v3657_v25, %v2582_v22  ;;  %v3574_v58 = vld [vmem:[%s5871_s1 + $0x790] sm:$0xf]  ;;  %v3690_v22 = vld [vmem:[%s5871_s1 + $0xf4] sm:$0xf]  ;;  %v2728_v25 = vld [vmem:[%s5871_s1 + $0xf8] sm:$0xf0] }
  0x65   :  { %1986 = vmatpush.bf16.msrb.mxu1 %v3495_v2  ;;  %1937 = vmatmul.bf16.vlgmr.msra.gmra.mxu2 %v4747_v28  ;;  %v3462_v2 = vld [vmem:[%s5871_s1 + $0x6b0] sm:$0xf]  ;;  %v4881_v46 = vor.u32 %v3649_v26, %v2584_v27  ;;  %v2667_v27 = vor.u32 %v3674_v10, %v2664_v11 }
  0x66   :  { %2005 = vmatpush.bf16.msrb.mxu2 %v3559_v39  ;;  %v3893_v39 = vld [vmem:[%s5871_s1 + $0x744] sm:$0xf0]  ;;  %1956 = vmatmul.bf16.vlgmr.msra.gmra.mxu3 %v4749_v29 }
  0x67   :  { %2024 = vmatpush.bf16.msrb.mxu3 %v3623_v3  ;;  %v3535_v47 = vor.u32 %v3893_v39, %v3534_v38  ;;  %v3875_v3 = vld [vmem:[%s5871_s1 + $0x6b4] sm:$0xf0]  ;;  %v3510_v38 = vld [vmem:[%s5871_s1 + $0x710] sm:$0xf]  ;;  %v4866_v39 = vor.u32 %v3656_v7, %v2574_v4  ;;  %v3706_v4 = vld [vmem:[%s5871_s1 + $0x174] sm:$0xf] }
  0x68   :  { %1968 = vmatpush.bf16.msrb.mxu0 %v3423_v19  ;;  %v3889_v19 = vld [vmem:[%s5871_s1 + $0x724] sm:$0xf0]  ;;  %v3511_v59 = vor.u32 %v3887_v41, %v3510_v38  ;;  %v2792_v7 = vld [vmem:[%s5871_s1 + $0x178] sm:$0xf0]  ;;  %v2526_v38 = vld [vmem:[%s5872_s0 + $0x30] sm:$0xf] }
  0x69   :  { %1987 = vmatpush.bf16.msrb.mxu1 %v3487_v30  ;;  %v3463_v30 = vor.u32 %v3875_v3, %v3462_v2  ;;  %v3374_v2 = vld [vmem:[%s5871_s1 + $0x600] sm:$0xf]  ;;  %v3853_v3 = vld [vmem:[%s5871_s1 + $0x604] sm:$0xf0]  ;;  %v2795_v26 = vor.u32 %v3706_v4, %v2792_v7  ;;  %v3642_v41 = vld [vmem:[%s5872_s0 + $0x6c] sm:$0xf0] }
  0x6a   :  { %2006 = vmatpush.bf16.msrb.mxu2 %v3551_v15  ;;  %v3399_v15 = vor.u32 %v3859_v61, %v3398_v60  ;;  %v3903_v61 = vld [vmem:[%s5871_s1 + $0x794] sm:$0xf0]  ;;  %v3702_v4 = vld [vmem:[%s5871_s1 + $0x154] sm:$0xf]  ;;  %v2776_v7 = vld [vmem:[%s5871_s1 + $0x158] sm:$0xf0] }
  0x6b   :  { %2025 = vmatpush.bf16.msrb.mxu3 %v3615_v31  ;;  %v3591_v31 = vor.u32 %v3907_v17, %v3590_v16  ;;  %v3438_v16 = vld [vmem:[%s5871_s1 + $0x680] sm:$0xf]  ;;  %v3869_v17 = vld [vmem:[%s5871_s1 + $0x684] sm:$0xf0] }
  0x6c   :  { %1969 = vmatpush.bf16.msrb.mxu0 %v3415_v35  ;;  %v3391_v35 = vor.u32 %v3857_v21, %v3390_v20  ;;  %v3375_v20 = vor.u32 %v3853_v3, %v3374_v2  ;;  %v3901_v21 = vld [vmem:[%s5871_s1 + $0x784] sm:$0xf0]  ;;  %v3635_v2 = vld [vmem:[%s5872_s0 + $0x3c] sm:$0xf] }
  0x6d   :  { %1988 = vmatpush.bf16.msrb.mxu1 %v3479_v42  ;;  %v3382_v42 = vld [vmem:[%s5871_s1 + $0x610] sm:$0xf]  ;;  %v2536_v3 = vld [vmem:[%s5872_s0 + $0x78] sm:$0xf0] }
  0x6e   :  { %2007 = vmatpush.bf16.msrb.mxu2 %v3543_v34  ;;  %v3519_v34 = vor.u32 %v3889_v19, %v3518_v18  ;;  %v3566_v18 = vld [vmem:[%s5871_s1 + $0x780] sm:$0xf] }
  0x6f   :  { %2026 = vmatpush.bf16.msrb.mxu3 %v3607_v43  ;;  %v3855_v43 = vld [vmem:[%s5871_s1 + $0x614] sm:$0xf0] }
  0x70   :  { %1970 = vmatpush.bf16.msrb.mxu0 %v3407_v49  ;;  %v3583_v49 = vor.u32 %v3905_v37, %v3582_v36  ;;  %v3383_v60 = vor.u32 %v3855_v43, %v3382_v42  ;;  %v3439_v36 = vor.u32 %v3869_v17, %v3438_v16  ;;  %v3567_v37 = vor.u32 %v3901_v21, %v3566_v18  ;;  %v3634_v42 = vld [vmem:[%s5872_s0 + $0x34] sm:$0xf]  ;;  %v2840_v21 = vld [vmem:[%s5871_s1 + $0x1d8] sm:$0xf0] }
  0x71   :  { %1989 = vmatpush.bf16.msrb.mxu1 %v3471_v62  ;;  %v3502_v62 = vld [vmem:[%s5871_s1 + $0x700] sm:$0xf]  ;;  %v2528_v43 = vld [vmem:[%s5872_s0 + $0x70] sm:$0xf0]  ;;  %v5010_v17 = vor.u32 %v3642_v41, %v2526_v38  ;;  %v3716_v38 = vld [vmem:[%s5871_s1 + $0x1c4] sm:$0xf] }
  0x72   :  { %2008 = vmatpush.bf16.msrb.mxu2 %v3535_v47  ;;  %v3455_v47 = vor.u32 %v3873_v33, %v3454_v32  ;;  %v3704_v32 = vld [vmem:[%s5871_s1 + $0x164] sm:$0xf]  ;;  %v2784_v33 = vld [vmem:[%s5871_s1 + $0x168] sm:$0xf0]  ;;  %v3686_v16 = vld [vmem:[%s5871_s1 + $0xd4] sm:$0xf]  ;;  %v5012_v18 = vor.u32 %v3634_v42, %v2528_v43 }
  0x73   :  { %2027 = vmatpush.bf16.msrb.mxu3 %v3599_v63  ;;  %v3885_v63 = vld [vmem:[%s5871_s1 + $0x704] sm:$0xf0]  ;;  %1904 = vmatmul.bf16.gmra.mxu0 %v4866_v39  ;;  %v2832_v41 = vld [vmem:[%s5871_s1 + $0x1c8] sm:$0xf0] }
  0x74   :  { %1971 = vmatpush.bf16.msrb.mxu0 %v3399_v15  ;;  %1923 = vmatmul.bf16.gmra.mxu1 %v4868_v40  ;;  %v3575_v15 = vor.u32 %v3903_v61, %v3574_v58  ;;  %v3503_v19 = vor.u32 %v3885_v63, %v3502_v62  ;;  %v2848_v61 = vld [vmem:[%s5871_s1 + $0x1e8] sm:$0xf0]  ;;  %v2534_v62 = vld [vmem:[%s5872_s0 + $0x38] sm:$0xf] }
  0x75   :  { %1990 = vmatpush.bf16.msrb.mxu1 %v3463_v30  ;;  %1942 = vmatmul.bf16.gmra.mxu2 %v4879_v45  ;;  %v3722_v30 = vld [vmem:[%s5871_s1 + $0x1f4] sm:$0xf]  ;;  %v3643_v63 = vld [vmem:[%s5872_s0 + $0x74] sm:$0xf0] }
  0x76   :  { %2009 = vmatpush.bf16.msrb.mxu2 %v3527_v12  ;;  %1961 = vmatmul.bf16.gmra.mxu3 %v4881_v46  ;;  %v3447_v12 = vor.u32 %v3871_v55, %v3446_v52  ;;  %v3688_v52 = vld [vmem:[%s5871_s1 + $0xe4] sm:$0xf]  ;;  %v2787_v55 = vor.u32 %v3704_v32, %v2784_v33 }
  0x77   :  { %2028 = vmatpush.bf16.msrb.mxu3 %v3591_v31  ;;  %v2856_v31 = vld [vmem:[%s5871_s1 + $0x1f8] sm:$0xf0] }
  0x78   :  { %1972 = vmatpush.bf16.msrb.mxu0 %v3391_v35  ;;  %v2656_v35 = vld [vmem:[%s5871_s1 + $0x68] sm:$0xf0] }
  0x79   :  { %1991 = vmatpush.bf16.msrb.mxu1 %v3455_v47  ;;  %v2731_v47 = vor.u32 %v3690_v22, %v2728_v25  ;;  %v5023_v22 = vor.u32 %v3643_v63, %v2534_v62  ;;  %v5025_v25 = vor.u32 %v3635_v2, %v2536_v3  ;;  %v3714_v62 = vld [vmem:[%s5871_s1 + $0x1b4] sm:$0xf]  ;;  %v2824_v63 = vld [vmem:[%s5871_s1 + $0x1b8] sm:$0xf0] }
  0x7a   :  { %2010 = vmatpush.bf16.msrb.mxu2 %v3519_v34  ;;  %v3672_v34 = vld [vmem:[%s5871_s1 + $0x64] sm:$0xf] }
  0x7b   :  { %2029 = vmatpush.bf16.msrb.mxu3 %v3583_v49  ;;  %v2859_v49 = vor.u32 %v3722_v30, %v2856_v31  ;;  %v2659_v58 = vor.u32 %v3672_v34, %v2656_v35  ;;  %v3700_v30 = vld [vmem:[%s5871_s1 + $0x144] sm:$0xf]  ;;  %v2768_v31 = vld [vmem:[%s5871_s1 + $0x148] sm:$0xf0] }
  0x7c   :  { %1973 = vmatpush.bf16.msrb.mxu0 %v3383_v60  ;;  %v3720_v60 = vld [vmem:[%s5871_s1 + $0x1e4] sm:$0xf]  ;;  %v2640_v35 = vld [vmem:[%s5871_s1 + $0x48] sm:$0xf0]  ;;  %v2771_v42 = vor.u32 %v3700_v30, %v2768_v31 }
  0x7d   :  { %1992 = vmatpush.bf16.msrb.mxu1 %v3447_v12  ;;  %v2851_v11 = vor.u32 %v3720_v60, %v2848_v61  ;;  %v3670_v12 = vld [vmem:[%s5871_s1 + $0x54] sm:$0xf]  ;;  %v3668_v34 = vld [vmem:[%s5871_s1 + $0x44] sm:$0xf]  ;;  %v2696_v61 = vld [vmem:[%s5871_s1 + $0xb8] sm:$0xf0] }
  0x7e   :  { %2011 = vmatpush.bf16.msrb.mxu2 %v3511_v59  ;;  %v2720_v59 = vld [vmem:[%s5871_s1 + $0xe8] sm:$0xf0]  ;;  %v2643_v43 = vor.u32 %v3668_v34, %v2640_v35  ;;  %v3682_v60 = vld [vmem:[%s5871_s1 + $0xb4] sm:$0xf]  ;;  %v3712_v30 = vld [vmem:[%s5871_s1 + $0x1a4] sm:$0xf] }
  0x7f   :  { %2030 = vmatpush.bf16.msrb.mxu3 %v3575_v15  ;;  %v2723_v10 = vor.u32 %v3688_v52, %v2720_v59  ;;  %v2648_v15 = vld [vmem:[%s5871_s1 + $0x58] sm:$0xf0]  ;;  %v2816_v31 = vld [vmem:[%s5871_s1 + $0x1a8] sm:$0xf0] }
  0x80   :  { %1974 = vmatpush.bf16.msrb.mxu0 %v3375_v20  ;;  %v3718_v20 = vld [vmem:[%s5871_s1 + $0x1d4] sm:$0xf]  ;;  %v2632_v59 = vld [vmem:[%s5871_s1 + $0x38] sm:$0xf0] }
  0x81   :  { %1993 = vmatpush.bf16.msrb.mxu1 %v3439_v36  ;;  %v2843_v33 = vor.u32 %v3718_v20, %v2840_v21  ;;  %v3684_v36 = vld [vmem:[%s5871_s1 + $0xc4] sm:$0xf]  ;;  %v2624_v21 = vld [vmem:[%s5871_s1 + $0x28] sm:$0xf0]  ;;  %v3651_v34 = vld [vmem:[%s5872_s0 + $0xbc] sm:$0xf] }
  0x82   :  { %2012 = vmatpush.bf16.msrb.mxu2 %v3503_v19  ;;  %v2712_v19 = vld [vmem:[%s5871_s1 + $0xd8] sm:$0xf0]  ;;  %v3664_v20 = vld [vmem:[%s5871_s1 + $0x24] sm:$0xf] }
  0x83   :  { %2031 = vmatpush.bf16.msrb.mxu3 %v3567_v37  ;;  %v2715_v32 = vor.u32 %v3686_v16, %v2712_v19  ;;  %1975 = vmatmul.bf16.vlgmr.msrb.gmra.mxu0 %v5010_v17  ;;  %v2704_v37 = vld [vmem:[%s5871_s1 + $0xc8] sm:$0xf0]  ;;  %v2699_v16 = vor.u32 %v3682_v60, %v2696_v61  ;;  %v2827_v19 = vor.u32 %v3714_v62, %v2824_v63  ;;  %v2600_v35 = vld [vmem:[%s5872_s0 + $0xf8] sm:$0xf0]  ;;  %v3710_v60 = vld [vmem:[%s5871_s1 + $0x194] sm:$0xf] }
  0x84   :  { %2043 = vmatpush.bf16.msra.mxu0 %v2667_v27  ;;  %v2651_v27 = vor.u32 %v3670_v12, %v2648_v15  ;;  %1994 = vmatmul.bf16.vlgmr.msrb.gmra.mxu1 %v5012_v18  ;;  %v2707_v52 = vor.u32 %v3684_v36, %v2704_v37  ;;  %v3650_v12 = vld [vmem:[%s5872_s0 + $0xb4] sm:$0xf]  ;;  %v2627_v37 = vor.u32 %v3664_v20, %v2624_v21  ;;  %v2808_v61 = vld [vmem:[%s5871_s1 + $0x198] sm:$0xf0]  ;;  %v3708_v20 = vld [vmem:[%s5871_s1 + $0x184] sm:$0xf] }
  0x85   :  { %2062 = vmatpush.bf16.msra.mxu1 %v2731_v47  ;;  %2013 = vmatmul.bf16.vlgmr.msrb.gmra.mxu2 %v5023_v22  ;;  %v3698_v47 = vld [vmem:[%s5871_s1 + $0x134] sm:$0xf]  ;;  %v5157_v63 = vor.u32 %v3651_v34, %v2600_v35  ;;  %v2800_v21 = vld [vmem:[%s5871_s1 + $0x188] sm:$0xf0]  ;;  %v2984_v35 = vld [vmem:[%s5871_s1 + $0x2f8] sm:$0xf0] }
  0x86   :  { %2081 = vmatpush.bf16.msra.mxu2 %v2795_v26  ;;  %v2779_v26 = vor.u32 %v3702_v4, %v2776_v7  ;;  %2032 = vmatmul.bf16.vlgmr.msrb.gmra.mxu3 %v5025_v25  ;;  %v3696_v4 = vld [vmem:[%s5871_s1 + $0x124] sm:$0xf]  ;;  %v2752_v7 = vld [vmem:[%s5871_s1 + $0x128] sm:$0xf0]  ;;  %v2592_v15 = vld [vmem:[%s5872_s0 + $0xf0] sm:$0xf0] }
  0x87   :  { %2100 = vmatpush.bf16.msra.mxu3 %v2859_v49  ;;  %v2760_v49 = vld [vmem:[%s5871_s1 + $0x138] sm:$0xf0]  ;;  %v2755_v36 = vor.u32 %v3696_v4, %v2752_v7  ;;  %v2736_v7 = vld [vmem:[%s5871_s1 + $0x108] sm:$0xf0] }
  0x88   :  { %2044 = vmatpush.bf16.msra.mxu0 %v2659_v58  ;;  %v3666_v58 = vld [vmem:[%s5871_s1 + $0x34] sm:$0xf]  ;;  %v2763_v2 = vor.u32 %v3698_v47, %v2760_v49  ;;  %v2616_v49 = vld [vmem:[%s5871_s1 + $0x18] sm:$0xf0] }
  0x89   :  { %2063 = vmatpush.bf16.msra.mxu1 %v2723_v10  ;;  %v2635_v3 = vor.u32 %v3666_v58, %v2632_v59  ;;  %v2590_v10 = vld [vmem:[%s5872_s0 + $0xb0] sm:$0xf]  ;;  %v3662_v47 = vld [vmem:[%s5871_s1 + $0x14] sm:$0xf]  ;;  %v5144_v58 = vor.u32 %v3650_v12, %v2592_v15  ;;  %v2680_v59 = vld [vmem:[%s5871_s1 + $0x98] sm:$0xf0]  ;;  %v2811_v15 = vor.u32 %v3710_v60, %v2808_v61 }
  0x8a   :  { %2082 = vmatpush.bf16.msra.mxu2 %v2787_v55  ;;  %v2835_v55 = vor.u32 %v3716_v38, %v2832_v41  ;;  %v3694_v38 = vld [vmem:[%s5871_s1 + $0x114] sm:$0xf]  ;;  %v2744_v41 = vld [vmem:[%s5871_s1 + $0x118] sm:$0xf0]  ;;  %v2619_v4 = vor.u32 %v3662_v47, %v2616_v49  ;;  %v3768_v47 = vld [vmem:[%s5871_s1 + $0x364] sm:$0xf] }
  0x8b   :  { %2101 = vmatpush.bf16.msra.mxu3 %v2851_v11  ;;  %v3658_v11 = vld [vmem:[%s5872_s0 + $0xec] sm:$0xf0]  ;;  %v3040_v49 = vld [vmem:[%s5871_s1 + $0x368] sm:$0xf0]  ;;  %v3736_v60 = vld [vmem:[%s5871_s1 + $0x264] sm:$0xf] }
  0x8c   :  { %2045 = vmatpush.bf16.msra.mxu0 %v2651_v27  ;;  %v2688_v27 = vld [vmem:[%s5871_s1 + $0xa8] sm:$0xf0] }
  0x8d   :  { %2064 = vmatpush.bf16.msra.mxu1 %v2715_v32  ;;  %v2598_v32 = vld [vmem:[%s5872_s0 + $0xb8] sm:$0xf]  ;;  %v2912_v61 = vld [vmem:[%s5871_s1 + $0x268] sm:$0xf0] }
  0x8e   :  { %2083 = vmatpush.bf16.msra.mxu2 %v2779_v26  ;;  %v3680_v26 = vld [vmem:[%s5871_s1 + $0xa4] sm:$0xf] }
  0x8f   :  { %2102 = vmatpush.bf16.msra.mxu3 %v2843_v33  ;;  %v3659_v33 = vld [vmem:[%s5872_s0 + $0xf4] sm:$0xf0] }
  0x90   :  { %2046 = vmatpush.bf16.msra.mxu0 %v2643_v43  ;;  %v2819_v43 = vor.u32 %v3712_v30, %v2816_v31  ;;  %v5155_v62 = vor.u32 %v3659_v33, %v2598_v32  ;;  %v3738_v30 = vld [vmem:[%s5871_s1 + $0x274] sm:$0xf]  ;;  %v2920_v31 = vld [vmem:[%s5871_s1 + $0x278] sm:$0xf0] }
  0x91   :  { %2065 = vmatpush.bf16.msra.mxu1 %v2707_v52  ;;  %v3678_v52 = vld [vmem:[%s5871_s1 + $0x94] sm:$0xf] }
  0x92   :  { %2084 = vmatpush.bf16.msra.mxu2 %v2771_v42  ;;  %v2691_v42 = vor.u32 %v3680_v26, %v2688_v27  ;;  %v2683_v12 = vor.u32 %v3678_v52, %v2680_v59  ;;  %v3770_v26 = vld [vmem:[%s5871_s1 + $0x374] sm:$0xf]  ;;  %v3048_v27 = vld [vmem:[%s5871_s1 + $0x378] sm:$0xf0] }
  0x93   :  { %2103 = vmatpush.bf16.msra.mxu3 %v2835_v55  ;;  %v5142_v55 = vor.u32 %v3658_v11, %v2590_v10  ;;  %v3660_v10 = vld [vmem:[%s5871_s1 + $0x4] sm:$0xf]  ;;  %v2608_v11 = vld [vmem:[%s5871_s1 + $0x8] sm:$0xf0]  ;;  %v3754_v32 = vld [vmem:[%s5871_s1 + $0x2f4] sm:$0xf] }
  0x94   :  { %2047 = vmatpush.bf16.msra.mxu0 %v2635_v3  ;;  %v2747_v3 = vor.u32 %v3694_v38, %v2744_v41  ;;  %1999 = vmatmul.bf16.gmra.mxu1 %v5144_v58  ;;  %v2611_v34 = vor.u32 %v3660_v10, %v2608_v11  ;;  %v2803_v41 = vor.u32 %v3708_v20, %v2800_v21  ;;  %v3734_v20 = vld [vmem:[%s5871_s1 + $0x254] sm:$0xf]  ;;  %v2904_v21 = vld [vmem:[%s5871_s1 + $0x258] sm:$0xf0] }
  0x95   :  { %2066 = vmatpush.bf16.msra.mxu1 %v2699_v16  ;;  %v3676_v16 = vld [vmem:[%s5871_s1 + $0x84] sm:$0xf]  ;;  %1980 = vmatmul.bf16.gmra.mxu0 %v5142_v55  ;;  %v2987_v52 = vor.u32 %v3754_v32, %v2984_v35  ;;  %v3043_v10 = vor.u32 %v3768_v47, %v3040_v49  ;;  %v2915_v11 = vor.u32 %v3736_v60, %v2912_v61  ;;  %v3096_v32 = vld [vmem:[%s5871_s1 + $0x3d8] sm:$0xf0]  ;;  %v2896_v47 = vld [vmem:[%s5871_s1 + $0x248] sm:$0xf0] }
  0x96   :  { %2085 = vmatpush.bf16.msra.mxu2 %v2763_v2  ;;  %v3692_v2 = vld [vmem:[%s5871_s1 + $0x104] sm:$0xf]  ;;  %2037 = vmatmul.bf16.gmra.mxu3 %v5157_v63  ;;  %v3088_v60 = vld [vmem:[%s5871_s1 + $0x3c8] sm:$0xf0]  ;;  %v3762_v61 = vld [vmem:[%s5871_s1 + $0x334] sm:$0xf] }
  0x97   :  { %2104 = vmatpush.bf16.msra.mxu3 %v2827_v19  ;;  %v2672_v19 = vld [vmem:[%s5871_s1 + $0x88] sm:$0xf0]  ;;  %2018 = vmatmul.bf16.gmra.mxu2 %v5155_v62  ;;  %v2739_v33 = vor.u32 %v3692_v2, %v2736_v7  ;;  %v3752_v2 = vld [vmem:[%s5871_s1 + $0x2e4] sm:$0xf] }
  0x98   :  { %2048 = vmatpush.bf16.msra.mxu0 %v2627_v37  ;;  %v3112_v37 = vld [vmem:[%s5871_s1 + $0x3f8] sm:$0xf0]  ;;  %v2675_v38 = vor.u32 %v3676_v16, %v2672_v19  ;;  %v3104_v7 = vld [vmem:[%s5871_s1 + $0x3e8] sm:$0xf0]  ;;  %v3766_v16 = vld [vmem:[%s5871_s1 + $0x354] sm:$0xf] }
  0x99   :  { %2067 = vmatpush.bf16.msra.mxu1 %v2691_v42  ;;  %v3051_v42 = vor.u32 %v3770_v26, %v3048_v27  ;;  %v3032_v19 = vld [vmem:[%s5871_s1 + $0x358] sm:$0xf0]  ;;  %v3750_v26 = vld [vmem:[%s5871_s1 + $0x2d4] sm:$0xf]  ;;  %v3748_v49 = vld [vmem:[%s5871_s1 + $0x2c4] sm:$0xf] }
  0x9a   :  { %2086 = vmatpush.bf16.msra.mxu2 %v2755_v36  ;;  %v3786_v36 = vld [vmem:[%s5871_s1 + $0x3f4] sm:$0xf]  ;;  %v3035_v35 = vor.u32 %v3766_v16, %v3032_v19  ;;  %v2952_v16 = vld [vmem:[%s5871_s1 + $0x2b8] sm:$0xf0] }
  0x9b   :  { %2105 = vmatpush.bf16.msra.mxu3 %v2819_v43  ;;  %v2923_v43 = vor.u32 %v3738_v30, %v2920_v31  ;;  %v3115_v59 = vor.u32 %v3786_v36, %v3112_v37  ;;  %v2968_v30 = vld [vmem:[%s5871_s1 + $0x2d8] sm:$0xf0]  ;;  %v3782_v31 = vld [vmem:[%s5871_s1 + $0x3d4] sm:$0xf]  ;;  %v2907_v36 = vor.u32 %v3734_v20, %v2904_v21  ;;  %v3764_v37 = vld [vmem:[%s5871_s1 + $0x344] sm:$0xf] }
  0x9c   :  { %2049 = vmatpush.bf16.msra.mxu0 %v2619_v4  ;;  %v3784_v4 = vld [vmem:[%s5871_s1 + $0x3e4] sm:$0xf]  ;;  %v3778_v19 = vld [vmem:[%s5871_s1 + $0x3b4] sm:$0xf]  ;;  %v3080_v20 = vld [vmem:[%s5871_s1 + $0x3b8] sm:$0xf0] }
  0x9d   :  { %2068 = vmatpush.bf16.msra.mxu1 %v2683_v12 }
  0x9e   :  { %2087 = vmatpush.bf16.msra.mxu2 %v2747_v3  ;;  %v2976_v3 = vld [vmem:[%s5871_s1 + $0x2e8] sm:$0xf0] }
  0x9f   :  { %2106 = vmatpush.bf16.msra.mxu3 %v2811_v15  ;;  %v2979_v12 = vor.u32 %v3752_v2, %v2976_v3  ;;  %v3107_v15 = vor.u32 %v3784_v4, %v3104_v7  ;;  %v3016_v2 = vld [vmem:[%s5871_s1 + $0x338] sm:$0xf0] }
  0xa0   :  { %2050 = vmatpush.bf16.msra.mxu0 %v2611_v34  ;;  %v1748_v27 = vpop.f32.mrf.mxu0 }
  0xa1   :  { %2069 = vmatpush.bf16.msra.mxu1 %v2675_v38  ;;  %v3024_v38 = vld [vmem:[%s5871_s1 + $0x348] sm:$0xf0] }
  0xa2   :  { %2088 = vmatpush.bf16.msra.mxu2 %v2739_v33  ;;  %v1767_v33 = vpop.f32.mrf.mxu1 }
  0xa3   :  { %2107 = vmatpush.bf16.msra.mxu3 %v2803_v41  ;;  %v1768_v34 = vadd.f32 %v1767_v33, %v1748_v27  ;;  %v2971_v41 = vor.u32 %v3750_v26, %v2968_v30  ;;  %v3019_v26 = vor.u32 %v3762_v61, %v3016_v2  ;;  %v3008_v33 = vld [vmem:[%s5871_s1 + $0x328] sm:$0xf0]  ;;  %v3726_v61 = vld [vmem:[%s5871_s1 + $0x214] sm:$0xf]  ;;  %v2872_v2 = vld [vmem:[%s5871_s1 + $0x218] sm:$0xf0] }
  0xa4   :  { %2119 = vmatpush.bf16.msrb.mxu0 %v2923_v43  ;;  %v3732_v43 = vld [vmem:[%s5871_s1 + $0x244] sm:$0xf]  ;;  %2070 = vmatmul.bf16.vlgmr.msra.gmra.mxu1 %v4187_v53 }
  0xa5   :  { %2138 = vmatpush.bf16.msrb.mxu1 %v2987_v52  ;;  %2051 = vmatmul.bf16.vlgmr.msra.gmra.mxu0 %v4176_v48  ;;  %v2960_v52 = vld [vmem:[%s5871_s1 + $0x2c8] sm:$0xf0]  ;;  %v3027_v48 = vor.u32 %v3764_v37, %v3024_v38  ;;  %v2899_v53 = vor.u32 %v3732_v43, %v2896_v47  ;;  %v3744_v38 = vld [vmem:[%s5871_s1 + $0x2a4] sm:$0xf] }
  0xa6   :  { %2157 = vmatpush.bf16.msrb.mxu2 %v3051_v42  ;;  %v3099_v42 = vor.u32 %v3782_v31, %v3096_v32  ;;  %2108 = vmatmul.bf16.vlgmr.msra.gmra.mxu3 %v4197_v57  ;;  %v2963_v4 = vor.u32 %v3748_v49, %v2960_v52  ;;  %v2888_v57 = vld [vmem:[%s5871_s1 + $0x238] sm:$0xf0]  ;;  %v3760_v32 = vld [vmem:[%s5871_s1 + $0x324] sm:$0xf]  ;;  %v2880_v37 = vld [vmem:[%s5871_s1 + $0x228] sm:$0xf0] }
  0xa7   :  { %2176 = vmatpush.bf16.msrb.mxu3 %v3115_v59  ;;  %v3780_v59 = vld [vmem:[%s5871_s1 + $0x3c4] sm:$0xf]  ;;  %2089 = vmatmul.bf16.vlgmr.msra.gmra.mxu2 %v4189_v54  ;;  %v3730_v54 = vld [vmem:[%s5871_s1 + $0x234] sm:$0xf]  ;;  %v3072_v43 = vld [vmem:[%s5871_s1 + $0x3a8] sm:$0xf0]  ;;  %v3011_v47 = vor.u32 %v3760_v32, %v3008_v33 }
  0xa8   :  { %2120 = vmatpush.bf16.msrb.mxu0 %v2915_v11  ;;  %v1786_v3 = vpop.f32.mrf.mxu2  ;;  %v3091_v7 = vor.u32 %v3780_v59, %v3088_v60  ;;  %v2891_v31 = vor.u32 %v3730_v54, %v2888_v57  ;;  %v3758_v52 = vld [vmem:[%s5871_s1 + $0x314] sm:$0xf]  ;;  %v3000_v59 = vld [vmem:[%s5871_s1 + $0x318] sm:$0xf0] }
  0xa9   :  { %2139 = vmatpush.bf16.msrb.mxu1 %v2979_v12  ;;  %v1787_v11 = vadd.f32 %v1786_v3, %v1768_v34  ;;  %v1805_v12 = vpop.f32.mrf.mxu3  ;;  %v3742_v3 = vld [vmem:[%s5871_s1 + $0x294] sm:$0xf]  ;;  %v2936_v57 = vld [vmem:[%s5871_s1 + $0x298] sm:$0xf0] }
  0xaa   :  { %2158 = vmatpush.bf16.msrb.mxu2 %v3043_v10  ;;  %v3746_v10 = vld [vmem:[%s5871_s1 + $0x2b4] sm:$0xf]  ;;  %v1769_v21 = vpop.f32.mrf.mxu1  ;;  %v2939_v32 = vor.u32 %v3742_v3, %v2936_v57 }
  0xab   :  { %2177 = vmatpush.bf16.msrb.mxu3 %v3107_v15  ;;  %v1750_v15 = vpop.f32.mrf.mxu0  ;;  %v5311_v27 = vadd.f32 %v1805_v12, %v1787_v11  ;;  %v2955_v34 = vor.u32 %v3746_v10, %v2952_v16  ;;  %v3774_v10 = vld [vmem:[%s5871_s1 + $0x394] sm:$0xf]  ;;  %v3064_v11 = vld [vmem:[%s5871_s1 + $0x398] sm:$0xf0]  ;;  %v3756_v16 = vld [vmem:[%s5871_s1 + $0x304] sm:$0xf] }
  0xac   :  { %2121 = vmatpush.bf16.msrb.mxu0 %v2907_v36  ;;  %v1770_v30 = vadd.f32 %v1769_v21, %v1750_v15  ;;  %v3728_v36 = vld [vmem:[%s5871_s1 + $0x224] sm:$0xf]  ;;  %v3003_v15 = vor.u32 %v3758_v52, %v3000_v59  ;;  %v2875_v21 = vor.u32 %v3726_v61, %v2872_v2  ;;  %v3067_v33 = vor.u32 %v3774_v10, %v3064_v11 }
  0xad   :  { %2140 = vmatpush.bf16.msrb.mxu1 %v2971_v41  ;;  %v2944_v41 = vld [vmem:[%s5871_s1 + $0x2a8] sm:$0xf0]  ;;  %v2883_v49 = vor.u32 %v3728_v36, %v2880_v37  ;;  %v3772_v36 = vld [vmem:[%s5871_s1 + $0x384] sm:$0xf] }
  0xae   :  { %2159 = vmatpush.bf16.msrb.mxu2 %v3035_v35  ;;  %v3083_v35 = vor.u32 %v3778_v19, %v3080_v20  ;;  %v3056_v37 = vld [vmem:[%s5871_s1 + $0x388] sm:$0xf0]  ;;  %v3800_v11 = vld [vmem:[%s5871_s1 + $0x464] sm:$0xf] }
  0xaf   :  { %2178 = vmatpush.bf16.msrb.mxu3 %v3099_v42  ;;  %v3776_v42 = vld [vmem:[%s5871_s1 + $0x3a4] sm:$0xf] }
  0xb0   :  { %2122 = vmatpush.bf16.msrb.mxu0 %v2899_v53  ;;  %v1788_v60 = vpop.f32.mrf.mxu2  ;;  %v3075_v53 = vor.u32 %v3776_v42, %v3072_v43  ;;  %v3818_v42 = vld [vmem:[%s5871_s1 + $0x4f4] sm:$0xf] }
  0xb1   :  { %2141 = vmatpush.bf16.msrb.mxu1 %v2963_v4  ;;  %v1789_v4 = vadd.f32 %v1788_v60, %v1770_v30  ;;  %v3724_v30 = vld [vmem:[%s5871_s1 + $0x204] sm:$0xf]  ;;  %v3059_v60 = vor.u32 %v3772_v36, %v3056_v37  ;;  %v3288_v36 = vld [vmem:[%s5871_s1 + $0x558] sm:$0xf0] }
  0xb2   :  { %2160 = vmatpush.bf16.msrb.mxu2 %v3027_v48  ;;  %v2947_v48 = vor.u32 %v3744_v38, %v2944_v41  ;;  %v1772_v12 = vpop.f32.mrf.mxu1  ;;  %v3834_v38 = vld [vmem:[%s5871_s1 + $0x574] sm:$0xf]  ;;  %v3304_v41 = vld [vmem:[%s5871_s1 + $0x578] sm:$0xf0] }
  0xb3   :  { %2179 = vmatpush.bf16.msrb.mxu3 %v3091_v7  ;;  %v1807_v7 = vpop.f32.mrf.mxu3  ;;  %v1753_v54 = vpop.f32.mrf.mxu0  ;;  %v3307_v2 = vor.u32 %v3834_v38, %v3304_v41  ;;  %v3798_v38 = vld [vmem:[%s5871_s1 + $0x454] sm:$0xf]  ;;  %v3160_v41 = vld [vmem:[%s5871_s1 + $0x458] sm:$0xf0] }
  0xb4   :  { %2123 = vmatpush.bf16.msrb.mxu0 %v2891_v31  ;;  %v5364_v19 = vadd.f32 %v1807_v7, %v1789_v4  ;;  %v1773_v20 = vadd.f32 %v1772_v12, %v1753_v54  ;;  %v2864_v31 = vld [vmem:[%s5871_s1 + $0x208] sm:$0xf0]  ;;  %2075 = vmatmul.bf16.gmra.mxu1 %v4319_v50  ;;  %v3176_v50 = vld [vmem:[%s5871_s1 + $0x478] sm:$0xf0]  ;;  %v3832_v4 = vld [vmem:[%s5871_s1 + $0x564] sm:$0xf] }
  0xb5   :  { %2142 = vmatpush.bf16.msrb.mxu1 %v2955_v34  ;;  %v3740_v34 = vld [vmem:[%s5871_s1 + $0x284] sm:$0xf]  ;;  %2056 = vmatmul.bf16.gmra.mxu0 %v4308_v44  ;;  %v3802_v44 = vld [vmem:[%s5871_s1 + $0x474] sm:$0xf]  ;;  %v3296_v7 = vld [vmem:[%s5871_s1 + $0x568] sm:$0xf0] }
  0xb6   :  { %2161 = vmatpush.bf16.msrb.mxu2 %v3019_v26  ;;  %v2992_v26 = vld [vmem:[%s5871_s1 + $0x308] sm:$0xf0]  ;;  %2113 = vmatmul.bf16.gmra.mxu3 %v4329_v56  ;;  %v3850_v56 = vld [vmem:[%s5871_s1 + $0x5f4] sm:$0xf]  ;;  %v3179_v3 = vor.u32 %v3802_v44, %v3176_v50 }
  0xb7   :  { %2180 = vmatpush.bf16.msrb.mxu3 %v3083_v35  ;;  %v2928_v35 = vld [vmem:[%s5871_s1 + $0x288] sm:$0xf0]  ;;  %2094 = vmatmul.bf16.gmra.mxu2 %v4321_v51  ;;  %v2995_v43 = vor.u32 %v3756_v16, %v2992_v26  ;;  %v3240_v51 = vld [vmem:[%s5871_s1 + $0x4f8] sm:$0xf0]  ;;  %v3848_v26 = vld [vmem:[%s5871_s1 + $0x5e4] sm:$0xf] }
  0xb8   :  { %2124 = vmatpush.bf16.msrb.mxu0 %v2883_v49  ;;  %v3368_v49 = vld [vmem:[%s5871_s1 + $0x5f8] sm:$0xf0]  ;;  %v1791_v52 = vpop.f32.mrf.mxu2  ;;  %v2931_v59 = vor.u32 %v3740_v34, %v2928_v35  ;;  %v3243_v57 = vor.u32 %v3818_v42, %v3240_v51  ;;  %v3168_v12 = vld [vmem:[%s5871_s1 + $0x468] sm:$0xf0]  ;;  %v3830_v35 = vld [vmem:[%s5871_s1 + $0x554] sm:$0xf] }
  0xb9   :  { %2143 = vmatpush.bf16.msrb.mxu1 %v2947_v48  ;;  %v1792_v48 = vadd.f32 %v1791_v52, %v1773_v20  ;;  %v3371_v10 = vor.u32 %v3850_v56, %v3368_v49  ;;  %v3814_v44 = vld [vmem:[%s5871_s1 + $0x4d4] sm:$0xf]  ;;  %v3352_v51 = vld [vmem:[%s5871_s1 + $0x5d8] sm:$0xf0] }
  0xba   :  { %2162 = vmatpush.bf16.msrb.mxu2 %v3011_v47  ;;  %v2867_v47 = vor.u32 %v3724_v30, %v2864_v31  ;;  %v1774_v54 = vpop.f32.mrf.mxu1  ;;  %v3360_v30 = vld [vmem:[%s5871_s1 + $0x5e8] sm:$0xf0]  ;;  %v3299_v31 = vor.u32 %v3832_v4, %v3296_v7  ;;  %v3796_v4 = vld [vmem:[%s5871_s1 + $0x444] sm:$0xf] }
  0xbb   :  { %2181 = vmatpush.bf16.msrb.mxu3 %v3075_v53  ;;  %v1810_v53 = vpop.f32.mrf.mxu3  ;;  %v1755_v61 = vpop.f32.mrf.mxu0  ;;  %v3363_v34 = vor.u32 %v3848_v26, %v3360_v30  ;;  %v3812_v7 = vld [vmem:[%s5871_s1 + $0x4c4] sm:$0xf]  ;;  %v3810_v26 = vld [vmem:[%s5871_s1 + $0x4b4] sm:$0xf] }
  0xbc   :  { %2125 = vmatpush.bf16.msrb.mxu0 %v2875_v21  ;;  %v5430_v16 = vadd.f32 %v1810_v53, %v1792_v48  ;;  %v1775_v20 = vadd.f32 %v1774_v54, %v1755_v61  ;;  %v3232_v21 = vld [vmem:[%s5871_s1 + $0x4e8] sm:$0xf0]  ;;  %v3163_v48 = vor.u32 %v3798_v38, %v3160_v41  ;;  %v3828_v53 = vld [vmem:[%s5871_s1 + $0x544] sm:$0xf] }
  0xbd   :  { %2144 = vmatpush.bf16.msrb.mxu1 %v2939_v32  ;;  %v3171_v32 = vor.u32 %v3800_v11, %v3168_v12  ;;  %v3280_v61 = vld [vmem:[%s5871_s1 + $0x548] sm:$0xf0]  ;;  %v3826_v12 = vld [vmem:[%s5871_s1 + $0x534] sm:$0xf] }
  0xbe   :  { %2163 = vmatpush.bf16.msrb.mxu2 %v3003_v15  ;;  %v3816_v15 = vld [vmem:[%s5871_s1 + $0x4e4] sm:$0xf]  ;;  %v3344_v11 = vld [vmem:[%s5871_s1 + $0x5c8] sm:$0xf0] }
  0xbf   :  { %2182 = vmatpush.bf16.msrb.mxu3 %v3067_v33  ;;  %v3235_v33 = vor.u32 %v3816_v15, %v3232_v21  ;;  %v3272_v15 = vld [vmem:[%s5871_s1 + $0x538] sm:$0xf0] }
  0xc0   :  { %2126 = vmatpush.bf16.msrb.mxu0 %v2867_v47  ;;  %v1793_v37 = vpop.f32.mrf.mxu2  ;;  %v3846_v47 = vld [vmem:[%s5871_s1 + $0x5d4] sm:$0xf]  ;;  %v3275_v41 = vor.u32 %v3826_v12, %v3272_v15  ;;  %v3320_v15 = vld [vmem:[%s5871_s1 + $0x598] sm:$0xf0] }
  0xc1   :  { %2145 = vmatpush.bf16.msrb.mxu1 %v2931_v59  ;;  %v1794_v50 = vadd.f32 %v1793_v37, %v1775_v20  ;;  %v3838_v12 = vld [vmem:[%s5871_s1 + $0x594] sm:$0xf] }
  0xc2   :  { %2164 = vmatpush.bf16.msrb.mxu2 %v2995_v43  ;;  %v3224_v43 = vld [vmem:[%s5871_s1 + $0x4d8] sm:$0xf0]  ;;  %v1843_v49 = vpop.f32.mrf.mxu1 }
  0xc3   :  { %2183 = vmatpush.bf16.msrb.mxu3 %v3059_v60  ;;  %v1812_v42 = vpop.f32.mrf.mxu3  ;;  %v1824_v56 = vpop.f32.mrf.mxu0  ;;  %v3291_v60 = vor.u32 %v3830_v35, %v3288_v36 }
  0xc4   :  { %2195 = vmatpush.bf16.msra.mxu0 %v3179_v3  ;;  %v5465_v52 = vadd.f32 %v1812_v42, %v1794_v50  ;;  %v1825_v59 = vadd.f32 %v1824_v56, %v5311_v27  ;;  %v3355_v3 = vor.u32 %v3846_v47, %v3352_v51  ;;  %v3152_v27 = vld [vmem:[%s5871_s1 + $0x448] sm:$0xf0]  ;;  %2146 = vmatmul.bf16.vlgmr.msrb.gmra.mxu1 %v4466_v1  ;;  %v3824_v50 = vld [vmem:[%s5871_s1 + $0x524] sm:$0xf] }
  0xc5   :  { %2214 = vmatpush.bf16.msra.mxu1 %v3243_v57  ;;  %2127 = vmatmul.bf16.vlgmr.msrb.gmra.mxu0 %v4464_v0  ;;  %v3216_v57 = vld [vmem:[%s5871_s1 + $0x4c8] sm:$0xf0]  ;;  %v3283_v0 = vor.u32 %v3828_v53, %v3280_v61  ;;  %v3155_v1 = vor.u32 %v3796_v4, %v3152_v27  ;;  %v3256_v4 = vld [vmem:[%s5871_s1 + $0x518] sm:$0xf0] }
  0xc6   :  { %2233 = vmatpush.bf16.msra.mxu2 %v3307_v2  ;;  %v3227_v2 = vor.u32 %v3814_v44, %v3224_v43  ;;  %v1844_v54 = vadd.f32 %v1843_v49, %v1825_v59  ;;  %2184 = vmatmul.bf16.vlgmr.msrb.gmra.mxu3 %v4479_v6  ;;  %v3219_v20 = vor.u32 %v3812_v7, %v3216_v57  ;;  %v3144_v6 = vld [vmem:[%s5871_s1 + $0x438] sm:$0xf0]  ;;  %v3264_v42 = vld [vmem:[%s5871_s1 + $0x528] sm:$0xf0]  ;;  %v3808_v49 = vld [vmem:[%s5871_s1 + $0x4a4] sm:$0xf] }
  0xc7   :  { %2252 = vmatpush.bf16.msra.mxu3 %v3371_v10  ;;  %v3844_v10 = vld [vmem:[%s5871_s1 + $0x5c4] sm:$0xf]  ;;  %2165 = vmatmul.bf16.vlgmr.msrb.gmra.mxu2 %v4477_v5  ;;  %v3794_v5 = vld [vmem:[%s5871_s1 + $0x434] sm:$0xf]  ;;  %v3136_v56 = vld [vmem:[%s5871_s1 + $0x428] sm:$0xf0]  ;;  %v3267_v61 = vor.u32 %v3824_v50, %v3264_v42 }
  0xc8   :  { %2196 = vmatpush.bf16.msra.mxu0 %v3171_v32  ;;  %v3347_v21 = vor.u32 %v3844_v10, %v3344_v11  ;;  %v1862_v30 = vpop.f32.mrf.mxu2  ;;  %v3208_v32 = vld [vmem:[%s5871_s1 + $0x4b8] sm:$0xf0]  ;;  %v3147_v44 = vor.u32 %v3794_v5, %v3144_v6  ;;  %v3328_v53 = vld [vmem:[%s5871_s1 + $0x5a8] sm:$0xf0]  ;;  %v3806_v10 = vld [vmem:[%s5871_s1 + $0x494] sm:$0xf] }
  0xc9   :  { %2215 = vmatpush.bf16.msra.mxu1 %v3235_v33  ;;  %v3842_v33 = vld [vmem:[%s5871_s1 + $0x5b4] sm:$0xf]  ;;  %v1863_v35 = vadd.f32 %v1862_v30, %v1844_v54  ;;  %v3211_v47 = vor.u32 %v3810_v26, %v3208_v32  ;;  %v3128_v57 = vld [vmem:[%s5871_s1 + $0x418] sm:$0xf0]  ;;  %v3820_v6 = vld [vmem:[%s5871_s1 + $0x504] sm:$0xf] }
  0xca   :  { %2234 = vmatpush.bf16.msra.mxu2 %v3299_v31  ;;  %v1845_v37 = vpop.f32.mrf.mxu1  ;;  %v3790_v54 = vld [vmem:[%s5871_s1 + $0x414] sm:$0xf]  ;;  %v3248_v32 = vld [vmem:[%s5871_s1 + $0x508] sm:$0xf0] }
  0xcb   :  { %2253 = vmatpush.bf16.msra.mxu3 %v3363_v34  ;;  %v1881_v31 = vpop.f32.mrf.mxu3  ;;  %v3336_v34 = vld [vmem:[%s5871_s1 + $0x5b8] sm:$0xf0]  ;;  %v1826_v36 = vpop.f32.mrf.mxu0  ;;  %v3312_v50 = vld [vmem:[%s5871_s1 + $0x588] sm:$0xf0]  ;;  %v3898_v42 = vld [vmem:[%s5871_s1 + $0x774] sm:$0xf] }
  0xcc   :  { %2197 = vmatpush.bf16.msra.mxu0 %v3163_v48  ;;  %v1827_v38 = vadd.f32 %v1826_v36, %v5364_v19  ;;  %v5527_v43 = vadd.f32 %v1881_v31, %v1863_v35  ;;  %v3339_v51 = vor.u32 %v3842_v33, %v3336_v34  ;;  %v3792_v19 = vld [vmem:[%s5871_s1 + $0x424] sm:$0xf]  ;;  %v3131_v31 = vor.u32 %v3790_v54, %v3128_v57  ;;  %v3120_v34 = vld [vmem:[%s5871_s1 + $0x408] sm:$0xf0] }
  0xcd   :  { %2216 = vmatpush.bf16.msra.mxu1 %v3227_v2  ;;  %v3840_v48 = vld [vmem:[%s5871_s1 + $0x5a4] sm:$0xf]  ;;  %v3139_v2 = vor.u32 %v3792_v19, %v3136_v56  ;;  %v3323_v36 = vor.u32 %v3838_v12, %v3320_v15  ;;  %v3251_v19 = vor.u32 %v3820_v6, %v3248_v32  ;;  %v3488_v15 = vld [vmem:[%s5871_s1 + $0x6e8] sm:$0xf0]  ;;  %v3894_v32 = vld [vmem:[%s5871_s1 + $0x754] sm:$0xf] }
  0xce   :  { %2235 = vmatpush.bf16.msra.mxu2 %v3291_v60  ;;  %v1846_v59 = vadd.f32 %v1845_v37, %v1827_v38  ;;  %v3200_v60 = vld [vmem:[%s5871_s1 + $0x4a8] sm:$0xf0]  ;;  %v3331_v7 = vor.u32 %v3840_v48, %v3328_v53  ;;  %v3788_v33 = vld [vmem:[%s5871_s1 + $0x404] sm:$0xf] }
  0xcf   :  { %2254 = vmatpush.bf16.msra.mxu3 %v3355_v3  ;;  %v3822_v3 = vld [vmem:[%s5871_s1 + $0x514] sm:$0xf]  ;;  %v3203_v27 = vor.u32 %v3808_v49, %v3200_v60  ;;  %v3804_v37 = vld [vmem:[%s5871_s1 + $0x484] sm:$0xf]  ;;  %v3184_v38 = vld [vmem:[%s5871_s1 + $0x488] sm:$0xf0]  ;;  %v3123_v56 = vor.u32 %v3788_v33, %v3120_v34 }
  0xd0   :  { %2198 = vmatpush.bf16.msra.mxu0 %v3155_v1  ;;  %v1864_v11 = vpop.f32.mrf.mxu2  ;;  %v3192_v1 = vld [vmem:[%s5871_s1 + $0x498] sm:$0xf0]  ;;  %v3259_v30 = vor.u32 %v3822_v3, %v3256_v4  ;;  %v3896_v3 = vld [vmem:[%s5871_s1 + $0x764] sm:$0xf]  ;;  %v3552_v4 = vld [vmem:[%s5871_s1 + $0x768] sm:$0xf0] }
  0xd1   :  { %2217 = vmatpush.bf16.msra.mxu1 %v3219_v20  ;;  %v1865_v20 = vadd.f32 %v1864_v11, %v1846_v59  ;;  %v3624_v49 = vld [vmem:[%s5871_s1 + $0x7f8] sm:$0xf0]  ;;  %v3187_v59 = vor.u32 %v3804_v37, %v3184_v38  ;;  %v3864_v11 = vld [vmem:[%s5871_s1 + $0x664] sm:$0xf]  ;;  %v3862_v34 = vld [vmem:[%s5871_s1 + $0x654] sm:$0xf] }
  0xd2   :  { %2236 = vmatpush.bf16.msra.mxu2 %v3283_v0  ;;  %v1848_v5 = vpop.f32.mrf.mxu1  ;;  %v3544_v33 = vld [vmem:[%s5871_s1 + $0x758] sm:$0xf0] }
  0xd3   :  { %2255 = vmatpush.bf16.msra.mxu3 %v3347_v21  ;;  %v1883_v0 = vpop.f32.mrf.mxu3  ;;  %v1829_v21 = vpop.f32.mrf.mxu0 }
  0xd4   :  { %2199 = vmatpush.bf16.msra.mxu0 %v3147_v44  ;;  %v1830_v26 = vadd.f32 %v1829_v21, %v5430_v16  ;;  %v5584_v35 = vadd.f32 %v1883_v0, %v1865_v20  ;;  %v3195_v16 = vor.u32 %v3806_v10, %v3192_v1  ;;  %2151 = vmatmul.bf16.gmra.mxu1 %v4598_v9  ;;  %v3432_v9 = vld [vmem:[%s5871_s1 + $0x678] sm:$0xf0]  ;;  %v3424_v0 = vld [vmem:[%s5871_s1 + $0x668] sm:$0xf0]  ;;  %v3880_v1 = vld [vmem:[%s5871_s1 + $0x6e4] sm:$0xf] }
  0xd5   :  { %2218 = vmatpush.bf16.msra.mxu1 %v3211_v47  ;;  %2132 = vmatmul.bf16.gmra.mxu0 %v4596_v8  ;;  %v3560_v47 = vld [vmem:[%s5871_s1 + $0x778] sm:$0xf0]  ;;  %v3866_v8 = vld [vmem:[%s5871_s1 + $0x674] sm:$0xf]  ;;  %v3912_v20 = vld [vmem:[%s5871_s1 + $0x7e4] sm:$0xf] }
  0xd6   :  { %2237 = vmatpush.bf16.msra.mxu2 %v3275_v41  ;;  %v3836_v41 = vld [vmem:[%s5871_s1 + $0x584] sm:$0xf]  ;;  %v1849_v44 = vadd.f32 %v1848_v5, %v1830_v26  ;;  %2189 = vmatmul.bf16.gmra.mxu3 %v4611_v14  ;;  %v3914_v14 = vld [vmem:[%s5871_s1 + $0x7f4] sm:$0xf]  ;;  %v3616_v21 = vld [vmem:[%s5871_s1 + $0x7e8] sm:$0xf0]  ;;  %v3427_v26 = vor.u32 %v3864_v11, %v3424_v0 }
  0xd7   :  { %2256 = vmatpush.bf16.msra.mxu3 %v3339_v51  ;;  %2170 = vmatmul.bf16.gmra.mxu2 %v4609_v13  ;;  %v3882_v51 = vld [vmem:[%s5871_s1 + $0x6f4] sm:$0xf]  ;;  %v3496_v13 = vld [vmem:[%s5871_s1 + $0x6f8] sm:$0xf0]  ;;  %v3315_v60 = vor.u32 %v3836_v41, %v3312_v50  ;;  %v3627_v10 = vor.u32 %v3914_v14, %v3624_v49 }
  0xd8   :  { %2200 = vmatpush.bf16.msra.mxu0 %v3139_v2  ;;  %v1867_v48 = vpop.f32.mrf.mxu2  ;;  %v3435_v2 = vor.u32 %v3866_v8, %v3432_v9  ;;  %v3499_v57 = vor.u32 %v3882_v51, %v3496_v13  ;;  %v3480_v41 = vld [vmem:[%s5871_s1 + $0x6d8] sm:$0xf0]  ;;  %v3547_v51 = vor.u32 %v3894_v32, %v3544_v33  ;;  %v3536_v13 = vld [vmem:[%s5871_s1 + $0x748] sm:$0xf0] }
  0xd9   :  { %2219 = vmatpush.bf16.msra.mxu1 %v3203_v27  ;;  %v1868_v27 = vadd.f32 %v1867_v48, %v1849_v44  ;;  %v3910_v44 = vld [vmem:[%s5871_s1 + $0x7d4] sm:$0xf]  ;;  %v3608_v50 = vld [vmem:[%s5871_s1 + $0x7d8] sm:$0xf0]  ;;  %v3876_v48 = vld [vmem:[%s5871_s1 + $0x6c4] sm:$0xf] }
  0xda   :  { %2238 = vmatpush.bf16.msra.mxu2 %v3267_v61  ;;  %v3563_v61 = vor.u32 %v3898_v42, %v3560_v47  ;;  %v1850_v54 = vpop.f32.mrf.mxu1  ;;  %v3464_v0 = vld [vmem:[%s5871_s1 + $0x6b8] sm:$0xf0] }
  0xdb   :  { %2257 = vmatpush.bf16.msra.mxu3 %v3331_v7  ;;  %v1886_v53 = vpop.f32.mrf.mxu3  ;;  %v1831_v7 = vpop.f32.mrf.mxu0 }
  0xdc   :  { %2201 = vmatpush.bf16.msra.mxu0 %v3131_v31  ;;  %v1832_v12 = vadd.f32 %v1831_v7, %v5465_v52  ;;  %v5651_v5 = vadd.f32 %v1886_v53, %v1868_v27  ;;  %v3555_v52 = vor.u32 %v3896_v3, %v3552_v4  ;;  %v3619_v31 = vor.u32 %v3912_v20, %v3616_v21  ;;  %v3600_v3 = vld [vmem:[%s5871_s1 + $0x7c8] sm:$0xf0]  ;;  %v3890_v4 = vld [vmem:[%s5871_s1 + $0x734] sm:$0xf]  ;;  %v3528_v27 = vld [vmem:[%s5871_s1 + $0x738] sm:$0xf0] }
  0xdd   :  { %2220 = vmatpush.bf16.msra.mxu1 %v3195_v16  ;;  %v3416_v16 = vld [vmem:[%s5871_s1 + $0x658] sm:$0xf0] }
  0xde   :  { %2239 = vmatpush.bf16.msra.mxu2 %v3259_v30  ;;  %v1851_v6 = vadd.f32 %v1850_v54, %v1832_v12  ;;  %v3491_v30 = vor.u32 %v3880_v1, %v3488_v15  ;;  %v3906_v1 = vld [vmem:[%s5871_s1 + $0x7b4] sm:$0xf]  ;;  %v3592_v12 = vld [vmem:[%s5871_s1 + $0x7b8] sm:$0xf0] }
  0xdf   :  { %2258 = vmatpush.bf16.msra.mxu3 %v3323_v36  ;;  %v3878_v36 = vld [vmem:[%s5871_s1 + $0x6d4] sm:$0xf] }
  0xe0   :  { %2202 = vmatpush.bf16.msra.mxu0 %v3123_v56  ;;  %v1869_v37 = vpop.f32.mrf.mxu2  ;;  %v3892_v56 = vld [vmem:[%s5871_s1 + $0x744] sm:$0xf]  ;;  %v3483_v49 = vor.u32 %v3878_v36, %v3480_v41 }
  0xe1   :  { %2221 = vmatpush.bf16.msra.mxu1 %v3187_v59  ;;  %v1870_v42 = vadd.f32 %v1869_v37, %v1851_v6  ;;  %v3611_v59 = vor.u32 %v3910_v44, %v3608_v50  ;;  %v3872_v36 = vld [vmem:[%s5871_s1 + $0x6a4] sm:$0xf]  ;;  %v3584_v44 = vld [vmem:[%s5871_s1 + $0x7a8] sm:$0xf0] }
  0xe2   :  { %2240 = vmatpush.bf16.msra.mxu2 %v3251_v19  ;;  %v1919_v8 = vpop.f32.mrf.mxu1  ;;  %v3419_v19 = vor.u32 %v3862_v34, %v3416_v16  ;;  %v3595_v34 = vor.u32 %v3906_v1, %v3592_v12  ;;  %v3392_v16 = vld [vmem:[%s5871_s1 + $0x628] sm:$0xf0]  ;;  %v3904_v41 = vld [vmem:[%s5871_s1 + $0x7a4] sm:$0xf] }
  0xe3   :  { %2259 = vmatpush.bf16.msra.mxu3 %v3315_v60  ;;  %v1888_v38 = vpop.f32.mrf.mxu3  ;;  %v1900_v47 = vpop.f32.mrf.mxu0  ;;  %v3860_v60 = vld [vmem:[%s5871_s1 + $0x644] sm:$0xf]  ;;  %v3568_v1 = vld [vmem:[%s5871_s1 + $0x788] sm:$0xf0] }
  0xe4   :  { %2271 = vmatpush.bf16.msrb.mxu0 %v3435_v2  ;;  %v1901_v9 = vadd.f32 %v1900_v47, %v5527_v43  ;;  %v5684_v14 = vadd.f32 %v1888_v38, %v1870_v42  ;;  %v3408_v43 = vld [vmem:[%s5871_s1 + $0x648] sm:$0xf0]  ;;  %2222 = vmatmul.bf16.vlgmr.msra.gmra.mxu1 %v4736_v24  ;;  %v3908_v2 = vld [vmem:[%s5871_s1 + $0x7c4] sm:$0xf]  ;;  %v3886_v47 = vld [vmem:[%s5871_s1 + $0x714] sm:$0xf] }
  0xe5   :  { %2290 = vmatpush.bf16.msrb.mxu1 %v3499_v57  ;;  %2203 = vmatmul.bf16.vlgmr.msra.gmra.mxu0 %v4734_v23  ;;  %v3539_v23 = vor.u32 %v3892_v56, %v3536_v13  ;;  %v3411_v24 = vor.u32 %v3860_v60, %v3408_v43  ;;  %v3603_v54 = vor.u32 %v3908_v2, %v3600_v3  ;;  %v3874_v57 = vld [vmem:[%s5871_s1 + $0x6b4] sm:$0xf]  ;;  %v3456_v38 = vld [vmem:[%s5871_s1 + $0x6a8] sm:$0xf0]  ;;  %v3384_v56 = vld [vmem:[%s5871_s1 + $0x618] sm:$0xf0] }
  0xe6   :  { %2309 = vmatpush.bf16.msrb.mxu2 %v3563_v61  ;;  %v1920_v53 = vadd.f32 %v1919_v8, %v1901_v9  ;;  %v3472_v61 = vld [vmem:[%s5871_s1 + $0x6c8] sm:$0xf0]  ;;  %2260 = vmatmul.bf16.vlgmr.msra.gmra.mxu3 %v4749_v29  ;;  %v3400_v29 = vld [vmem:[%s5871_s1 + $0x638] sm:$0xf0]  ;;  %v3467_v33 = vor.u32 %v3874_v57, %v3464_v0  ;;  %v3459_v9 = vor.u32 %v3872_v36, %v3456_v38  ;;  %v3870_v13 = vld [vmem:[%s5871_s1 + $0x694] sm:$0xf] }
  0xe7   :  { %2328 = vmatpush.bf16.msrb.mxu3 %v3627_v10  ;;  %2241 = vmatmul.bf16.vlgmr.msra.gmra.mxu2 %v4747_v28  ;;  %v3475_v7 = vor.u32 %v3876_v48, %v3472_v61  ;;  %v3858_v28 = vld [vmem:[%s5871_s1 + $0x634] sm:$0xf]  ;;  %v3512_v8 = vld [vmem:[%s5871_s1 + $0x718] sm:$0xf0]  ;;  %v3868_v57 = vld [vmem:[%s5871_s1 + $0x684] sm:$0xf] }
  0xe8   :  { %2272 = vmatpush.bf16.msrb.mxu0 %v3427_v26  ;;  %v1938_v10 = vpop.f32.mrf.mxu2  ;;  %v3403_v26 = vor.u32 %v3858_v28, %v3400_v29  ;;  %v3448_v60 = vld [vmem:[%s5871_s1 + $0x698] sm:$0xf0]  ;;  %v3902_v43 = vld [vmem:[%s5871_s1 + $0x794] sm:$0xf]  ;;  %v3376_v29 = vld [vmem:[%s5871_s1 + $0x608] sm:$0xf0] }
  0xe9   :  { %2291 = vmatpush.bf16.msrb.mxu1 %v3491_v30  ;;  %v1939_v15 = vadd.f32 %v1938_v10, %v1920_v53  ;;  %v3888_v30 = vld [vmem:[%s5871_s1 + $0x724] sm:$0xf]  ;;  %v3576_v48 = vld [vmem:[%s5871_s1 + $0x798] sm:$0xf0] }
  0xea   :  { %2310 = vmatpush.bf16.msrb.mxu2 %v3555_v52  ;;  %v1921_v21 = vpop.f32.mrf.mxu1  ;;  %v3531_v52 = vor.u32 %v3890_v4, %v3528_v27  ;;  %v3884_v4 = vld [vmem:[%s5871_s1 + $0x704] sm:$0xf]  ;;  %v3504_v27 = vld [vmem:[%s5871_s1 + $0x708] sm:$0xf0]  ;;  %v3579_v28 = vor.u32 %v3902_v43, %v3576_v48 }
  0xeb   :  { %2329 = vmatpush.bf16.msrb.mxu3 %v3619_v31  ;;  %v1957_v11 = vpop.f32.mrf.mxu3  ;;  %v1902_v20 = vpop.f32.mrf.mxu0  ;;  %v3520_v31 = vld [vmem:[%s5871_s1 + $0x728] sm:$0xf0]  ;;  %v3900_v0 = vld [vmem:[%s5871_s1 + $0x784] sm:$0xf] }
  0xec   :  { %2273 = vmatpush.bf16.msrb.mxu0 %v3419_v19  ;;  %v1903_v6 = vadd.f32 %v1902_v20, %v5584_v35  ;;  %v5739_v32 = vadd.f32 %v1957_v11, %v1939_v15  ;;  %v3856_v35 = vld [vmem:[%s5871_s1 + $0x624] sm:$0xf]  ;;  %v3523_v50 = vor.u32 %v3888_v30, %v3520_v31  ;;  %v3854_v19 = vld [vmem:[%s5871_s1 + $0x614] sm:$0xf]  ;;  %v3440_v11 = vld [vmem:[%s5871_s1 + $0x688] sm:$0xf0]  ;;  %v3571_v15 = vor.u32 %v3900_v0, %v3568_v1 }
  0xed   :  { %2292 = vmatpush.bf16.msrb.mxu1 %v3483_v49  ;;  %v3395_v42 = vor.u32 %v3856_v35, %v3392_v16  ;;  %v3443_v12 = vor.u32 %v3868_v57, %v3440_v11 }
  0xee   :  { %2311 = vmatpush.bf16.msrb.mxu2 %v3547_v51  ;;  %v1922_v37 = vadd.f32 %v1921_v21, %v1903_v6  ;;  %v3587_v51 = vor.u32 %v3904_v41, %v3584_v44 }
  0xef   :  { %2330 = vmatpush.bf16.msrb.mxu3 %v3611_v59 }
  0xf0   :  { %2274 = vmatpush.bf16.msrb.mxu0 %v3411_v24  ;;  %v1940_v49 = vpop.f32.mrf.mxu2  ;;  %v3387_v24 = vor.u32 %v3854_v19, %v3384_v56 }
  0xf1   :  { %2293 = vmatpush.bf16.msrb.mxu1 %v3475_v7  ;;  %v1941_v53 = vadd.f32 %v1940_v49, %v1922_v37 }
  0xf2   :  { %2312 = vmatpush.bf16.msrb.mxu2 %v3539_v23  ;;  %v1924_v2 = vpop.f32.mrf.mxu1  ;;  %v3515_v23 = vor.u32 %v3886_v47, %v3512_v8 }
  0xf3   :  { %2331 = vmatpush.bf16.msrb.mxu3 %v3603_v54  ;;  %v1959_v59 = vpop.f32.mrf.mxu3  ;;  %v1905_v61 = vpop.f32.mrf.mxu0  ;;  %v3451_v54 = vor.u32 %v3870_v13, %v3448_v60 }
  0xf4   :  { %2275 = vmatpush.bf16.msrb.mxu0 %v3403_v26  ;;  %v1906_v3 = vadd.f32 %v1905_v61, %v5651_v5  ;;  %v1960_v7 = vadd.f32 %v1959_v59, %v1941_v53  ;;  %v3852_v5 = vld [vmem:[%s5871_s1 + $0x604] sm:$0xf]  ;;  %2227 = vmatmul.bf16.gmra.mxu1 %v4868_v40 }
  0xf5   :  { %2294 = vmatpush.bf16.msrb.mxu1 %v3467_v33  ;;  %2208 = vmatmul.bf16.gmra.mxu0 %v4866_v39  ;;  %v3507_v39 = vor.u32 %v3884_v4, %v3504_v27  ;;  %v3379_v40 = vor.u32 %v3852_v5, %v3376_v29 }
  0xf6   :  { %2313 = vmatpush.bf16.msrb.mxu2 %v3531_v52  ;;  %v1925_v10 = vadd.f32 %v1924_v2, %v1906_v3  ;;  %2265 = vmatmul.bf16.gmra.mxu3 %v4881_v46 }
  0xf7   :  { %2332 = vmatpush.bf16.msrb.mxu3 %v3595_v34  ;;  %2246 = vmatmul.bf16.gmra.mxu2 %v4879_v45 }
  0xf8   :  { %2276 = vmatpush.bf16.msrb.mxu0 %v3395_v42  ;;  %v1943_v20 = vpop.f32.mrf.mxu2 }
  0xf9   :  { %2295 = vmatpush.bf16.msrb.mxu1 %v3459_v9  ;;  %v1944_v6 = vadd.f32 %v1943_v20, %v1925_v10 }
  0xfa   :  { %2314 = vmatpush.bf16.msrb.mxu2 %v3523_v50  ;;  %v1926_v26 = vpop.f32.mrf.mxu1 }
  0xfb   :  { %2333 = vmatpush.bf16.msrb.mxu3 %v3587_v51  ;;  %v1962_v21 = vpop.f32.mrf.mxu3  ;;  %v1907_v52 = vpop.f32.mrf.mxu0 }
  0xfc   :  { %2277 = vmatpush.bf16.msrb.mxu0 %v3387_v24  ;;  %v1908_v30 = vadd.f32 %v1907_v52, %v5684_v14  ;;  %v1963_v45 = vadd.f32 %v1962_v21, %v1944_v6 }
  0xfd   :  { %2296 = vmatpush.bf16.msrb.mxu1 %v3451_v54 }
  0xfe   :  { %2315 = vmatpush.bf16.msrb.mxu2 %v3515_v23  ;;  %v1927_v46 = vadd.f32 %v1926_v26, %v1908_v30 }
  0xff   :  { %2334 = vmatpush.bf16.msrb.mxu3 %v3579_v28 }
 0x100   :  { %2278 = vmatpush.bf16.msrb.mxu0 %v3379_v40  ;;  %v1945_v31 = vpop.f32.mrf.mxu2 }
 0x101   :  { %2297 = vmatpush.bf16.msrb.mxu1 %v3443_v12  ;;  %v1946_v34 = vadd.f32 %v1945_v31, %v1927_v46 }
 0x102   :  { %2316 = vmatpush.bf16.msrb.mxu2 %v3507_v39  ;;  %v1995_v16 = vpop.f32.mrf.mxu1 }
 0x103   :  { %2335 = vmatpush.bf16.msrb.mxu3 %v3571_v15  ;;  %v1964_v33 = vpop.f32.mrf.mxu3  ;;  %v1976_v35 = vpop.f32.mrf.mxu0 }
 0x104   :  { %v1977_v36 = vadd.f32 %v1976_v35, %v5739_v32  ;;  %v1965_v37 = vadd.f32 %v1964_v33, %v1946_v34  ;;  %2298 = vmatmul.bf16.vlgmr.msrb.gmra.mxu1 %v5012_v18 }
 0x105   :  { %2279 = vmatmul.bf16.vlgmr.msrb.gmra.mxu0 %v5010_v17 }
 0x106   :  { %v1996_v38 = vadd.f32 %v1995_v16, %v1977_v36  ;;  %2336 = vmatmul.bf16.vlgmr.msrb.gmra.mxu3 %v5025_v25  ;;  %v3923_v25 = vmov 32.0  }
 0x107   :  { %2317 = vmatmul.bf16.vlgmr.msrb.gmra.mxu2 %v5023_v22  ;;  %3917 = vrcp.f32 %v3923_v25 }
 0x108   :  { %v2014_v14 = vpop.f32.mrf.mxu2 }
 0x109   :  { %v2015_v44 = vadd.f32 %v2014_v14, %v1996_v38 }
 0x10a   :  { %v1997_v42 = vpop.f32.mrf.mxu1 }
 0x10b   :  { %v2033_v41 = vpop.f32.mrf.mxu3  ;;  %v1978_v50 = vpop.f32.mrf.mxu0 }
 0x10c   :  { %v1979_v47 = vadd.f32 %v1978_v50, %v1960_v7  ;;  %v2034_v8 = vadd.f32 %v2033_v41, %v2015_v44 }
 0x10d   :  { %v3918_v23 = vpop.eup %3917 }
 0x10e   :  { %v1998_v9 = vadd.f32 %v1997_v42, %v1979_v47  ;;  %vm2370_vm0 = vweird.f32 %v3918_v23 }
 0x110   :  { %v2016_v51 = vpop.f32.mrf.mxu2 }
 0x111   :  { %v2017_v19 = vadd.f32 %v2016_v51, %v1998_v9 }
 0x112   :  { %v2000_v13 = vpop.f32.mrf.mxu1 }
 0x113   :  { %v2035_v32 = vpop.f32.mrf.mxu3  ;;  %v1981_v56 = vpop.f32.mrf.mxu0 }
 0x114   :  { %v1982_v17 = vadd.f32 %v1981_v56, %v1963_v45  ;;  %v2036_v49 = vadd.f32 %v2035_v32, %v2017_v19  ;;  %2303 = vmatmul.bf16.gmra.mxu1 %v5144_v58  ;;  %v2366_v58 = vmul.f32 32.0, %v3918_v23 }
 0x115   :  { %2284 = vmatmul.bf16.gmra.mxu0 %v5142_v55 }
 0x116   :  { %v2001_v18 = vadd.f32 %v2000_v13, %v1982_v17  ;;  %v2347_v22 = vadd.f32 %v2036_v49, %v2034_v8  ;;  %2341 = vmatmul.bf16.gmra.mxu3 %v5157_v63  ;;  %v2367_v28 = vsub.f32 1.0, %v2366_v58 }
 0x117   :  { %2322 = vmatmul.bf16.gmra.mxu2 %v5155_v62 }
 0x118   :  { %v2368_v57 = vmul.f32 %v3918_v23, %v2367_v28 }
 0x11a   :  { %v2019_v59 = vpop.f32.mrf.mxu2  ;;  %v2002_v53 = vpop.f32.mrf.mxu1  ;;  %v2369_v21 = vadd.f32 %v3918_v23, %v2368_v57 }
 0x11b   :  { %v2038_v60 = vpop.f32.mrf.mxu3  ;;  %v2020_v43 = vadd.f32 %v2019_v59, %v2001_v18  ;;  %v1983_v48 = vpop.f32.mrf.mxu0 }
 0x11c   :  { %v1984_v61 = vadd.f32 %v1983_v48, %v1965_v37  ;;  %v5822_v26 = vsel %vm2370_vm0, %v3918_v23, %v2369_v21 }
 0x11d   :  { %v2039_v2 = vadd.f32 %v2038_v60, %v2020_v43 }
 0x11e   :  { %v2003_v3 = vadd.f32 %v2002_v53, %v1984_v61 }
 0x11f   :  { %v2348_v24 = vadd.f32 %v2347_v22, %v2039_v2 }
 0x122   :  { %v2021_v55 = vpop.f32.mrf.mxu2  ;;  %v2071_v62 = vpop.f32.mrf.mxu1 }
 0x123   :  { %v2040_v4 = vpop.f32.mrf.mxu3  ;;  %v2022_v27 = vadd.f32 %v2021_v55, %v2003_v3  ;;  %v2052_v7 = vpop.f32.mrf.mxu0 }
 0x124   :  { %v2072_v54 = vadd.f32 %v2071_v62, %v2052_v7 }
 0x125   :  { %v2041_v63 = vadd.f32 %v2040_v4, %v2022_v27 }
 0x127   :  { %v2349_v5 = vadd.f32 %v2348_v24, %v2041_v63 }
 0x129   :  { %v2350_v29 = vrot.slane %v2349_v5, 4 }
 0x12a   :  { %v2090_v10 = vpop.f32.mrf.mxu2  ;;  %v2073_v40 = vpop.f32.mrf.mxu1 }
 0x12b   :  { %v2109_v11 = vpop.f32.mrf.mxu3  ;;  %v2351_v0 = vadd.f32 %v2350_v29, %v2349_v5  ;;  %v2091_v1 = vadd.f32 %v2090_v10, %v2072_v54  ;;  %v2054_v39 = vpop.f32.mrf.mxu0 }
 0x12c   :  { %v2074_v12 = vadd.f32 %v2073_v40, %v2054_v39 }
 0x12d   :  { %v2352_v15 = vrot.slane %v2351_v0, 2  ;;  %v2110_v20 = vadd.f32 %v2109_v11, %v2091_v1 }
 0x12f   :  { %v2353_v6 = vadd.f32 %v2352_v15, %v2351_v0 }
 0x131   :  { %v2354_v52 = vrot.slane %v2353_v6, 1 }
 0x132   :  { %v2092_v30 = vpop.f32.mrf.mxu2  ;;  %v2076_v34 = vpop.f32.mrf.mxu1 }
 0x133   :  { %v2111_v45 = vpop.f32.mrf.mxu3  ;;  %v2355_v46 = vadd.f32 %v2354_v52, %v2353_v6  ;;  %v2093_v31 = vadd.f32 %v2092_v30, %v2074_v12  ;;  %v2057_v33 = vpop.f32.mrf.mxu0 }
 0x134   :  { %v2077_v35 = vadd.f32 %v2076_v34, %v2057_v33 }
 0x135   :  { %v2372_v16 = vmul.f32 %v5822_v26, %v2355_v46  ;;  %v5825_v36 = vadd.f32 %v2111_v45, %v2093_v31 }
 0x137   :  { %v2374_v37 = vsub.f32 %v2034_v8, %v2372_v16  ;;  %v2376_v38 = vsub.f32 %v2036_v49, %v2372_v16  ;;  %v2378_v14 = vsub.f32 %v2039_v2, %v2372_v16  ;;  %v2380_v41 = vsub.f32 %v2041_v63, %v2372_v16 }
 0x139   :  { %v2382_v44 = vmul.f32 %v2374_v37, %v2374_v37  ;;  %v2384_v50 = vmul.f32 %v2376_v38, %v2376_v38  ;;  %v2386_v9 = vmul.f32 %v2378_v14, %v2378_v14  ;;  %v2388_v17 = vmul.f32 %v2380_v41, %v2380_v41 }
 0x13a   :  { %v2095_v42 = vpop.f32.mrf.mxu2  ;;  %v2078_v56 = vpop.f32.mrf.mxu1 }
 0x13b   :  { %v2114_v47 = vpop.f32.mrf.mxu3  ;;  %v2390_v51 = vadd.f32 %v2384_v50, %v2382_v44  ;;  %v2096_v32 = vadd.f32 %v2095_v42, %v2077_v35  ;;  %v2059_v19 = vpop.f32.mrf.mxu0 }
 0x13c   :  { %v2079_v13 = vadd.f32 %v2078_v56, %v2059_v19 }
 0x13d   :  { %v2391_v18 = vadd.f32 %v2390_v51, %v2386_v9  ;;  %v5827_v22 = vadd.f32 %v2114_v47, %v2096_v32 }
 0x13f   :  { %v2392_v25 = vadd.f32 %v2391_v18, %v2388_v17 }
 0x141   :  { %v2393_v59 = vrot.slane %v2392_v25, 4 }
 0x142   :  { %v2097_v8 = vpop.f32.mrf.mxu2  ;;  %v2147_v53 = vpop.f32.mrf.mxu1 }
 0x143   :  { %v2116_v49 = vpop.f32.mrf.mxu3  ;;  %v2394_v60 = vadd.f32 %v2393_v59, %v2392_v25  ;;  %v2098_v43 = vadd.f32 %v2097_v8, %v2079_v13  ;;  %v2128_v48 = vpop.f32.mrf.mxu0 }
 0x144   :  { %v2129_v61 = vadd.f32 %v2128_v48, %v2110_v20 }
 0x145   :  { %v2395_v2 = vrot.slane %v2394_v60, 2  ;;  %v5829_v3 = vadd.f32 %v2116_v49, %v2098_v43 }
 0x146   :  { %v2148_v23 = vadd.f32 %v2147_v53, %v2129_v61 }
 0x147   :  { %v2396_v24 = vadd.f32 %v2395_v2, %v2394_v60 }
 0x149   :  { %v2397_v55 = vrot.slane %v2396_v24, 1 }
 0x14a   :  { %v2166_v4 = vpop.f32.mrf.mxu2  ;;  %v2149_v54 = vpop.f32.mrf.mxu1 }
 0x14b   :  { %v2185_v58 = vpop.f32.mrf.mxu3  ;;  %v2398_v27 = vadd.f32 %v2397_v55, %v2396_v24  ;;  %v2167_v7 = vadd.f32 %v2166_v4, %v2148_v23  ;;  %v2130_v62 = vpop.f32.mrf.mxu0 }
 0x14c   :  { %v2131_v13 = vadd.f32 %v2130_v62, %v5825_v36 }
 0x14d   :  { %v2408_v63 = vmul.f32 %v2398_v27, %v5822_v26  ;;  %v2186_v28 = vadd.f32 %v2185_v58, %v2167_v7 }
 0x14f   :  { %v2410_v5 = vadd.f32 1e-05, %v2408_v63 }
 0x151   :  { %3919 = vrsqrt.f32 %v2410_v5  ;;  %vm2418_vm2 = vweird.f32 %v2410_v5 }
 0x152   :  { %v2168_v29 = vpop.f32.mrf.mxu2  ;;  %v2152_v11 = vpop.f32.mrf.mxu1 }
 0x153   :  { %v2187_v57 = vpop.f32.mrf.mxu3  ;;  %v2133_v10 = vpop.f32.mrf.mxu0 }
 0x157   :  { %v3920_v0 = vpop.eup %3919 }
 0x158   :  { %v2413_v1 = vmul.f32 %v3920_v0, %v2410_v5  ;;  %vm2419_vm1 = vweird.f32 %v3920_v0 }
 0x159   :  { %vm2420_vm3 = vmor %vm2418_vm2, %vm2419_vm1 }
 0x15a   :  { %v2414_v39 = vmul.f32 %v3920_v0, %v2413_v1  ;;  %v2171_v40 = vpop.f32.mrf.mxu2  ;;  %v2154_v20 = vpop.f32.mrf.mxu1 }
 0x15b   :  { %v2190_v12 = vpop.f32.mrf.mxu3  ;;  %v2135_v15 = vpop.f32.mrf.mxu0 }
 0x15c   :  { %v2415_v21 = vmul.f32 0.5, %v2414_v39  ;;  %v2136_v36 = vadd.f32 %v2135_v15, %v5829_v3 }
 0x15e   :  { %v2416_v6 = vsub.f32 1.5, %v2415_v21  ;;  %v2155_v27 = vadd.f32 %v2154_v20, %v2136_v36 }
 0x160   :  { %v2417_v52 = vmul.f32 %v3920_v0, %v2416_v6 }
 0x162   :  { %v2421_v30 = vsel %vm2420_vm3, %v3920_v0, %v2417_v52  ;;  %v2173_v45 = vpop.f32.mrf.mxu2  ;;  %v2223_v44 = vpop.f32.mrf.mxu1 }
 0x163   :  { %v2192_v46 = vpop.f32.mrf.mxu3  ;;  %v5832_v31 = vmul.f32 %v2421_v30, %v2374_v37  ;;  %v5834_v33 = vmul.f32 %v2421_v30, %v2376_v38  ;;  %v5836_v34 = vmul.f32 %v2421_v30, %v2378_v14  ;;  %v5838_v35 = vmul.f32 %v2421_v30, %v2380_v41  ;;  %v2204_v16 = vpop.f32.mrf.mxu0 }
 0x164   :  { %v2150_v37 = vadd.f32 %v2149_v54, %v2131_v13  ;;  %v2134_v41 = vadd.f32 %v2133_v10, %v5827_v22  ;;  %v2205_v8 = vadd.f32 %v2204_v16, %v2186_v28  ;;  %v2174_v63 = vadd.f32 %v2173_v45, %v2155_v27 }
 0x165   :  { %vm2440_vm6 = vcmp.gt.f32.partialorder %v5832_v31, 0.0  ;;  %vm2442_vm8 = vcmp.gt.f32.partialorder %v5834_v33, 0.0  ;;  %vm2444_vm9 = vcmp.gt.f32.partialorder %v5836_v34, 0.0  ;;  %vm2446_vm10 = vcmp.gt.f32.partialorder %v5838_v35, 0.0 }
 0x166   :  { %v2169_v18 = vadd.f32 %v2168_v29, %v2150_v37  ;;  %v2153_v49 = vadd.f32 %v2152_v11, %v2134_v41  ;;  %v2224_v61 = vadd.f32 %v2223_v44, %v2205_v8  ;;  %v2193_v0 = vadd.f32 %v2192_v46, %v2174_v63 }
 0x168   :  { %v2188_v59 = vadd.f32 %v2187_v57, %v2169_v18  ;;  %v2172_v53 = vadd.f32 %v2171_v40, %v2153_v49 }
 0x16a   :  { %v2242_v50 = vpop.f32.mrf.mxu2  ;;  %v2225_v9 = vpop.f32.mrf.mxu1  ;;  %v2191_v4 = vadd.f32 %v2190_v12, %v2172_v53 }
 0x16b   :  { %v2261_v42 = vpop.f32.mrf.mxu3  ;;  %v2206_v47 = vpop.f32.mrf.mxu0  ;;  %v2243_v24 = vadd.f32 %v2242_v50, %v2224_v61 }
 0x16c   :  { %v2207_v60 = vadd.f32 %v2206_v47, %v2188_v59 }
 0x16d   :  { %v2262_v7 = vadd.f32 %v2261_v42, %v2243_v24 }
 0x16e   :  { %v2226_v55 = vadd.f32 %v2225_v9, %v2207_v60 }
 0x172   :  { %v2244_v51 = vpop.f32.mrf.mxu2  ;;  %v2228_v56 = vpop.f32.mrf.mxu1 }
 0x173   :  { %v2263_v32 = vpop.f32.mrf.mxu3  ;;  %v2209_v19 = vpop.f32.mrf.mxu0  ;;  %v2245_v58 = vadd.f32 %v2244_v51, %v2226_v55 }
 0x174   :  { %v2210_v62 = vadd.f32 %v2209_v19, %v2191_v4 }
 0x175   :  { %v2264_v28 = vadd.f32 %v2263_v32, %v2245_v58 }
 0x176   :  { %v2229_v10 = vadd.f32 %v2228_v56, %v2210_v62 }
 0x17a   :  { %v2247_v17 = vpop.f32.mrf.mxu2  ;;  %v2230_v25 = vpop.f32.mrf.mxu1 }
 0x17b   :  { %v2266_v38 = vpop.f32.mrf.mxu3  ;;  %v2211_v14 = vpop.f32.mrf.mxu0  ;;  %v2248_v1 = vadd.f32 %v2247_v17, %v2229_v10 }
 0x17c   :  { %v2212_v3 = vadd.f32 %v2211_v14, %v2193_v0 }
 0x17d   :  { %v2267_v20 = vadd.f32 %v2266_v38, %v2248_v1 }
 0x17e   :  { %v2231_v30 = vadd.f32 %v2230_v25, %v2212_v3 }
 0x182   :  { %v2249_v43 = vpop.f32.mrf.mxu2  ;;  %v2299_v23 = vpop.f32.mrf.mxu1 }
 0x183   :  { %v2268_v48 = vpop.f32.mrf.mxu3  ;;  %v2280_v2 = vpop.f32.mrf.mxu0  ;;  %v2250_v42 = vadd.f32 %v2249_v43, %v2231_v30 }
 0x184   :  { %v2281_v5 = vadd.f32 %v2280_v2, %v2262_v7 }
 0x185   :  { %v2269_v32 = vadd.f32 %v2268_v48, %v2250_v42 }
 0x186   :  { %v2300_v39 = vadd.f32 %v2299_v23, %v2281_v5 }
 0x18a   :  { %v2318_v22 = vpop.f32.mrf.mxu2  ;;  %v2301_v57 = vpop.f32.mrf.mxu1 }
 0x18b   :  { %v2337_v54 = vpop.f32.mrf.mxu3  ;;  %v2282_v29 = vpop.f32.mrf.mxu0  ;;  %v2319_v40 = vadd.f32 %v2318_v22, %v2300_v39 }
 0x18c   :  { %v2283_v11 = vadd.f32 %v2282_v29, %v2264_v28 }
 0x18d   :  { %v2338_v16 = vadd.f32 %v2337_v54, %v2319_v40 }
 0x18e   :  { %v2302_v15 = vadd.f32 %v2301_v57, %v2283_v11 }
 0x192   :  { %v2320_v12 = vpop.f32.mrf.mxu2  ;;  %v2304_v50 = vpop.f32.mrf.mxu1 }
 0x193   :  { %v2339_v21 = vpop.f32.mrf.mxu3  ;;  %v2321_v6 = vadd.f32 %v2320_v12, %v2302_v15  ;;  %v2285_v52 = vpop.f32.mrf.mxu0 }
 0x194   :  { %v2286_v44 = vadd.f32 %v2285_v52, %v2267_v20  ;;  %v2450_v20 = vmul.f32 0.2, %v5834_v33 }
 0x195   :  { %v2340_v45 = vadd.f32 %v2339_v21, %v2321_v6  ;;  %v2448_v21 = vmul.f32 0.2, %v5832_v31  ;;  %v2452_v6 = vmul.f32 0.2, %v5836_v34 }
 0x196   :  { %v2305_v9 = vadd.f32 %v2304_v50, %v2286_v44  ;;  %v2454_v44 = vmul.f32 0.2, %v5838_v35 }
 0x197   :  { %v2356_v47 = vadd.f32 %v2340_v45, %v2338_v16 }
 0x19a   :  { %v2323_v51 = vpop.f32.mrf.mxu2  ;;  %v2306_v18 = vpop.f32.mrf.mxu1 }
 0x19b   :  { %v2342_v46 = vpop.f32.mrf.mxu3  ;;  %v2324_v19 = vadd.f32 %v2323_v51, %v2305_v9  ;;  %v2287_v56 = vpop.f32.mrf.mxu0  ;;  %v2456_v9 = vsel %vm2440_vm6, %v5832_v31, %v2448_v21  ;;  %v2458_v51 = vsel %vm2442_vm8, %v5834_v33, %v2450_v20 }
 0x19c   :  { %v2288_v37 = vadd.f32 %v2287_v56, %v2269_v32 }
 0x19d   :  { %v2343_v13 = vadd.f32 %v2342_v46, %v2324_v19  ;;  %v2460_v46 = vsel %vm2444_vm9, %v5836_v34, %v2452_v6  ;;  %v2462_v19 = vsel %vm2446_vm10, %v5838_v35, %v2454_v44 }
 0x19e   :  { %v2307_v38 = vadd.f32 %v2306_v18, %v2288_v37 }
 0x19f   :  { %v2357_v17 = vadd.f32 %v2356_v47, %v2343_v13 }
 0x1a2   :  { %v2325_v14 = vpop.f32.mrf.mxu2 }
 0x1a3   :  { %v2326_v41 = vadd.f32 %v2325_v14, %v2307_v38  ;;  %v2344_v25 = vpop.f32.mrf.mxu3 }
 0x1a5   :  { %v2345_v59 = vadd.f32 %v2344_v25, %v2326_v41 }
 0x1a7   :  { %v2358_v8 = vadd.f32 %v2357_v17, %v2345_v59 }
 0x1a9   :  { %v2359_v49 = vrot.slane %v2358_v8, 4 }
 0x1ab   :  { %v2360_v60 = vadd.f32 %v2359_v49, %v2358_v8 }
 0x1ad   :  { %v2361_v43 = vrot.slane %v2360_v60, 2 }
 0x1af   :  { %v2362_v53 = vadd.f32 %v2361_v43, %v2360_v60 }
 0x1b1   :  { %v2363_v61 = vrot.slane %v2362_v53, 1 }
 0x1b3   :  { %v2364_v2 = vadd.f32 %v2363_v61, %v2362_v53 }
 0x1b5   :  { %v2373_v48 = vmul.f32 %v5822_v26, %v2364_v2 }
 0x1b7   :  { %v2375_v23 = vsub.f32 %v2338_v16, %v2373_v48  ;;  %v2377_v36 = vsub.f32 %v2340_v45, %v2373_v48  ;;  %v2379_v24 = vsub.f32 %v2343_v13, %v2373_v48  ;;  %v2381_v55 = vsub.f32 %v2345_v59, %v2373_v48 }
 0x1b9   :  { %v2383_v4 = vmul.f32 %v2375_v23, %v2375_v23  ;;  %v2385_v58 = vmul.f32 %v2377_v36, %v2377_v36  ;;  %v2387_v27 = vmul.f32 %v2379_v24, %v2379_v24  ;;  %v2389_v62 = vmul.f32 %v2381_v55, %v2381_v55 }
 0x1bb   :  { %v2399_v7 = vadd.f32 %v2385_v58, %v2383_v4 }
 0x1bd   :  { %v2400_v22 = vadd.f32 %v2399_v7, %v2387_v27 }
 0x1bf   :  { %v2401_v54 = vadd.f32 %v2400_v22, %v2389_v62 }
 0x1c1   :  { %v2402_v63 = vrot.slane %v2401_v54, 4 }
 0x1c3   :  { %v2403_v28 = vadd.f32 %v2402_v63, %v2401_v54 }
 0x1c5   :  { %v2404_v5 = vrot.slane %v2403_v28, 2 }
 0x1c7   :  { %v2405_v29 = vadd.f32 %v2404_v5, %v2403_v28 }
 0x1c9   :  { %v2406_v57 = vrot.slane %v2405_v29, 1 }
 0x1cb   :  { %v2407_v10 = vadd.f32 %v2406_v57, %v2405_v29 }
 0x1cd   :  { %v2409_v11 = vmul.f32 %v2407_v10, %v5822_v26 }
 0x1cf   :  { %v2411_v0 = vadd.f32 1e-05, %v2409_v11 }
 0x1d1   :  { %3921 = vrsqrt.f32 %v2411_v0  ;;  %vm2428_vm5 = vweird.f32 %v2411_v0 }
 0x1d7   :  { %v3922_v1 = vpop.eup %3921 }
 0x1d8   :  { %v2423_v39 = vmul.f32 %v3922_v1, %v2411_v0  ;;  %vm2429_vm4 = vweird.f32 %v3922_v1 }
 0x1d9   :  { %vm2430_vm7 = vmor %vm2428_vm5, %vm2429_vm4 }
 0x1da   :  { %v2424_v3 = vmul.f32 %v3922_v1, %v2423_v39 }
 0x1dc   :  { %v2425_v40 = vmul.f32 0.5, %v2424_v3 }
 0x1de   :  { %v2426_v15 = vsub.f32 1.5, %v2425_v40 }
 0x1e0   :  { %v2427_v12 = vmul.f32 %v3922_v1, %v2426_v15 }
 0x1e2   :  { %v2431_v26 = vsel %vm2430_vm7, %v3922_v1, %v2427_v12 }
 0x1e3   :  { %v2433_v52 = vmul.f32 %v2431_v26, %v2375_v23  ;;  %v2435_v30 = vmul.f32 %v2431_v26, %v2377_v36  ;;  %v2437_v16 = vmul.f32 %v2431_v26, %v2379_v24  ;;  %v2439_v45 = vmul.f32 %v2431_v26, %v2381_v55 }
 0x1e5   :  { %vm2441_vm11 = vcmp.gt.f32.partialorder %v2433_v52, 0.0  ;;  %vm2443_vm12 = vcmp.gt.f32.partialorder %v2435_v30, 0.0  ;;  %vm2445_vm13 = vcmp.gt.f32.partialorder %v2437_v16, 0.0  ;;  %vm2447_vm14 = vcmp.gt.f32.partialorder %v2439_v45, 0.0 }
 0x1e6   :  { %v2449_v50 = vmul.f32 0.2, %v2433_v52  ;;  %v2451_v42 = vmul.f32 0.2, %v2435_v30  ;;  %v2453_v47 = vmul.f32 0.2, %v2437_v16 }
 0x1e7   :  { %v2455_v32 = vmul.f32 0.2, %v2439_v45 }
 0x1e8   :  { %v2457_v56 = vsel %vm2441_vm11, %v2433_v52, %v2449_v50  ;;  %v2459_v13 = vsel %vm2443_vm12, %v2435_v30, %v2451_v42  ;;  %v2461_v37 = vsel %vm2445_vm13, %v2437_v16, %v2453_v47 }
 0x1e9   :  { %v2463_v17 = vsel %vm2447_vm14, %v2439_v45, %v2455_v32  ;;  %v2464_v18 = vpack.c.bf16 %v2457_v56, %v2456_v9  ;;  %v2465_v38 = vpack.c.bf16 %v2459_v13, %v2458_v51  ;;  %v2466_v14 = vpack.c.bf16 %v2461_v37, %v2460_v46 }
 0x1ea   :  { %v2467_v41 = vpack.c.bf16 %v2463_v17, %v2462_v19 }
 0x1eb   :  { %2468 = vst [vmem:[%s5873_s2] sm:$0xff] %v2464_v18 }
 0x1ec   :  { %2469 = vst [vmem:[%s5873_s2 + $0x8] sm:$0xff] %v2465_v38 }
 0x1ed   :  { %2470 = vst [vmem:[%s5873_s2 + $0x10] sm:$0xff] %v2466_v14 }
 0x1ee   :  { %2471 = vst [vmem:[%s5873_s2 + $0x18] sm:$0xff] %v2467_v41 }

</bundles_post_ra>
